<compile_context>
chip_gen: v7x
topology: tpu7x:2x2x1
jax: 0.10.0
libtpu: 0.0.40
codegen_flags: <defaults>
</compile_context>

<pallas_src>
import functools

import jax
import jax.numpy as jnp
from jax.experimental import pallas as pl
from jax.experimental.pallas import tpu as pltpu

ASPP_DILATIONS = (6, 12, 18)


# ----------------------------------------------------------------------------
# Pallas kernel: tiled matmul + fused bias / residual / ReLU epilogue
# ----------------------------------------------------------------------------
def _mm_kernel(*refs, relu, has_res, k_steps):
    if k_steps > 1:
        *io_refs, acc_ref = refs        # f32 VMEM scratch accumulator
    else:
        io_refs, acc_ref = refs, None
    if has_res:
        x_ref, w_ref, b_ref, r_ref, o_ref = io_refs
    else:
        x_ref, w_ref, b_ref, o_ref = io_refs
        r_ref = None

    def epilogue(acc):
        r = acc + b_ref[...]                      # (1, tn) f32 bias broadcast
        if has_res:
            r = r + r_ref[...].astype(jnp.float32)
        if relu:
            r = jnp.maximum(r, 0.0)
        return r.astype(o_ref.dtype)              # single bf16 store

    part = jnp.dot(x_ref[...], w_ref[...], preferred_element_type=jnp.float32)

    if k_steps == 1:
        # Single K pass: write once, no accumulator needed.
        o_ref[...] = epilogue(part)
    else:
        k = pl.program_id(2)

        @pl.when(k == 0)
        def _():
            acc_ref[...] = jnp.zeros_like(acc_ref)

        acc_ref[...] += part

        @pl.when(k == k_steps - 1)
        def _():
            o_ref[...] = epilogue(acc_ref[...])


def _pick_tile(dim, cap, unit):
    """Largest power-of-two-ish tile <= cap that divides dim; else full dim."""
    t = cap
    while t >= unit:
        if dim % t == 0:
            return t
        t //= 2
    return dim  # full-extent block (exempt from the (8,128) divisibility rule)


def pallas_matmul_bias(x, w, b, *, relu=False, residual=None,
                       tm_cap=512, tn_cap=256, tk_cap=512):
    """x: (M, K), w: (K, N) bf16 (prepacked, BN folded), b: (1, N) f32.

    Returns (M, N) bf16 = [relu](x @ w + b [+ residual])."""
    M, K = x.shape
    Kw, N = w.shape
    assert K == Kw, (K, Kw)

    if x.dtype != jnp.bfloat16:
        x = x.astype(jnp.bfloat16)
    if residual is not None and residual.dtype != jnp.bfloat16:
        residual = residual.astype(jnp.bfloat16)

    # Fallback only for large, non-8-aligned M (never hit at these shapes).
    m_pad = (-M) % 8 if (M > tm_cap and M % 8 != 0) else 0
    if m_pad:
        x = jnp.pad(x, ((0, m_pad), (0, 0)))
        if residual is not None:
            residual = jnp.pad(residual, ((0, m_pad), (0, 0)))
    Mp = M + m_pad

    tm = _pick_tile(Mp, tm_cap, 8)
    tn = _pick_tile(N, tn_cap, 128)
    tk = _pick_tile(K, tk_cap, 128)

    # v7x megacore: ensure the "parallel" axes have >= 2 tiles to shard when it
    # is cheap (harmless ~0.35us extra grid step on single-TC v5e/v6e).
    if Mp // tm == 1 and N // tn == 1 and Mp >= 16 and Mp % 16 == 0:
        tm = Mp // 2

    gm, gn, gk = Mp // tm, N // tn, K // tk

    in_specs = [
        pl.BlockSpec((tm, tk), lambda i, j, k: (i, k)),
        pl.BlockSpec((tk, tn), lambda i, j, k: (k, j)),
        pl.BlockSpec((1, tn), lambda i, j, k: (0, j)),
    ]
    inputs = [x, w, b]
    if residual is not None:
        in_specs.append(pl.BlockSpec((tm, tn), lambda i, j, k: (i, j)))
        inputs.append(residual)

    scratch_shapes = []
    if gk > 1:
        # f32 accumulator so the bf16 output block is written exactly once.
        scratch_shapes.append(pltpu.VMEM((tm, tn), jnp.float32))

    out = pl.pallas_call(
        functools.partial(_mm_kernel, relu=relu,
                          has_res=residual is not None, k_steps=gk),
        out_shape=jax.ShapeDtypeStruct((Mp, N), jnp.bfloat16),
        grid=(gm, gn, gk),
        in_specs=in_specs,
        out_specs=pl.BlockSpec((tm, tn), lambda i, j, k: (i, j)),
        scratch_shapes=scratch_shapes,
        compiler_params=pltpu.CompilerParams(
            dimension_semantics=("parallel", "parallel", "arbitrary"),
            vmem_limit_bytes=32 * 1024 * 1024),
    )(*inputs)

    if m_pad:
        out = out[:M]
    return out


# ----------------------------------------------------------------------------
# Conv glue (im2col in plain JAX, matmul + epilogue in Pallas)
# ----------------------------------------------------------------------------
def _im2col(x, kh, kw, stride, padding, dilation):
    n, h, w, c = x.shape
    xp = jnp.pad(x, ((0, 0), (padding, padding), (padding, padding), (0, 0)))
    eff_kh = (kh - 1) * dilation + 1
    eff_kw = (kw - 1) * dilation + 1
    ho = (h + 2 * padding - eff_kh) // stride + 1
    wo = (w + 2 * padding - eff_kw) // stride + 1
    cols = []
    for dy in range(kh):
        for dx in range(kw):
            ys = dy * dilation
            xs = dx * dilation
            patch = xp[:, ys:ys + stride * ho:stride,
                       xs:xs + stride * wo:stride, :]
            cols.append(patch)
    col = jnp.concatenate(cols, axis=-1)          # (N, Ho, Wo, kh*kw*C)
    return col.reshape(n * ho * wo, kh * kw * c), (n, ho, wo)


def conv2d(x, pk, *, kh=1, kw=1, stride=1, padding=0, dilation=1,
           relu=False, residual=None):
    """x: NHWC; pk: {'w': (kh*kw*Cin, Cout) bf16, 'b': (1, Cout) f32}.

    kh/kw/stride/padding/dilation are STATIC Python ints passed at call sites
    (kept out of the traced param pytree).  Optional `residual` (NHWC, same
    shape as the conv output) is added inside the matmul epilogue."""
    n, h, w_, c = x.shape
    cout = pk['w'].shape[1]
    xb = x.astype(jnp.bfloat16)
    if kh == 1 and kw == 1 and stride == 1 and padding == 0:
        xm = xb.reshape(n * h * w_, c)
        ho, wo = h, w_
    else:
        xm, (n, ho, wo) = _im2col(xb, kh, kw, stride, padding, dilation)
    res = None
    if residual is not None:
        res = residual.reshape(n * ho * wo, cout)
    out = pallas_matmul_bias(xm, pk['w'], pk['b'], relu=relu, residual=res)
    return out.reshape(n, ho, wo, cout)


# ----------------------------------------------------------------------------
# Parameters (deterministic synthetic init; BN folded at pack time)
# ----------------------------------------------------------------------------
def _bn_params(c, eps=1e-5):
    # Fresh PyTorch BatchNorm2d init, eval-mode stats.
    return dict(gamma=jnp.ones((c,), jnp.float32),
                beta=jnp.zeros((c,), jnp.float32),
                mean=jnp.zeros((c,), jnp.float32),
                var=jnp.ones((c,), jnp.float32),
                eps=eps)


def _pack_conv(key, cout, cin, kh, kw, bn=None):
    k1, k2 = jax.random.split(key)
    w = jax.random.normal(k1, (cout, cin, kh, kw), jnp.float32) * 0.05
    b = jax.random.normal(k2, (cout,), jnp.float32) * 0.01
    if bn is not None:
        s = bn['gamma'] / jnp.sqrt(bn['var'] + bn['eps'])
        b = (b - bn['mean']) * s + bn['beta']
        w = w * s[:, None, None, None]
    # (Cout, Cin, kh, kw) -> (kh*kw*Cin, Cout), matching im2col column order.
    wm = jnp.transpose(w, (2, 3, 1, 0)).reshape(kh * kw * cin, cout)
    # Arrays ONLY (static conv geometry is supplied at the call sites).
    return dict(w=wm.astype(jnp.bfloat16),
                b=b.reshape(1, cout).astype(jnp.float32))


def init_params(key):
    p = {}
    cnt = [0]

    def nxt():
        cnt[0] += 1
        return jax.random.fold_in(key, cnt[0])

    # Synthetic MixNet encoder (see TODO at top of file).
    enc_defs = [(32, 3), (56, 32), (56, 56), (160, 56), (264, 160)]
    p['enc'] = [_pack_conv(nxt(), co, ci, 3, 3) for co, ci in enc_defs]

    # ASPP(264, [6, 12, 18], out_channels=64) -- BN folded into each conv.
    p['aspp_b0'] = _pack_conv(nxt(), 64, 264, 1, 1, bn=_bn_params(64))
    p['aspp_b1'] = _pack_conv(nxt(), 64, 264, 3, 3, bn=_bn_params(64))
    p['aspp_b2'] = _pack_conv(nxt(), 64, 264, 3, 3, bn=_bn_params(64))
    p['aspp_b3'] = _pack_conv(nxt(), 64, 264, 3, 3, bn=_bn_params(64))
    p['aspp_pool'] = _pack_conv(nxt(), 64, 264, 1, 1, bn=_bn_params(64))
    proj = _pack_conv(nxt(), 64, 320, 1, 1, bn=_bn_params(64))

    # Fused ASPP branch weight: when the H/32 map is smaller than the smallest
    # dilation, every off-center tap of the dilated 3x3 branches reads zero
    # padding, so each branch equals its center-tap 1x1 conv.  Concatenate
    # b0 + center taps of b1/b2/b3 into ONE (264, 256) weight -> one
    # pallas_call with a lane-dense N=256 output.
    cin = 264
    centers = [p['aspp_b%d' % i]['w'][4 * cin:5 * cin] for i in (1, 2, 3)]
    p['aspp_fused'] = dict(
        w=jnp.concatenate([p['aspp_b0']['w']] + centers, axis=1),
        b=jnp.concatenate([p['aspp_b0']['b'], p['aspp_b1']['b'],
                           p['aspp_b2']['b'], p['aspp_b3']['b']], axis=1))

    # ASPP projection split: rows 0:256 act on the branch concat, rows 256:320
    # act on the spatially constant pooled branch (folded into a per-batch
    # residual, removing the broadcast + 320-channel concat).
    p['aspp_proj_head'] = dict(w=proj['w'][:256], b=proj['b'])
    p['aspp_proj_tail'] = dict(w=proj['w'][256:])

    # CARAFE_upsampling(64, 64) approximation (shared weights, used twice).
    p['carafe'] = _pack_conv(nxt(), 64, 64, 3, 3)

    # Decoder convs (conv1 / conv5 exist in __init__ but are unused in forward).
    # conv2 + final BatchNorm2d(64) folded together (ReLU fused in epilogue).
    p['conv2_bn'] = _pack_conv(nxt(), 64, 64, 1, 1, bn=_bn_params(64))
    p['conv3'] = _pack_conv(nxt(), 64, 56, 1, 1)
    p['conv4'] = _pack_conv(nxt(), 64, 160, 1, 1)
    return p


# ----------------------------------------------------------------------------
# Submodules
# ----------------------------------------------------------------------------
def encoder_mixnet(p, x):
    # x: NHWC
    feats = {}
    h = x
    for i, pk in enumerate(p['enc']):
        h = conv2d(h, pk, kh=3, kw=3, stride=2, padding=1, relu=True)
        if i == 2:
            feats['one_8'] = h     # (N, H/8,  W/8,  56)
        elif i == 3:
            feats['one_16'] = h    # (N, H/16, W/16, 160)
        elif i == 4:
            feats['one_32'] = h    # (N, H/32, W/32, 264)
    return feats


def aspp(p, x):
    n, h, w, _ = x.shape
    if h <= min(ASPP_DILATIONS) and w <= min(ASPP_DILATIONS):
        # Exact at this spatial size: one fused 264->256 1x1 conv replaces the
        # four branch convs (single launch, K drops 2376 -> 264 per branch).
        cat = conv2d(x, p['aspp_fused'], relu=True)
    else:
        b0 = conv2d(x, p['aspp_b0'], relu=True)
        b1 = conv2d(x, p['aspp_b1'], kh=3, kw=3, padding=6, dilation=6,
                    relu=True)
        b2 = conv2d(x, p['aspp_b2'], kh=3, kw=3, padding=12, dilation=12,
                    relu=True)
        b3 = conv2d(x, p['aspp_b3'], kh=3, kw=3, padding=18, dilation=18,
                    relu=True)
        cat = jnp.concatenate([b0, b1, b2, b3], axis=-1)

    # Pooled branch: spatially constant, so its contribution through the
    # projection is a per-batch additive term -> folded into the projection's
    # fused residual (tiny (N,264)x(264,64) math kept in plain jnp to avoid
    # two extra kernel launches).
    pooled = jnp.mean(x.astype(jnp.float32), axis=(1, 2))            # (N, 264)
    bp = jnp.dot(pooled.astype(jnp.bfloat16), p['aspp_pool']['w'],
                 preferred_element_type=jnp.float32) + p['aspp_pool']['b']
    bp = jnp.maximum(bp, 0.0)                                        # (N, 64)
    pool_term = jnp.dot(bp.astype(jnp.bfloat16), p['aspp_proj_tail']['w'],
                        preferred_element_type=jnp.float32)          # (N, 64)
    res = jnp.broadcast_to(pool_term[:, None, None, :],
                           (n, h, w, pool_term.shape[-1])).astype(jnp.bfloat16)
    # Dropout(0.5) in eval mode == identity.
    return conv2d(cat, p['aspp_proj_head'], relu=True, residual=res)


def carafe_up(p, x, residual=None):
    # TODO(synk): content-aware reassembly replaced by nearest-2x + 3x3 conv;
    #             the skip-connection add is fused into the conv epilogue.
    up = jnp.repeat(jnp.repeat(x, 2, axis=1), 2, axis=2)
    return conv2d(up, p['carafe'], kh=3, kw=3, padding=1, residual=residual)


# ----------------------------------------------------------------------------
# EncoderDecoder forward
# ----------------------------------------------------------------------------
def encoder_decoder_forward(p, x_nchw):
    x = jnp.transpose(x_nchw, (0, 2, 3, 1))        # NCHW -> NHWC
    dic = encoder_mixnet(p, x)

    counting_map = dic['one_8']
    one_8 = conv2d(counting_map, p['conv3'])       # 56 -> 64, 1x1
    one_16 = conv2d(dic['one_16'], p['conv4'])     # 160 -> 64, 1x1
    one_32 = dic['one_32']

    output = aspp(p, one_32)
    # TF.resize to one_16 / one_8 spatial sizes: identity here
    # (2x of H/32 == H/16, 2x of H/16 == H/8).  Skip adds are fused.
    output = carafe_up(p, output, residual=one_16)
    output = carafe_up(p, output, residual=one_8)
    # conv2 -> BN -> ReLU, with BN folded into conv2 and ReLU in the epilogue.
    output = conv2d(output, p['conv2_bn'], relu=True)

    return {
        'counting branch':
            jnp.transpose(one_8.astype(jnp.float32), (0, 3, 1, 2)),      # NCHW
        'segmentation branch':
            jnp.transpose(output.astype(jnp.float32), (0, 3, 1, 2)),     # NCHW
    }


if __name__ == "__main__":
    key = jax.random.PRNGKey(0)
    params = init_params(key)
    x = jax.random.normal(jax.random.fold_in(key, 9999),
                          (2, 3, 64, 64), jnp.float32)   # NCHW input

    fwd = jax.jit(encoder_decoder_forward)
    out = fwd(params, x)
    jax.block_until_ready(out)

    assert out['counting branch'].shape == (2, 64, 8, 8)
    assert out['segmentation branch'].shape == (2, 64, 8, 8)
    print("KERNEL_OK")
</pallas_src>

<mosaic_0001>
module attributes {stable_mosaic.version = 11 : i64} {
  func.func @_mm_kernel(%arg0: i32, %arg1: i32, %arg2: i32, %arg3: memref<512x27xbf16, #tpu.memory_space<vmem>>, %arg4: memref<27x32xbf16, #tpu.memory_space<vmem>>, %arg5: memref<1x32xf32, #tpu.memory_space<vmem>>, %arg6: memref<512x32xbf16, #tpu.memory_space<vmem>>) attributes {dimension_semantics = [#tpu.dimension_semantics<parallel>, #tpu.dimension_semantics<parallel>, #tpu.dimension_semantics<arbitrary>], iteration_bounds = array<i64: 4, 1, 1>, scalar_prefetch = 0 : i64, scratch_operands = 0 : i64, tpu.core_type = #tpu.core_type<tc>, window_params = [{transform_indices = @transform_0, window_bounds = array<i64: 512, 27>}, {transform_indices = @transform_1, window_bounds = array<i64: 27, 32>}, {transform_indices = @transform_2, window_bounds = array<i64: 1, 32>}, {transform_indices = @transform_3, window_bounds = array<i64: 512, 32>}]} {
    %c0 = arith.constant 0 : index
    %c0_0 = arith.constant 0 : index
    %0 = vector.load %arg3[%c0, %c0_0] : memref<512x27xbf16, #tpu.memory_space<vmem>>, vector<512x27xbf16>
    %c0_1 = arith.constant 0 : index
    %c0_2 = arith.constant 0 : index
    %1 = vector.load %arg4[%c0_1, %c0_2] : memref<27x32xbf16, #tpu.memory_space<vmem>>, vector<27x32xbf16>
    %cst = arith.constant dense<0.000000e+00> : vector<512x32xf32>
    %2 = tpu.matmul %0, %1, %cst {dimension_numbers = #tpu.dot_dimension_numbers<[1], [0], [0], [1], [0, 0, 1, 1], [], []>} : vector<512x27xbf16>, vector<27x32xbf16>, vector<512x32xf32> -> vector<512x32xf32>
    %c0_3 = arith.constant 0 : index
    %c0_4 = arith.constant 0 : index
    %3 = vector.load %arg5[%c0_3, %c0_4] : memref<1x32xf32, #tpu.memory_space<vmem>>, vector<1x32xf32>
    %4 = vector.broadcast %3 : vector<1x32xf32> to vector<512x32xf32>
    %5 = arith.addf %2, %4 : vector<512x32xf32>
    %cst_5 = arith.constant 0.000000e+00 : f32
    %6 = vector.broadcast %cst_5 : f32 to vector<512x32xf32>
    %7 = arith.maximumf %5, %6 : vector<512x32xf32>
    %8 = arith.truncf %7 : vector<512x32xf32> to vector<512x32xbf16>
    %c0_6 = arith.constant 0 : index
    %c0_7 = arith.constant 0 : index
    %9 = vector.load %arg6[%c0_6, %c0_7] : memref<512x32xbf16, #tpu.memory_space<vmem>>, vector<512x32xbf16>
    tpu.vector_store %arg6[%c0_6, %c0_7], %8 {strides = array<i32>} : memref<512x32xbf16, #tpu.memory_space<vmem>>, vector<512x32xbf16>,
    return
  }
  func.func @transform_0(%arg0: i32, %arg1: i32, %arg2: i32) -> (i32, i32) {
    %c0_i32 = arith.constant 0 : i32
    return %arg0, %arg2 : i32, i32
  }
  func.func @transform_1(%arg0: i32, %arg1: i32, %arg2: i32) -> (i32, i32) {
    %c0_i32 = arith.constant 0 : i32
    return %arg2, %arg1 : i32, i32
  }
  func.func @transform_2(%arg0: i32, %arg1: i32, %arg2: i32) -> (i32, i32) {
    %c0_i32 = arith.constant 0 : i32
    %c0_i32_0 = arith.constant 0 : i32
    return %c0_i32, %arg1 : i32, i32
  }
  func.func @transform_3(%arg0: i32, %arg1: i32, %arg2: i32) -> (i32, i32) {
    %c0_i32 = arith.constant 0 : i32
    return %arg0, %arg1 : i32, i32
  }
}

module attributes {stable_mosaic.version = 11 : i64} {
  func.func @_mm_kernel(%arg0: i32, %arg1: i32, %arg2: i32, %arg3: memref<256x288xbf16, #tpu.memory_space<vmem>>, %arg4: memref<288x56xbf16, #tpu.memory_space<vmem>>, %arg5: memref<1x56xf32, #tpu.memory_space<vmem>>, %arg6: memref<256x56xbf16, #tpu.memory_space<vmem>>) attributes {dimension_semantics = [#tpu.dimension_semantics<parallel>, #tpu.dimension_semantics<parallel>, #tpu.dimension_semantics<arbitrary>], iteration_bounds = array<i64: 2, 1, 1>, scalar_prefetch = 0 : i64, scratch_operands = 0 : i64, tpu.core_type = #tpu.core_type<tc>, window_params = [{transform_indices = @transform_0, window_bounds = array<i64: 256, 288>}, {transform_indices = @transform_1, window_bounds = array<i64: 288, 56>}, {transform_indices = @transform_2, window_bounds = array<i64: 1, 56>}, {transform_indices = @transform_3, window_bounds = array<i64: 256, 56>}]} {
    %c0 = arith.constant 0 : index
    %c0_0 = arith.constant 0 : index
    %0 = vector.load %arg3[%c0, %c0_0] : memref<256x288xbf16, #tpu.memory_space<vmem>>, vector<256x288xbf16>
    %c0_1 = arith.constant 0 : index
    %c0_2 = arith.constant 0 : index
    %1 = vector.load %arg4[%c0_1, %c0_2] : memref<288x56xbf16, #tpu.memory_space<vmem>>, vector<288x56xbf16>
    %cst = arith.constant dense<0.000000e+00> : vector<256x56xf32>
    %2 = tpu.matmul %0, %1, %cst {dimension_numbers = #tpu.dot_dimension_numbers<[1], [0], [0], [1], [0, 0, 1, 1], [], []>} : vector<256x288xbf16>, vector<288x56xbf16>, vector<256x56xf32> -> vector<256x56xf32>
    %c0_3 = arith.constant 0 : index
    %c0_4 = arith.constant 0 : index
    %3 = vector.load %arg5[%c0_3, %c0_4] : memref<1x56xf32, #tpu.memory_space<vmem>>, vector<1x56xf32>
    %4 = vector.broadcast %3 : vector<1x56xf32> to vector<256x56xf32>
    %5 = arith.addf %2, %4 : vector<256x56xf32>
    %cst_5 = arith.constant 0.000000e+00 : f32
    %6 = vector.broadcast %cst_5 : f32 to vector<256x56xf32>
    %7 = arith.maximumf %5, %6 : vector<256x56xf32>
    %8 = arith.truncf %7 : vector<256x56xf32> to vector<256x56xbf16>
    %c0_6 = arith.constant 0 : index
    %c0_7 = arith.constant 0 : index
    %9 = vector.load %arg6[%c0_6, %c0_7] : memref<256x56xbf16, #tpu.memory_space<vmem>>, vector<256x56xbf16>
    tpu.vector_store %arg6[%c0_6, %c0_7], %8 {strides = array<i32>} : memref<256x56xbf16, #tpu.memory_space<vmem>>, vector<256x56xbf16>,
    return
  }
  func.func @transform_0(%arg0: i32, %arg1: i32, %arg2: i32) -> (i32, i32) {
    %c0_i32 = arith.constant 0 : i32
    return %arg0, %arg2 : i32, i32
  }
  func.func @transform_1(%arg0: i32, %arg1: i32, %arg2: i32) -> (i32, i32) {
    %c0_i32 = arith.constant 0 : i32
    return %arg2, %arg1 : i32, i32
  }
  func.func @transform_2(%arg0: i32, %arg1: i32, %arg2: i32) -> (i32, i32) {
    %c0_i32 = arith.constant 0 : i32
    %c0_i32_0 = arith.constant 0 : i32
    return %c0_i32, %arg1 : i32, i32
  }
  func.func @transform_3(%arg0: i32, %arg1: i32, %arg2: i32) -> (i32, i32) {
    %c0_i32 = arith.constant 0 : i32
    return %arg0, %arg1 : i32, i32
  }
}

module attributes {stable_mosaic.version = 11 : i64} {
  func.func @_mm_kernel(%arg0: i32, %arg1: i32, %arg2: i32, %arg3: memref<64x504xbf16, #tpu.memory_space<vmem>>, %arg4: memref<504x56xbf16, #tpu.memory_space<vmem>>, %arg5: memref<1x56xf32, #tpu.memory_space<vmem>>, %arg6: memref<64x56xbf16, #tpu.memory_space<vmem>>) attributes {dimension_semantics = [#tpu.dimension_semantics<parallel>, #tpu.dimension_semantics<parallel>, #tpu.dimension_semantics<arbitrary>], iteration_bounds = array<i64: 2, 1, 1>, scalar_prefetch = 0 : i64, scratch_operands = 0 : i64, tpu.core_type = #tpu.core_type<tc>, window_params = [{transform_indices = @transform_0, window_bounds = array<i64: 64, 504>}, {transform_indices = @transform_1, window_bounds = array<i64: 504, 56>}, {transform_indices = @transform_2, window_bounds = array<i64: 1, 56>}, {transform_indices = @transform_3, window_bounds = array<i64: 64, 56>}]} {
    %c0 = arith.constant 0 : index
    %c0_0 = arith.constant 0 : index
    %0 = vector.load %arg3[%c0, %c0_0] : memref<64x504xbf16, #tpu.memory_space<vmem>>, vector<64x504xbf16>
    %c0_1 = arith.constant 0 : index
    %c0_2 = arith.constant 0 : index
    %1 = vector.load %arg4[%c0_1, %c0_2] : memref<504x56xbf16, #tpu.memory_space<vmem>>, vector<504x56xbf16>
    %cst = arith.constant dense<0.000000e+00> : vector<64x56xf32>
    %2 = tpu.matmul %0, %1, %cst {dimension_numbers = #tpu.dot_dimension_numbers<[1], [0], [0], [1], [0, 0, 1, 1], [], []>} : vector<64x504xbf16>, vector<504x56xbf16>, vector<64x56xf32> -> vector<64x56xf32>
    %c0_3 = arith.constant 0 : index
    %c0_4 = arith.constant 0 : index
    %3 = vector.load %arg5[%c0_3, %c0_4] : memref<1x56xf32, #tpu.memory_space<vmem>>, vector<1x56xf32>
    %4 = vector.broadcast %3 : vector<1x56xf32> to vector<64x56xf32>
    %5 = arith.addf %2, %4 : vector<64x56xf32>
    %cst_5 = arith.constant 0.000000e+00 : f32
    %6 = vector.broadcast %cst_5 : f32 to vector<64x56xf32>
    %7 = arith.maximumf %5, %6 : vector<64x56xf32>
    %8 = arith.truncf %7 : vector<64x56xf32> to vector<64x56xbf16>
    %c0_6 = arith.constant 0 : index
    %c0_7 = arith.constant 0 : index
    %9 = vector.load %arg6[%c0_6, %c0_7] : memref<64x56xbf16, #tpu.memory_space<vmem>>, vector<64x56xbf16>
    tpu.vector_store %arg6[%c0_6, %c0_7], %8 {strides = array<i32>} : memref<64x56xbf16, #tpu.memory_space<vmem>>, vector<64x56xbf16>,
    return
  }
  func.func @transform_0(%arg0: i32, %arg1: i32, %arg2: i32) -> (i32, i32) {
    %c0_i32 = arith.constant 0 : i32
    return %arg0, %arg2 : i32, i32
  }
  func.func @transform_1(%arg0: i32, %arg1: i32, %arg2: i32) -> (i32, i32) {
    %c0_i32 = arith.constant 0 : i32
    return %arg2, %arg1 : i32, i32
  }
  func.func @transform_2(%arg0: i32, %arg1: i32, %arg2: i32) -> (i32, i32) {
    %c0_i32 = arith.constant 0 : i32
    %c0_i32_0 = arith.constant 0 : i32
    return %c0_i32, %arg1 : i32, i32
  }
  func.func @transform_3(%arg0: i32, %arg1: i32, %arg2: i32) -> (i32, i32) {
    %c0_i32 = arith.constant 0 : i32
    return %arg0, %arg1 : i32, i32
  }
}

module attributes {stable_mosaic.version = 11 : i64} {
  func.func @_mm_kernel(%arg0: i32, %arg1: i32, %arg2: i32, %arg3: memref<16x504xbf16, #tpu.memory_space<vmem>>, %arg4: memref<504x160xbf16, #tpu.memory_space<vmem>>, %arg5: memref<1x160xf32, #tpu.memory_space<vmem>>, %arg6: memref<16x160xbf16, #tpu.memory_space<vmem>>) attributes {dimension_semantics = [#tpu.dimension_semantics<parallel>, #tpu.dimension_semantics<parallel>, #tpu.dimension_semantics<arbitrary>], iteration_bounds = array<i64: 2, 1, 1>, scalar_prefetch = 0 : i64, scratch_operands = 0 : i64, tpu.core_type = #tpu.core_type<tc>, window_params = [{transform_indices = @transform_0, window_bounds = array<i64: 16, 504>}, {transform_indices = @transform_1, window_bounds = array<i64: 504, 160>}, {transform_indices = @transform_2, window_bounds = array<i64: 1, 160>}, {transform_indices = @transform_3, window_bounds = array<i64: 16, 160>}]} {
    %c0 = arith.constant 0 : index
    %c0_0 = arith.constant 0 : index
    %0 = vector.load %arg3[%c0, %c0_0] : memref<16x504xbf16, #tpu.memory_space<vmem>>, vector<16x504xbf16>
    %c0_1 = arith.constant 0 : index
    %c0_2 = arith.constant 0 : index
    %1 = vector.load %arg4[%c0_1, %c0_2] : memref<504x160xbf16, #tpu.memory_space<vmem>>, vector<504x160xbf16>
    %cst = arith.constant dense<0.000000e+00> : vector<16x160xf32>
    %2 = tpu.matmul %0, %1, %cst {dimension_numbers = #tpu.dot_dimension_numbers<[1], [0], [0], [1], [0, 0, 1, 1], [], []>} : vector<16x504xbf16>, vector<504x160xbf16>, vector<16x160xf32> -> vector<16x160xf32>
    %c0_3 = arith.constant 0 : index
    %c0_4 = arith.constant 0 : index
    %3 = vector.load %arg5[%c0_3, %c0_4] : memref<1x160xf32, #tpu.memory_space<vmem>>, vector<1x160xf32>
    %4 = vector.broadcast %3 : vector<1x160xf32> to vector<16x160xf32>
    %5 = arith.addf %2, %4 : vector<16x160xf32>
    %cst_5 = arith.constant 0.000000e+00 : f32
    %6 = vector.broadcast %cst_5 : f32 to vector<16x160xf32>
    %7 = arith.maximumf %5, %6 : vector<16x160xf32>
    %8 = arith.truncf %7 : vector<16x160xf32> to vector<16x160xbf16>
    %c0_6 = arith.constant 0 : index
    %c0_7 = arith.constant 0 : index
    %9 = vector.load %arg6[%c0_6, %c0_7] : memref<16x160xbf16, #tpu.memory_space<vmem>>, vector<16x160xbf16>
    tpu.vector_store %arg6[%c0_6, %c0_7], %8 {strides = array<i32>} : memref<16x160xbf16, #tpu.memory_space<vmem>>, vector<16x160xbf16>,
    return
  }
  func.func @transform_0(%arg0: i32, %arg1: i32, %arg2: i32) -> (i32, i32) {
    %c0_i32 = arith.constant 0 : i32
    return %arg0, %arg2 : i32, i32
  }
  func.func @transform_1(%arg0: i32, %arg1: i32, %arg2: i32) -> (i32, i32) {
    %c0_i32 = arith.constant 0 : i32
    return %arg2, %arg1 : i32, i32
  }
  func.func @transform_2(%arg0: i32, %arg1: i32, %arg2: i32) -> (i32, i32) {
    %c0_i32 = arith.constant 0 : i32
    %c0_i32_0 = arith.constant 0 : i32
    return %c0_i32, %arg1 : i32, i32
  }
  func.func @transform_3(%arg0: i32, %arg1: i32, %arg2: i32) -> (i32, i32) {
    %c0_i32 = arith.constant 0 : i32
    return %arg0, %arg1 : i32, i32
  }
}

module attributes {stable_mosaic.version = 11 : i64} {
  func.func @_mm_kernel(%arg0: i32, %arg1: i32, %arg2: i32, %arg3: memref<8x1440xbf16, #tpu.memory_space<vmem>>, %arg4: memref<1440x264xbf16, #tpu.memory_space<vmem>>, %arg5: memref<1x264xf32, #tpu.memory_space<vmem>>, %arg6: memref<8x264xbf16, #tpu.memory_space<vmem>>) attributes {dimension_semantics = [#tpu.dimension_semantics<parallel>, #tpu.dimension_semantics<parallel>, #tpu.dimension_semantics<arbitrary>], iteration_bounds = array<i64: 1, 1, 1>, scalar_prefetch = 0 : i64, scratch_operands = 0 : i64, tpu.core_type = #tpu.core_type<tc>, window_params = [{transform_indices = @transform_0, window_bounds = array<i64: 8, 1440>}, {transform_indices = @transform_1, window_bounds = array<i64: 1440, 264>}, {transform_indices = @transform_2, window_bounds = array<i64: 1, 264>}, {transform_indices = @transform_3, window_bounds = array<i64: 8, 264>}]} {
    %c0 = arith.constant 0 : index
    %c0_0 = arith.constant 0 : index
    %0 = vector.load %arg3[%c0, %c0_0] : memref<8x1440xbf16, #tpu.memory_space<vmem>>, vector<8x1440xbf16>
    %c0_1 = arith.constant 0 : index
    %c0_2 = arith.constant 0 : index
    %1 = vector.load %arg4[%c0_1, %c0_2] : memref<1440x264xbf16, #tpu.memory_space<vmem>>, vector<1440x264xbf16>
    %cst = arith.constant dense<0.000000e+00> : vector<8x264xf32>
    %2 = tpu.matmul %0, %1, %cst {dimension_numbers = #tpu.dot_dimension_numbers<[1], [0], [0], [1], [0, 0, 1, 1], [], []>} : vector<8x1440xbf16>, vector<1440x264xbf16>, vector<8x264xf32> -> vector<8x264xf32>
    %c0_3 = arith.constant 0 : index
    %c0_4 = arith.constant 0 : index
    %3 = vector.load %arg5[%c0_3, %c0_4] : memref<1x264xf32, #tpu.memory_space<vmem>>, vector<1x264xf32>
    %4 = vector.broadcast %3 : vector<1x264xf32> to vector<8x264xf32>
    %5 = arith.addf %2, %4 : vector<8x264xf32>
    %cst_5 = arith.constant 0.000000e+00 : f32
    %6 = vector.broadcast %cst_5 : f32 to vector<8x264xf32>
    %7 = arith.maximumf %5, %6 : vector<8x264xf32>
    %8 = arith.truncf %7 : vector<8x264xf32> to vector<8x264xbf16>
    %c0_6 = arith.constant 0 : index
    %c0_7 = arith.constant 0 : index
    %9 = vector.load %arg6[%c0_6, %c0_7] : memref<8x264xbf16, #tpu.memory_space<vmem>>, vector<8x264xbf16>
    tpu.vector_store %arg6[%c0_6, %c0_7], %8 {strides = array<i32>} : memref<8x264xbf16, #tpu.memory_space<vmem>>, vector<8x264xbf16>,
    return
  }
  func.func @transform_0(%arg0: i32, %arg1: i32, %arg2: i32) -> (i32, i32) {
    %c0_i32 = arith.constant 0 : i32
    return %arg0, %arg2 : i32, i32
  }
  func.func @transform_1(%arg0: i32, %arg1: i32, %arg2: i32) -> (i32, i32) {
    %c0_i32 = arith.constant 0 : i32
    return %arg2, %arg1 : i32, i32
  }
  func.func @transform_2(%arg0: i32, %arg1: i32, %arg2: i32) -> (i32, i32) {
    %c0_i32 = arith.constant 0 : i32
    %c0_i32_0 = arith.constant 0 : i32
    return %c0_i32, %arg1 : i32, i32
  }
  func.func @transform_3(%arg0: i32, %arg1: i32, %arg2: i32) -> (i32, i32) {
    %c0_i32 = arith.constant 0 : i32
    return %arg0, %arg1 : i32, i32
  }
}

module attributes {stable_mosaic.version = 11 : i64} {
  func.func @_mm_kernel(%arg0: i32, %arg1: i32, %arg2: i32, %arg3: memref<8x264xbf16, #tpu.memory_space<vmem>>, %arg4: memref<264x256xbf16, #tpu.memory_space<vmem>>, %arg5: memref<1x256xf32, #tpu.memory_space<vmem>>, %arg6: memref<8x256xbf16, #tpu.memory_space<vmem>>) attributes {dimension_semantics = [#tpu.dimension_semantics<parallel>, #tpu.dimension_semantics<parallel>, #tpu.dimension_semantics<arbitrary>], iteration_bounds = array<i64: 1, 1, 1>, scalar_prefetch = 0 : i64, scratch_operands = 0 : i64, tpu.core_type = #tpu.core_type<tc>, window_params = [{transform_indices = @transform_0, window_bounds = array<i64: 8, 264>}, {transform_indices = @transform_1, window_bounds = array<i64: 264, 256>}, {transform_indices = @transform_2, window_bounds = array<i64: 1, 256>}, {transform_indices = @transform_3, window_bounds = array<i64: 8, 256>}]} {
    %c0 = arith.constant 0 : index
    %c0_0 = arith.constant 0 : index
    %0 = vector.load %arg3[%c0, %c0_0] : memref<8x264xbf16, #tpu.memory_space<vmem>>, vector<8x264xbf16>
    %c0_1 = arith.constant 0 : index
    %c0_2 = arith.constant 0 : index
    %1 = vector.load %arg4[%c0_1, %c0_2] : memref<264x256xbf16, #tpu.memory_space<vmem>>, vector<264x256xbf16>
    %cst = arith.constant dense<0.000000e+00> : vector<8x256xf32>
    %2 = tpu.matmul %0, %1, %cst {dimension_numbers = #tpu.dot_dimension_numbers<[1], [0], [0], [1], [0, 0, 1, 1], [], []>} : vector<8x264xbf16>, vector<264x256xbf16>, vector<8x256xf32> -> vector<8x256xf32>
    %c0_3 = arith.constant 0 : index
    %c0_4 = arith.constant 0 : index
    %3 = vector.load %arg5[%c0_3, %c0_4] : memref<1x256xf32, #tpu.memory_space<vmem>>, vector<1x256xf32>
    %4 = vector.broadcast %3 : vector<1x256xf32> to vector<8x256xf32>
    %5 = arith.addf %2, %4 : vector<8x256xf32>
    %cst_5 = arith.constant 0.000000e+00 : f32
    %6 = vector.broadcast %cst_5 : f32 to vector<8x256xf32>
    %7 = arith.maximumf %5, %6 : vector<8x256xf32>
    %8 = arith.truncf %7 : vector<8x256xf32> to vector<8x256xbf16>
    %c0_6 = arith.constant 0 : index
    %c0_7 = arith.constant 0 : index
    %9 = vector.load %arg6[%c0_6, %c0_7] : memref<8x256xbf16, #tpu.memory_space<vmem>>, vector<8x256xbf16>
    tpu.vector_store %arg6[%c0_6, %c0_7], %8 {strides = array<i32>} : memref<8x256xbf16, #tpu.memory_space<vmem>>, vector<8x256xbf16>,
    return
  }
  func.func @transform_0(%arg0: i32, %arg1: i32, %arg2: i32) -> (i32, i32) {
    %c0_i32 = arith.constant 0 : i32
    return %arg0, %arg2 : i32, i32
  }
  func.func @transform_1(%arg0: i32, %arg1: i32, %arg2: i32) -> (i32, i32) {
    %c0_i32 = arith.constant 0 : i32
    return %arg2, %arg1 : i32, i32
  }
  func.func @transform_2(%arg0: i32, %arg1: i32, %arg2: i32) -> (i32, i32) {
    %c0_i32 = arith.constant 0 : i32
    %c0_i32_0 = arith.constant 0 : i32
    return %c0_i32, %arg1 : i32, i32
  }
  func.func @transform_3(%arg0: i32, %arg1: i32, %arg2: i32) -> (i32, i32) {
    %c0_i32 = arith.constant 0 : i32
    return %arg0, %arg1 : i32, i32
  }
}

module attributes {stable_mosaic.version = 11 : i64} {
  func.func @_mm_kernel(%arg0: i32, %arg1: i32, %arg2: i32, %arg3: memref<8x256xbf16, #tpu.memory_space<vmem>>, %arg4: memref<256x64xbf16, #tpu.memory_space<vmem>>, %arg5: memref<1x64xf32, #tpu.memory_space<vmem>>, %arg6: memref<8x64xbf16, #tpu.memory_space<vmem>>, %arg7: memref<8x64xbf16, #tpu.memory_space<vmem>>) attributes {dimension_semantics = [#tpu.dimension_semantics<parallel>, #tpu.dimension_semantics<parallel>, #tpu.dimension_semantics<arbitrary>], iteration_bounds = array<i64: 1, 1, 1>, scalar_prefetch = 0 : i64, scratch_operands = 0 : i64, tpu.core_type = #tpu.core_type<tc>, window_params = [{transform_indices = @transform_0, window_bounds = array<i64: 8, 256>}, {transform_indices = @transform_1, window_bounds = array<i64: 256, 64>}, {transform_indices = @transform_2, window_bounds = array<i64: 1, 64>}, {transform_indices = @transform_3, window_bounds = array<i64: 8, 64>}, {transform_indices = @transform_4, window_bounds = array<i64: 8, 64>}]} {
    %c0 = arith.constant 0 : index
    %c0_0 = arith.constant 0 : index
    %0 = vector.load %arg3[%c0, %c0_0] : memref<8x256xbf16, #tpu.memory_space<vmem>>, vector<8x256xbf16>
    %c0_1 = arith.constant 0 : index
    %c0_2 = arith.constant 0 : index
    %1 = vector.load %arg4[%c0_1, %c0_2] : memref<256x64xbf16, #tpu.memory_space<vmem>>, vector<256x64xbf16>
    %cst = arith.constant dense<0.000000e+00> : vector<8x64xf32>
    %2 = tpu.matmul %0, %1, %cst {dimension_numbers = #tpu.dot_dimension_numbers<[1], [0], [0], [1], [0, 0, 1, 1], [], []>} : vector<8x256xbf16>, vector<256x64xbf16>, vector<8x64xf32> -> vector<8x64xf32>
    %c0_3 = arith.constant 0 : index
    %c0_4 = arith.constant 0 : index
    %3 = vector.load %arg5[%c0_3, %c0_4] : memref<1x64xf32, #tpu.memory_space<vmem>>, vector<1x64xf32>
    %4 = vector.broadcast %3 : vector<1x64xf32> to vector<8x64xf32>
    %5 = arith.addf %2, %4 : vector<8x64xf32>
    %c0_5 = arith.constant 0 : index
    %c0_6 = arith.constant 0 : index
    %6 = vector.load %arg6[%c0_5, %c0_6] : memref<8x64xbf16, #tpu.memory_space<vmem>>, vector<8x64xbf16>
    %7 = arith.extf %6 : vector<8x64xbf16> to vector<8x64xf32>
    %8 = arith.addf %5, %7 : vector<8x64xf32>
    %cst_7 = arith.constant 0.000000e+00 : f32
    %9 = vector.broadcast %cst_7 : f32 to vector<8x64xf32>
    %10 = arith.maximumf %8, %9 : vector<8x64xf32>
    %11 = arith.truncf %10 : vector<8x64xf32> to vector<8x64xbf16>
    %c0_8 = arith.constant 0 : index
    %c0_9 = arith.constant 0 : index
    %12 = vector.load %arg7[%c0_8, %c0_9] : memref<8x64xbf16, #tpu.memory_space<vmem>>, vector<8x64xbf16>
    tpu.vector_store %arg7[%c0_8, %c0_9], %11 {strides = array<i32>} : memref<8x64xbf16, #tpu.memory_space<vmem>>, vector<8x64xbf16>,
    return
  }
  func.func @transform_0(%arg0: i32, %arg1: i32, %arg2: i32) -> (i32, i32) {
    %c0_i32 = arith.constant 0 : i32
    return %arg0, %arg2 : i32, i32
  }
  func.func @transform_1(%arg0: i32, %arg1: i32, %arg2: i32) -> (i32, i32) {
    %c0_i32 = arith.constant 0 : i32
    return %arg2, %arg1 : i32, i32
  }
  func.func @transform_2(%arg0: i32, %arg1: i32, %arg2: i32) -> (i32, i32) {
    %c0_i32 = arith.constant 0 : i32
    %c0_i32_0 = arith.constant 0 : i32
    return %c0_i32, %arg1 : i32, i32
  }
  func.func @transform_3(%arg0: i32, %arg1: i32, %arg2: i32) -> (i32, i32) {
    %c0_i32 = arith.constant 0 : i32
    return %arg0, %arg1 : i32, i32
  }
  func.func @transform_4(%arg0: i32, %arg1: i32, %arg2: i32) -> (i32, i32) {
    %c0_i32 = arith.constant 0 : i32
    return %arg0, %arg1 : i32, i32
  }
}

module attributes {stable_mosaic.version = 11 : i64} {
  func.func @_mm_kernel(%arg0: i32, %arg1: i32, %arg2: i32, %arg3: memref<16x576xbf16, #tpu.memory_space<vmem>>, %arg4: memref<576x64xbf16, #tpu.memory_space<vmem>>, %arg5: memref<1x64xf32, #tpu.memory_space<vmem>>, %arg6: memref<16x64xbf16, #tpu.memory_space<vmem>>, %arg7: memref<16x64xbf16, #tpu.memory_space<vmem>>) attributes {dimension_semantics = [#tpu.dimension_semantics<parallel>, #tpu.dimension_semantics<parallel>, #tpu.dimension_semantics<arbitrary>], iteration_bounds = array<i64: 2, 1, 1>, scalar_prefetch = 0 : i64, scratch_operands = 0 : i64, tpu.core_type = #tpu.core_type<tc>, window_params = [{transform_indices = @transform_0, window_bounds = array<i64: 16, 576>}, {transform_indices = @transform_1, window_bounds = array<i64: 576, 64>}, {transform_indices = @transform_2, window_bounds = array<i64: 1, 64>}, {transform_indices = @transform_3, window_bounds = array<i64: 16, 64>}, {transform_indices = @transform_4, window_bounds = array<i64: 16, 64>}]} {
    %c0 = arith.constant 0 : index
    %c0_0 = arith.constant 0 : index
    %0 = vector.load %arg3[%c0, %c0_0] : memref<16x576xbf16, #tpu.memory_space<vmem>>, vector<16x576xbf16>
    %c0_1 = arith.constant 0 : index
    %c0_2 = arith.constant 0 : index
    %1 = vector.load %arg4[%c0_1, %c0_2] : memref<576x64xbf16, #tpu.memory_space<vmem>>, vector<576x64xbf16>
    %cst = arith.constant dense<0.000000e+00> : vector<16x64xf32>
    %2 = tpu.matmul %0, %1, %cst {dimension_numbers = #tpu.dot_dimension_numbers<[1], [0], [0], [1], [0, 0, 1, 1], [], []>} : vector<16x576xbf16>, vector<576x64xbf16>, vector<16x64xf32> -> vector<16x64xf32>
    %c0_3 = arith.constant 0 : index
    %c0_4 = arith.constant 0 : index
    %3 = vector.load %arg5[%c0_3, %c0_4] : memref<1x64xf32, #tpu.memory_space<vmem>>, vector<1x64xf32>
    %4 = vector.broadcast %3 : vector<1x64xf32> to vector<16x64xf32>
    %5 = arith.addf %2, %4 : vector<16x64xf32>
    %c0_5 = arith.constant 0 : index
    %c0_6 = arith.constant 0 : index
    %6 = vector.load %arg6[%c0_5, %c0_6] : memref<16x64xbf16, #tpu.memory_space<vmem>>, vector<16x64xbf16>
    %7 = arith.extf %6 : vector<16x64xbf16> to vector<16x64xf32>
    %8 = arith.addf %5, %7 : vector<16x64xf32>
    %9 = arith.truncf %8 : vector<16x64xf32> to vector<16x64xbf16>
    %c0_7 = arith.constant 0 : index
    %c0_8 = arith.constant 0 : index
    %10 = vector.load %arg7[%c0_7, %c0_8] : memref<16x64xbf16, #tpu.memory_space<vmem>>, vector<16x64xbf16>
    tpu.vector_store %arg7[%c0_7, %c0_8], %9 {strides = array<i32>} : memref<16x64xbf16, #tpu.memory_space<vmem>>, vector<16x64xbf16>,
    return
  }
  func.func @transform_0(%arg0: i32, %arg1: i32, %arg2: i32) -> (i32, i32) {
    %c0_i32 = arith.constant 0 : i32
    return %arg0, %arg2 : i32, i32
  }
  func.func @transform_1(%arg0: i32, %arg1: i32, %arg2: i32) -> (i32, i32) {
    %c0_i32 = arith.constant 0 : i32
    return %arg2, %arg1 : i32, i32
  }
  func.func @transform_2(%arg0: i32, %arg1: i32, %arg2: i32) -> (i32, i32) {
    %c0_i32 = arith.constant 0 : i32
    %c0_i32_0 = arith.constant 0 : i32
    return %c0_i32, %arg1 : i32, i32
  }
  func.func @transform_3(%arg0: i32, %arg1: i32, %arg2: i32) -> (i32, i32) {
    %c0_i32 = arith.constant 0 : i32
    return %arg0, %arg1 : i32, i32
  }
  func.func @transform_4(%arg0: i32, %arg1: i32, %arg2: i32) -> (i32, i32) {
    %c0_i32 = arith.constant 0 : i32
    return %arg0, %arg1 : i32, i32
  }
}

module attributes {stable_mosaic.version = 11 : i64} {
  func.func @_mm_kernel(%arg0: i32, %arg1: i32, %arg2: i32, %arg3: memref<16x160xbf16, #tpu.memory_space<vmem>>, %arg4: memref<160x64xbf16, #tpu.memory_space<vmem>>, %arg5: memref<1x64xf32, #tpu.memory_space<vmem>>, %arg6: memref<16x64xbf16, #tpu.memory_space<vmem>>) attributes {dimension_semantics = [#tpu.dimension_semantics<parallel>, #tpu.dimension_semantics<parallel>, #tpu.dimension_semantics<arbitrary>], iteration_bounds = array<i64: 2, 1, 1>, scalar_prefetch = 0 : i64, scratch_operands = 0 : i64, tpu.core_type = #tpu.core_type<tc>, window_params = [{transform_indices = @transform_0, window_bounds = array<i64: 16, 160>}, {transform_indices = @transform_1, window_bounds = array<i64: 160, 64>}, {transform_indices = @transform_2, window_bounds = array<i64: 1, 64>}, {transform_indices = @transform_3, window_bounds = array<i64: 16, 64>}]} {
    %c0 = arith.constant 0 : index
    %c0_0 = arith.constant 0 : index
    %0 = vector.load %arg3[%c0, %c0_0] : memref<16x160xbf16, #tpu.memory_space<vmem>>, vector<16x160xbf16>
    %c0_1 = arith.constant 0 : index
    %c0_2 = arith.constant 0 : index
    %1 = vector.load %arg4[%c0_1, %c0_2] : memref<160x64xbf16, #tpu.memory_space<vmem>>, vector<160x64xbf16>
    %cst = arith.constant dense<0.000000e+00> : vector<16x64xf32>
    %2 = tpu.matmul %0, %1, %cst {dimension_numbers = #tpu.dot_dimension_numbers<[1], [0], [0], [1], [0, 0, 1, 1], [], []>} : vector<16x160xbf16>, vector<160x64xbf16>, vector<16x64xf32> -> vector<16x64xf32>
    %c0_3 = arith.constant 0 : index
    %c0_4 = arith.constant 0 : index
    %3 = vector.load %arg5[%c0_3, %c0_4] : memref<1x64xf32, #tpu.memory_space<vmem>>, vector<1x64xf32>
    %4 = vector.broadcast %3 : vector<1x64xf32> to vector<16x64xf32>
    %5 = arith.addf %2, %4 : vector<16x64xf32>
    %6 = arith.truncf %5 : vector<16x64xf32> to vector<16x64xbf16>
    %c0_5 = arith.constant 0 : index
    %c0_6 = arith.constant 0 : index
    %7 = vector.load %arg6[%c0_5, %c0_6] : memref<16x64xbf16, #tpu.memory_space<vmem>>, vector<16x64xbf16>
    tpu.vector_store %arg6[%c0_5, %c0_6], %6 {strides = array<i32>} : memref<16x64xbf16, #tpu.memory_space<vmem>>, vector<16x64xbf16>,
    return
  }
  func.func @transform_0(%arg0: i32, %arg1: i32, %arg2: i32) -> (i32, i32) {
    %c0_i32 = arith.constant 0 : i32
    return %arg0, %arg2 : i32, i32
  }
  func.func @transform_1(%arg0: i32, %arg1: i32, %arg2: i32) -> (i32, i32) {
    %c0_i32 = arith.constant 0 : i32
    return %arg2, %arg1 : i32, i32
  }
  func.func @transform_2(%arg0: i32, %arg1: i32, %arg2: i32) -> (i32, i32) {
    %c0_i32 = arith.constant 0 : i32
    %c0_i32_0 = arith.constant 0 : i32
    return %c0_i32, %arg1 : i32, i32
  }
  func.func @transform_3(%arg0: i32, %arg1: i32, %arg2: i32) -> (i32, i32) {
    %c0_i32 = arith.constant 0 : i32
    return %arg0, %arg1 : i32, i32
  }
}

module attributes {stable_mosaic.version = 11 : i64} {
  func.func @_mm_kernel(%arg0: i32, %arg1: i32, %arg2: i32, %arg3: memref<64x56xbf16, #tpu.memory_space<vmem>>, %arg4: memref<56x64xbf16, #tpu.memory_space<vmem>>, %arg5: memref<1x64xf32, #tpu.memory_space<vmem>>, %arg6: memref<64x64xbf16, #tpu.memory_space<vmem>>) attributes {dimension_semantics = [#tpu.dimension_semantics<parallel>, #tpu.dimension_semantics<parallel>, #tpu.dimension_semantics<arbitrary>], iteration_bounds = array<i64: 2, 1, 1>, scalar_prefetch = 0 : i64, scratch_operands = 0 : i64, tpu.core_type = #tpu.core_type<tc>, window_params = [{transform_indices = @transform_0, window_bounds = array<i64: 64, 56>}, {transform_indices = @transform_1, window_bounds = array<i64: 56, 64>}, {transform_indices = @transform_2, window_bounds = array<i64: 1, 64>}, {transform_indices = @transform_3, window_bounds = array<i64: 64, 64>}]} {
    %c0 = arith.constant 0 : index
    %c0_0 = arith.constant 0 : index
    %0 = vector.load %arg3[%c0, %c0_0] : memref<64x56xbf16, #tpu.memory_space<vmem>>, vector<64x56xbf16>
    %c0_1 = arith.constant 0 : index
    %c0_2 = arith.constant 0 : index
    %1 = vector.load %arg4[%c0_1, %c0_2] : memref<56x64xbf16, #tpu.memory_space<vmem>>, vector<56x64xbf16>
    %cst = arith.constant dense<0.000000e+00> : vector<64x64xf32>
    %2 = tpu.matmul %0, %1, %cst {dimension_numbers = #tpu.dot_dimension_numbers<[1], [0], [0], [1], [0, 0, 1, 1], [], []>} : vector<64x56xbf16>, vector<56x64xbf16>, vector<64x64xf32> -> vector<64x64xf32>
    %c0_3 = arith.constant 0 : index
    %c0_4 = arith.constant 0 : index
    %3 = vector.load %arg5[%c0_3, %c0_4] : memref<1x64xf32, #tpu.memory_space<vmem>>, vector<1x64xf32>
    %4 = vector.broadcast %3 : vector<1x64xf32> to vector<64x64xf32>
    %5 = arith.addf %2, %4 : vector<64x64xf32>
    %6 = arith.truncf %5 : vector<64x64xf32> to vector<64x64xbf16>
    %c0_5 = arith.constant 0 : index
    %c0_6 = arith.constant 0 : index
    %7 = vector.load %arg6[%c0_5, %c0_6] : memref<64x64xbf16, #tpu.memory_space<vmem>>, vector<64x64xbf16>
    tpu.vector_store %arg6[%c0_5, %c0_6], %6 {strides = array<i32>} : memref<64x64xbf16, #tpu.memory_space<vmem>>, vector<64x64xbf16>,
    return
  }
  func.func @transform_0(%arg0: i32, %arg1: i32, %arg2: i32) -> (i32, i32) {
    %c0_i32 = arith.constant 0 : i32
    return %arg0, %arg2 : i32, i32
  }
  func.func @transform_1(%arg0: i32, %arg1: i32, %arg2: i32) -> (i32, i32) {
    %c0_i32 = arith.constant 0 : i32
    return %arg2, %arg1 : i32, i32
  }
  func.func @transform_2(%arg0: i32, %arg1: i32, %arg2: i32) -> (i32, i32) {
    %c0_i32 = arith.constant 0 : i32
    %c0_i32_0 = arith.constant 0 : i32
    return %c0_i32, %arg1 : i32, i32
  }
  func.func @transform_3(%arg0: i32, %arg1: i32, %arg2: i32) -> (i32, i32) {
    %c0_i32 = arith.constant 0 : i32
    return %arg0, %arg1 : i32, i32
  }
}

module attributes {stable_mosaic.version = 11 : i64} {
  func.func @_mm_kernel(%arg0: i32, %arg1: i32, %arg2: i32, %arg3: memref<64x576xbf16, #tpu.memory_space<vmem>>, %arg4: memref<576x64xbf16, #tpu.memory_space<vmem>>, %arg5: memref<1x64xf32, #tpu.memory_space<vmem>>, %arg6: memref<64x64xbf16, #tpu.memory_space<vmem>>, %arg7: memref<64x64xbf16, #tpu.memory_space<vmem>>) attributes {dimension_semantics = [#tpu.dimension_semantics<parallel>, #tpu.dimension_semantics<parallel>, #tpu.dimension_semantics<arbitrary>], iteration_bounds = array<i64: 2, 1, 1>, scalar_prefetch = 0 : i64, scratch_operands = 0 : i64, tpu.core_type = #tpu.core_type<tc>, window_params = [{transform_indices = @transform_0, window_bounds = array<i64: 64, 576>}, {transform_indices = @transform_1, window_bounds = array<i64: 576, 64>}, {transform_indices = @transform_2, window_bounds = array<i64: 1, 64>}, {transform_indices = @transform_3, window_bounds = array<i64: 64, 64>}, {transform_indices = @transform_4, window_bounds = array<i64: 64, 64>}]} {
    %c0 = arith.constant 0 : index
    %c0_0 = arith.constant 0 : index
    %0 = vector.load %arg3[%c0, %c0_0] : memref<64x576xbf16, #tpu.memory_space<vmem>>, vector<64x576xbf16>
    %c0_1 = arith.constant 0 : index
    %c0_2 = arith.constant 0 : index
    %1 = vector.load %arg4[%c0_1, %c0_2] : memref<576x64xbf16, #tpu.memory_space<vmem>>, vector<576x64xbf16>
    %cst = arith.constant dense<0.000000e+00> : vector<64x64xf32>
    %2 = tpu.matmul %0, %1, %cst {dimension_numbers = #tpu.dot_dimension_numbers<[1], [0], [0], [1], [0, 0, 1, 1], [], []>} : vector<64x576xbf16>, vector<576x64xbf16>, vector<64x64xf32> -> vector<64x64xf32>
    %c0_3 = arith.constant 0 : index
    %c0_4 = arith.constant 0 : index
    %3 = vector.load %arg5[%c0_3, %c0_4] : memref<1x64xf32, #tpu.memory_space<vmem>>, vector<1x64xf32>
    %4 = vector.broadcast %3 : vector<1x64xf32> to vector<64x64xf32>
    %5 = arith.addf %2, %4 : vector<64x64xf32>
    %c0_5 = arith.constant 0 : index
    %c0_6 = arith.constant 0 : index
    %6 = vector.load %arg6[%c0_5, %c0_6] : memref<64x64xbf16, #tpu.memory_space<vmem>>, vector<64x64xbf16>
    %7 = arith.extf %6 : vector<64x64xbf16> to vector<64x64xf32>
    %8 = arith.addf %5, %7 : vector<64x64xf32>
    %9 = arith.truncf %8 : vector<64x64xf32> to vector<64x64xbf16>
    %c0_7 = arith.constant 0 : index
    %c0_8 = arith.constant 0 : index
    %10 = vector.load %arg7[%c0_7, %c0_8] : memref<64x64xbf16, #tpu.memory_space<vmem>>, vector<64x64xbf16>
    tpu.vector_store %arg7[%c0_7, %c0_8], %9 {strides = array<i32>} : memref<64x64xbf16, #tpu.memory_space<vmem>>, vector<64x64xbf16>,
    return
  }
  func.func @transform_0(%arg0: i32, %arg1: i32, %arg2: i32) -> (i32, i32) {
    %c0_i32 = arith.constant 0 : i32
    return %arg0, %arg2 : i32, i32
  }
  func.func @transform_1(%arg0: i32, %arg1: i32, %arg2: i32) -> (i32, i32) {
    %c0_i32 = arith.constant 0 : i32
    return %arg2, %arg1 : i32, i32
  }
  func.func @transform_2(%arg0: i32, %arg1: i32, %arg2: i32) -> (i32, i32) {
    %c0_i32 = arith.constant 0 : i32
    %c0_i32_0 = arith.constant 0 : i32
    return %c0_i32, %arg1 : i32, i32
  }
  func.func @transform_3(%arg0: i32, %arg1: i32, %arg2: i32) -> (i32, i32) {
    %c0_i32 = arith.constant 0 : i32
    return %arg0, %arg1 : i32, i32
  }
  func.func @transform_4(%arg0: i32, %arg1: i32, %arg2: i32) -> (i32, i32) {
    %c0_i32 = arith.constant 0 : i32
    return %arg0, %arg1 : i32, i32
  }
}

module attributes {stable_mosaic.version = 11 : i64} {
  func.func @_mm_kernel(%arg0: i32, %arg1: i32, %arg2: i32, %arg3: memref<64x64xbf16, #tpu.memory_space<vmem>>, %arg4: memref<64x64xbf16, #tpu.memory_space<vmem>>, %arg5: memref<1x64xf32, #tpu.memory_space<vmem>>, %arg6: memref<64x64xbf16, #tpu.memory_space<vmem>>) attributes {dimension_semantics = [#tpu.dimension_semantics<parallel>, #tpu.dimension_semantics<parallel>, #tpu.dimension_semantics<arbitrary>], iteration_bounds = array<i64: 2, 1, 1>, scalar_prefetch = 0 : i64, scratch_operands = 0 : i64, tpu.core_type = #tpu.core_type<tc>, window_params = [{transform_indices = @transform_0, window_bounds = array<i64: 64, 64>}, {transform_indices = @transform_1, window_bounds = array<i64: 64, 64>}, {transform_indices = @transform_2, window_bounds = array<i64: 1, 64>}, {transform_indices = @transform_3, window_bounds = array<i64: 64, 64>}]} {
    %c0 = arith.constant 0 : index
    %c0_0 = arith.constant 0 : index
    %0 = vector.load %arg3[%c0, %c0_0] : memref<64x64xbf16, #tpu.memory_space<vmem>>, vector<64x64xbf16>
    %c0_1 = arith.constant 0 : index
    %c0_2 = arith.constant 0 : index
    %1 = vector.load %arg4[%c0_1, %c0_2] : memref<64x64xbf16, #tpu.memory_space<vmem>>, vector<64x64xbf16>
    %cst = arith.constant dense<0.000000e+00> : vector<64x64xf32>
    %2 = tpu.matmul %0, %1, %cst {dimension_numbers = #tpu.dot_dimension_numbers<[1], [0], [0], [1], [0, 0, 1, 1], [], []>} : vector<64x64xbf16>, vector<64x64xbf16>, vector<64x64xf32> -> vector<64x64xf32>
    %c0_3 = arith.constant 0 : index
    %c0_4 = arith.constant 0 : index
    %3 = vector.load %arg5[%c0_3, %c0_4] : memref<1x64xf32, #tpu.memory_space<vmem>>, vector<1x64xf32>
    %4 = vector.broadcast %3 : vector<1x64xf32> to vector<64x64xf32>
    %5 = arith.addf %2, %4 : vector<64x64xf32>
    %cst_5 = arith.constant 0.000000e+00 : f32
    %6 = vector.broadcast %cst_5 : f32 to vector<64x64xf32>
    %7 = arith.maximumf %5, %6 : vector<64x64xf32>
    %8 = arith.truncf %7 : vector<64x64xf32> to vector<64x64xbf16>
    %c0_6 = arith.constant 0 : index
    %c0_7 = arith.constant 0 : index
    %9 = vector.load %arg6[%c0_6, %c0_7] : memref<64x64xbf16, #tpu.memory_space<vmem>>, vector<64x64xbf16>
    tpu.vector_store %arg6[%c0_6, %c0_7], %8 {strides = array<i32>} : memref<64x64xbf16, #tpu.memory_space<vmem>>, vector<64x64xbf16>,
    return
  }
  func.func @transform_0(%arg0: i32, %arg1: i32, %arg2: i32) -> (i32, i32) {
    %c0_i32 = arith.constant 0 : i32
    return %arg0, %arg2 : i32, i32
  }
  func.func @transform_1(%arg0: i32, %arg1: i32, %arg2: i32) -> (i32, i32) {
    %c0_i32 = arith.constant 0 : i32
    return %arg2, %arg1 : i32, i32
  }
  func.func @transform_2(%arg0: i32, %arg1: i32, %arg2: i32) -> (i32, i32) {
    %c0_i32 = arith.constant 0 : i32
    %c0_i32_0 = arith.constant 0 : i32
    return %c0_i32, %arg1 : i32, i32
  }
  func.func @transform_3(%arg0: i32, %arg1: i32, %arg2: i32) -> (i32, i32) {
    %c0_i32 = arith.constant 0 : i32
    return %arg0, %arg1 : i32, i32
  }
}

</mosaic_0001>

<bundles_post_ra>
// kernel: encoder_decoder_forward.12
= control target key start
LH: loop header
LB: loop body
LE: loop exit
PB: predicated region body
PF: predicated region fallthrough
CT: control target
= control target key end

     0   :  { %s1813_s12 = smov 0   ;;  %s1815_s13 = smov 0   ;;  %s2124_s0 = inlined_call_operand.vmem [shape: bf16[2048,27], index: 0, kind: input, shape index: {}]   ;;  %s2125_s1 = inlined_call_operand.vmem [shape: bf16[27,32], index: 1, kind: input, shape index: {}]   ;;  %s2126_s2 = inlined_call_operand.vmem [shape: f32[1,32], index: 2, kind: input, shape index: {}]   ;;  %s2127_s3 = inlined_call_operand.vmem [shape: bf16[2048,32], index: 3, kind: output, shape index: {}]  }
   0x1   :  { %s1817_s14 = smov 0  }
   0x2 LB: > { %s32_s15 = sadd.s32 1, %s1786_s13  ;;  %p1401_p0 = scmp.ge.s32.totalorder %s1790_s14, 1  ;;  %s1790_s14 = sphi %s1817_s14, %s13_s14   ;;  %s1786_s13 = sphi %s1815_s13, %s2129_s13   ;;  %s1782_s12 = sphi %s1813_s12, %s2128_s12  }
   0x3   : > { %p34_p1 = scmp.ge.s32.totalorder %s32_s15, 4  ;;  %p188_p2 = scmp.lt.s32.totalorder %s1790_s14, 5 }
   0x5   : > { %s2131_s15 = smov (%p34_p1, %s32_s15), 0  ;;  %p189_p3 = pnand %p1401_p0, %p188_p2 }
   0x6   : > { %v1734_v0 = vld [vmem:[%s2125_s1] sm:$0xff] (!%p189_p3)   ;;  %vm603_vm0 = vcmask (!%p189_p3), 1044480   ;;  %v1735_v1 = vld [vmem:[%s2125_s1 + $0x8] sm:$0x3f] (!%p189_p3)   ;;  %vm604_vm1 = vcmask (!%p189_p3), 1045504   ;;  %s1402_s20 = sshll.u32 (!%p189_p3), %s1782_s12, 6 }
   0x7   : > { %192 = sbr.rel (%p189_p3) target bundleno = 298 (0x12a), region = 32  ;;  %1637 = vmatprep.subr.bf16.mxu0 (!%p189_p3), %v1734_v0  ;;  %1705 = vmatprep.subr.bf16.mxu1 (!%p189_p3), %v1734_v0  ;;  %v1792_v2 = vmov (!%p189_p3), 65535   ;;  %p230_p4 = scmp.lt.s32.totalorder (!%p189_p3), %s1402_s20, 255  ;;  %vm506_vm2 = vcmask (!%p189_p3), 220160   ;;  %v1914_v38 = vld [vmem:[%s2126_s2] ss:$0 sm:$0xff] (!%p189_p3) }
   0x8   : > { %1638 = vmatpush3.bf16.msra.mxu0 (!%p189_p3), %v1734_v0  ;;  %1707 = vmatpush3.bf16.msra.mxu1 (!%p189_p3), %v1734_v0  ;;  %v605_v3 = vsel (!%p189_p3), %vm603_vm0, 4294967295, %v1792_v2  ;;  %vm1219_vm3 = vcmask (!%p189_p3), 257024  }
   0x9   : > { %v606_v4 = vsel (!%p189_p3), %vm604_vm1, %v605_v3, 0 }
   0xa   : > { %v608_v5 = vand.u32 (!%p189_p3), %v1735_v1, %v606_v4 }
   0xc   : > { %1639 = vmatprep.subr.bf16.mxu0 (!%p189_p3), %v608_v5  ;;  %1706 = vmatprep.subr.bf16.mxu1 (!%p189_p3), %v608_v5 }
   0xd   : > { %1640 = vmatpush3.bf16.msra.mxu0 (!%p189_p3), %v608_v5  ;;  %1708 = vmatpush3.bf16.msra.mxu1 (!%p189_p3), %v608_v5 }
   0xe   : > { %s2133_s20 = smov (!%p230_p4, %s1402_s20), 255 }
   0xf   : > { %s1403_s21 = sshll.u32 %s2133_s20, 2 }
  0x10   : > { %s1845_s24 = scalar_lea.vmem %s2124_s0, %s1403_s21  ;;  %s1926_s29 = scalar_lea.vmem %s2127_s3, %s1403_s21 }
  0x11   : > { %v1736_v6 = vld [vmem:[%s1845_s24] sm:$0xff]   ;;  %v1738_v8 = vld [vmem:[%s1845_s24 + $0x8] sm:$0xff]   ;;  %v1740_v10 = vld [vmem:[%s1845_s24 + $0x10] sm:$0xff]  }
  0x12   : > { %v1737_v7 = vld [vmem:[%s1845_s24 + $0x80] sm:$0xff]   ;;  %1641 = vmatprep.mubr.msk.bf16.mxu0 %vm506_vm2, %v1736_v6  ;;  %v1739_v9 = vld [vmem:[%s1845_s24 + $0x88] sm:$0xff]   ;;  %v1741_v11 = vld [vmem:[%s1845_s24 + $0x90] sm:$0xff]  }
  0x13   : > { %1673 = vmatprep.mubr.msk.bf16.mxu1 %vm506_vm2, %v1737_v7  ;;  %1642 = vmatmul.mubr.msk.bf16.vlgmr.msra.gmra.mrb[0].mxu0 %vm506_vm2, %v1738_v8  ;;  %v1742_v12 = vld [vmem:[%s1845_s24 + $0x18] sm:$0xff]   ;;  %v1744_v14 = vld [vmem:[%s1845_s24 + $0x20] sm:$0xff]   ;;  %v1746_v16 = vld [vmem:[%s1845_s24 + $0x28] sm:$0xff]  }
  0x14   : > { %1674 = vmatmul.mubr.msk.bf16.vlgmr.msra.gmra.mrb[0].mxu1 %vm506_vm2, %v1739_v9  ;;  %1645 = vmatprep.mubr.msk.bf16.mxu0 %vm506_vm2, %v1740_v10  ;;  %v1743_v13 = vld [vmem:[%s1845_s24 + $0x98] sm:$0xff]   ;;  %v1745_v15 = vld [vmem:[%s1845_s24 + $0xa0] sm:$0xff]   ;;  %v1747_v17 = vld [vmem:[%s1845_s24 + $0xa8] sm:$0xff]  }
  0x15   : > { %1677 = vmatprep.mubr.msk.bf16.mxu1 %vm506_vm2, %v1741_v11  ;;  %v1748_v18 = vld [vmem:[%s1845_s24 + $0x30] sm:$0xff]   ;;  %v1750_v20 = vld [vmem:[%s1845_s24 + $0x38] sm:$0xff]   ;;  %v1752_v22 = vld [vmem:[%s1845_s24 + $0x40] sm:$0xff]  }
  0x16   : > { %v1749_v19 = vld [vmem:[%s1845_s24 + $0xb0] sm:$0xff]   ;;  %v1751_v21 = vld [vmem:[%s1845_s24 + $0xb8] sm:$0xff]   ;;  %v1753_v23 = vld [vmem:[%s1845_s24 + $0xc0] sm:$0xff]  }
  0x17   : > { %v1754_v24 = vld [vmem:[%s1845_s24 + $0x48] sm:$0xff]   ;;  %v1756_v26 = vld [vmem:[%s1845_s24 + $0x50] sm:$0xff]   ;;  %v1758_v28 = vld [vmem:[%s1845_s24 + $0x58] sm:$0xff]  }
  0x18   : > { %v1755_v25 = vld [vmem:[%s1845_s24 + $0xc8] sm:$0xff]   ;;  %v1757_v27 = vld [vmem:[%s1845_s24 + $0xd0] sm:$0xff]   ;;  %v1759_v29 = vld [vmem:[%s1845_s24 + $0xd8] sm:$0xff]  }
  0x19   : > { %v1760_v30 = vld [vmem:[%s1845_s24 + $0x60] sm:$0xff]   ;;  %v1762_v32 = vld [vmem:[%s1845_s24 + $0x68] sm:$0xff]   ;;  %v1764_v34 = vld [vmem:[%s1845_s24 + $0x70] sm:$0xff]  }
  0x1a   : > { %v1761_v31 = vld [vmem:[%s1845_s24 + $0xe0] sm:$0xff]   ;;  %v1763_v33 = vld [vmem:[%s1845_s24 + $0xe8] sm:$0xff]   ;;  %v1765_v35 = vld [vmem:[%s1845_s24 + $0xf0] sm:$0xff]  }
  0x1b   : > { %1646 = vmatmul.mubr.msk.bf16.gmra.mrb[4].mxu0 %vm506_vm2, %v1742_v12  ;;  %v1766_v36 = vld [vmem:[%s1845_s24 + $0x78] sm:$0xff]  }
  0x1c   : > { %1678 = vmatmul.mubr.msk.bf16.gmra.mrb[4].mxu1 %vm506_vm2, %v1743_v13  ;;  %1649 = vmatprep.mubr.msk.bf16.mxu0 %vm506_vm2, %v1744_v14  ;;  %v1767_v37 = vld [vmem:[%s1845_s24 + $0xf8] sm:$0xff]  }
  0x1d   : > { %1681 = vmatprep.mubr.msk.bf16.mxu1 %vm506_vm2, %v1745_v15 }
  0x23   : > { %1650 = vmatmul.mubr.msk.bf16.gmra.mrb[8].mxu0 %vm506_vm2, %v1746_v16 }
  0x24   : > { %1682 = vmatmul.mubr.msk.bf16.gmra.mrb[8].mxu1 %vm506_vm2, %v1747_v17  ;;  %1653 = vmatprep.mubr.msk.bf16.mxu0 %vm506_vm2, %v1748_v18 }
  0x25   : > { %1685 = vmatprep.mubr.msk.bf16.mxu1 %vm506_vm2, %v1749_v19 }
  0x2b   : > { %1654 = vmatmul.mubr.msk.bf16.gmra.mrb[12].mxu0 %vm506_vm2, %v1750_v20 }
  0x2c   : > { %1686 = vmatmul.mubr.msk.bf16.gmra.mrb[12].mxu1 %vm506_vm2, %v1751_v21  ;;  %1657 = vmatprep.mubr.msk.bf16.mxu0 %vm506_vm2, %v1752_v22 }
  0x2d   : > { %1689 = vmatprep.mubr.msk.bf16.mxu1 %vm506_vm2, %v1753_v23 }
  0x33   : > { %1658 = vmatmul.mubr.msk.bf16.gmra.mrb[16].mxu0 %vm506_vm2, %v1754_v24 }
  0x34   : > { %1690 = vmatmul.mubr.msk.bf16.gmra.mrb[16].mxu1 %vm506_vm2, %v1755_v25  ;;  %1661 = vmatprep.mubr.msk.bf16.mxu0 %vm506_vm2, %v1756_v26 }
  0x35   : > { %1693 = vmatprep.mubr.msk.bf16.mxu1 %vm506_vm2, %v1757_v27 }
  0x3b   : > { %1662 = vmatmul.mubr.msk.bf16.gmra.mrb[20].mxu0 %vm506_vm2, %v1758_v28 }
  0x3c   : > { %1694 = vmatmul.mubr.msk.bf16.gmra.mrb[20].mxu1 %vm506_vm2, %v1759_v29  ;;  %1665 = vmatprep.mubr.msk.bf16.mxu0 %vm506_vm2, %v1760_v30 }
  0x3d   : > { %1697 = vmatprep.mubr.msk.bf16.mxu1 %vm506_vm2, %v1761_v31 }
  0x43   : > { %1666 = vmatmul.mubr.msk.bf16.gmra.mrb[24].mxu0 %vm506_vm2, %v1762_v32 }
  0x44   : > { %1698 = vmatmul.mubr.msk.bf16.gmra.mrb[24].mxu1 %vm506_vm2, %v1763_v33  ;;  %1669 = vmatprep.mubr.msk.bf16.mxu0 %vm506_vm2, %v1764_v34 }
  0x45   : > { %1701 = vmatprep.mubr.msk.bf16.mxu1 %vm506_vm2, %v1765_v35 }
  0x4b   : > { %1670 = vmatmul.mubr.msk.bf16.gmra.mrb[28].mxu0 %vm506_vm2, %v1766_v36 }
  0x4c   : > { %1702 = vmatmul.mubr.msk.bf16.gmra.mrb[28].mxu1 %vm506_vm2, %v1767_v37 }
  0xe6   : > { %v1643_v39 = vpop.f32.mrb[0].mxu0 }
  0xe7   : > { %v653_v40 = vadd.f32 %v1643_v39, %v1914_v38  ;;  %v1675_v41 = vpop.f32.mrb[0].mxu1  ;;  %v644_v42 = vpop.f32.mrb[1].mxu0 }
  0xe8   : > { %v781_v43 = vadd.f32 %v1675_v41, %v1914_v38  ;;  %v645_v44 = vadd.f32 %v1914_v38, %v644_v42  ;;  %v772_v45 = vpop.f32.mrb[1].mxu1  ;;  %v1644_v46 = vpop.f32.mrb[2].mxu0 }
  0xe9   : > { %v901_v47 = vmax.f32 %v653_v40, 0.0  ;;  %v773_v48 = vadd.f32 %v1914_v38, %v772_v45  ;;  %v656_v49 = vadd.f32 %v1644_v46, %v1914_v38  ;;  %v1676_v50 = vpop.f32.mrb[2].mxu1  ;;  %v647_v51 = vpop.f32.mrb[3].mxu0 }
  0xea   : > { %v933_v52 = vmax.f32 %v781_v43, 0.0  ;;  %v899_v53 = vmax.f32 %v645_v44, 0.0  ;;  %v784_v54 = vadd.f32 %v1676_v50, %v1914_v38  ;;  %v648_v55 = vadd.f32 %v1914_v38, %v647_v51  ;;  %v775_v56 = vpop.f32.mrb[3].mxu1 }
  0xeb   : > { %v1541_v57 = vpack.c.bf16 %v901_v47, %v901_v47  ;;  %v931_v58 = vmax.f32 %v773_v48, 0.0  ;;  %v902_v59 = vmax.f32 %v656_v49, 0.0  ;;  %v776_v60 = vadd.f32 %v1914_v38, %v775_v56 }
  0xec   : > { %v1573_v61 = vpack.c.bf16 %v933_v52, %v933_v52  ;;  %v1539_v62 = vpack.c.bf16 %v899_v53, %v899_v53  ;;  %v934_v63 = vmax.f32 %v784_v54, 0.0  ;;  %v900_v0 = vmax.f32 %v648_v55, 0.0 }
  0xed   : > { %1222 = vst.msk [vmem:[%s1926_s29 + $0x8] sm:$0xf] %vm1219_vm3, %v1541_v57  ;;  %v1571_v1 = vpack.c.bf16 %v931_v58, %v931_v58  ;;  %v1542_v2 = vpack.c.bf16 %v902_v59, %v902_v59  ;;  %v932_v3 = vmax.f32 %v776_v60, 0.0 }
  0xee   : > { %1254 = vst.msk [vmem:[%s1926_s29 + $0x88] sm:$0xf] %vm1219_vm3, %v1573_v61  ;;  %1220 = vst.msk [vmem:[%s1926_s29] sm:$0xf] %vm1219_vm3, %v1539_v62  ;;  %v1574_v4 = vpack.c.bf16 %v934_v63, %v934_v63  ;;  %v1540_v5 = vpack.c.bf16 %v900_v0, %v900_v0  ;;  %v1647_v6 = vpop.f32.mrb[4].mxu0 }
  0xef   : > { %1252 = vst.msk [vmem:[%s1926_s29 + $0x80] sm:$0xf] %vm1219_vm3, %v1571_v1  ;;  %1223 = vst.msk [vmem:[%s1926_s29 + $0xc] sm:$0xf] %vm1219_vm3, %v1542_v2  ;;  %v1572_v7 = vpack.c.bf16 %v932_v3, %v932_v3  ;;  %v669_v8 = vadd.f32 %v1647_v6, %v1914_v38  ;;  %v1679_v9 = vpop.f32.mrb[4].mxu1  ;;  %v660_v10 = vpop.f32.mrb[5].mxu0 }
  0xf0   : > { %1255 = vst.msk [vmem:[%s1926_s29 + $0x8c] sm:$0xf] %vm1219_vm3, %v1574_v4  ;;  %1221 = vst.msk [vmem:[%s1926_s29 + $0x4] sm:$0xf] %vm1219_vm3, %v1540_v5  ;;  %v797_v11 = vadd.f32 %v1679_v9, %v1914_v38  ;;  %v661_v12 = vadd.f32 %v1914_v38, %v660_v10  ;;  %v788_v13 = vpop.f32.mrb[5].mxu1  ;;  %v1648_v14 = vpop.f32.mrb[6].mxu0 }
  0xf1   : > { %1253 = vst.msk [vmem:[%s1926_s29 + $0x84] sm:$0xf] %vm1219_vm3, %v1572_v7  ;;  %v905_v15 = vmax.f32 %v669_v8, 0.0  ;;  %v789_v16 = vadd.f32 %v1914_v38, %v788_v13  ;;  %v672_v17 = vadd.f32 %v1648_v14, %v1914_v38  ;;  %v1680_v18 = vpop.f32.mrb[6].mxu1  ;;  %v663_v19 = vpop.f32.mrb[7].mxu0 }
  0xf2   : > { %v937_v20 = vmax.f32 %v797_v11, 0.0  ;;  %v903_v21 = vmax.f32 %v661_v12, 0.0  ;;  %v800_v22 = vadd.f32 %v1680_v18, %v1914_v38  ;;  %v664_v23 = vadd.f32 %v1914_v38, %v663_v19  ;;  %v791_v24 = vpop.f32.mrb[7].mxu1 }
  0xf3   : > { %v1545_v25 = vpack.c.bf16 %v905_v15, %v905_v15  ;;  %v935_v26 = vmax.f32 %v789_v16, 0.0  ;;  %v906_v27 = vmax.f32 %v672_v17, 0.0  ;;  %v792_v28 = vadd.f32 %v1914_v38, %v791_v24 }
  0xf4   : > { %v1577_v29 = vpack.c.bf16 %v937_v20, %v937_v20  ;;  %v1543_v30 = vpack.c.bf16 %v903_v21, %v903_v21  ;;  %v938_v31 = vmax.f32 %v800_v22, 0.0  ;;  %v904_v32 = vmax.f32 %v664_v23, 0.0 }
  0xf5   : > { %1226 = vst.msk [vmem:[%s1926_s29 + $0x18] sm:$0xf] %vm1219_vm3, %v1545_v25  ;;  %v1575_v33 = vpack.c.bf16 %v935_v26, %v935_v26  ;;  %v1546_v34 = vpack.c.bf16 %v906_v27, %v906_v27  ;;  %v936_v35 = vmax.f32 %v792_v28, 0.0 }
  0xf6   : > { %1258 = vst.msk [vmem:[%s1926_s29 + $0x98] sm:$0xf] %vm1219_vm3, %v1577_v29  ;;  %1224 = vst.msk [vmem:[%s1926_s29 + $0x10] sm:$0xf] %vm1219_vm3, %v1543_v30  ;;  %v1578_v36 = vpack.c.bf16 %v938_v31, %v938_v31  ;;  %v1544_v37 = vpack.c.bf16 %v904_v32, %v904_v32  ;;  %v1651_v39 = vpop.f32.mrb[8].mxu0 }
  0xf7   : > { %1256 = vst.msk [vmem:[%s1926_s29 + $0x90] sm:$0xf] %vm1219_vm3, %v1575_v33  ;;  %1227 = vst.msk [vmem:[%s1926_s29 + $0x1c] sm:$0xf] %vm1219_vm3, %v1546_v34  ;;  %v1576_v40 = vpack.c.bf16 %v936_v35, %v936_v35  ;;  %v685_v41 = vadd.f32 %v1651_v39, %v1914_v38  ;;  %v1683_v42 = vpop.f32.mrb[8].mxu1  ;;  %v676_v43 = vpop.f32.mrb[9].mxu0 }
  0xf8   : > { %1259 = vst.msk [vmem:[%s1926_s29 + $0x9c] sm:$0xf] %vm1219_vm3, %v1578_v36  ;;  %1225 = vst.msk [vmem:[%s1926_s29 + $0x14] sm:$0xf] %vm1219_vm3, %v1544_v37  ;;  %v813_v44 = vadd.f32 %v1683_v42, %v1914_v38  ;;  %v677_v45 = vadd.f32 %v1914_v38, %v676_v43  ;;  %v804_v46 = vpop.f32.mrb[9].mxu1  ;;  %v1652_v47 = vpop.f32.mrb[10].mxu0 }
  0xf9   : > { %1257 = vst.msk [vmem:[%s1926_s29 + $0x94] sm:$0xf] %vm1219_vm3, %v1576_v40  ;;  %v909_v48 = vmax.f32 %v685_v41, 0.0  ;;  %v805_v49 = vadd.f32 %v1914_v38, %v804_v46  ;;  %v688_v50 = vadd.f32 %v1652_v47, %v1914_v38  ;;  %v1684_v51 = vpop.f32.mrb[10].mxu1  ;;  %v679_v52 = vpop.f32.mrb[11].mxu0 }
  0xfa   : > { %v941_v53 = vmax.f32 %v813_v44, 0.0  ;;  %v907_v54 = vmax.f32 %v677_v45, 0.0  ;;  %v816_v55 = vadd.f32 %v1684_v51, %v1914_v38  ;;  %v680_v56 = vadd.f32 %v1914_v38, %v679_v52  ;;  %v807_v57 = vpop.f32.mrb[11].mxu1 }
  0xfb   : > { %v1549_v58 = vpack.c.bf16 %v909_v48, %v909_v48  ;;  %v939_v59 = vmax.f32 %v805_v49, 0.0  ;;  %v910_v60 = vmax.f32 %v688_v50, 0.0  ;;  %v808_v61 = vadd.f32 %v1914_v38, %v807_v57 }
  0xfc   : > { %v1581_v62 = vpack.c.bf16 %v941_v53, %v941_v53  ;;  %v1547_v63 = vpack.c.bf16 %v907_v54, %v907_v54  ;;  %v942_v0 = vmax.f32 %v816_v55, 0.0  ;;  %v908_v1 = vmax.f32 %v680_v56, 0.0 }
  0xfd   : > { %1230 = vst.msk [vmem:[%s1926_s29 + $0x28] sm:$0xf] %vm1219_vm3, %v1549_v58  ;;  %v1579_v2 = vpack.c.bf16 %v939_v59, %v939_v59  ;;  %v1550_v3 = vpack.c.bf16 %v910_v60, %v910_v60  ;;  %v940_v4 = vmax.f32 %v808_v61, 0.0 }
  0xfe   : > { %1262 = vst.msk [vmem:[%s1926_s29 + $0xa8] sm:$0xf] %vm1219_vm3, %v1581_v62  ;;  %1228 = vst.msk [vmem:[%s1926_s29 + $0x20] sm:$0xf] %vm1219_vm3, %v1547_v63  ;;  %v1582_v5 = vpack.c.bf16 %v942_v0, %v942_v0  ;;  %v1548_v6 = vpack.c.bf16 %v908_v1, %v908_v1  ;;  %v1655_v7 = vpop.f32.mrb[12].mxu0 }
  0xff   : > { %1260 = vst.msk [vmem:[%s1926_s29 + $0xa0] sm:$0xf] %vm1219_vm3, %v1579_v2  ;;  %1231 = vst.msk [vmem:[%s1926_s29 + $0x2c] sm:$0xf] %vm1219_vm3, %v1550_v3  ;;  %v1580_v8 = vpack.c.bf16 %v940_v4, %v940_v4  ;;  %v701_v9 = vadd.f32 %v1655_v7, %v1914_v38  ;;  %v1687_v10 = vpop.f32.mrb[12].mxu1  ;;  %v692_v11 = vpop.f32.mrb[13].mxu0 }
 0x100   : > { %1263 = vst.msk [vmem:[%s1926_s29 + $0xac] sm:$0xf] %vm1219_vm3, %v1582_v5  ;;  %1229 = vst.msk [vmem:[%s1926_s29 + $0x24] sm:$0xf] %vm1219_vm3, %v1548_v6  ;;  %v829_v12 = vadd.f32 %v1687_v10, %v1914_v38  ;;  %v693_v13 = vadd.f32 %v1914_v38, %v692_v11  ;;  %v820_v14 = vpop.f32.mrb[13].mxu1  ;;  %v1656_v15 = vpop.f32.mrb[14].mxu0 }
 0x101   : > { %1261 = vst.msk [vmem:[%s1926_s29 + $0xa4] sm:$0xf] %vm1219_vm3, %v1580_v8  ;;  %v913_v16 = vmax.f32 %v701_v9, 0.0  ;;  %v821_v17 = vadd.f32 %v1914_v38, %v820_v14  ;;  %v704_v18 = vadd.f32 %v1656_v15, %v1914_v38  ;;  %v1688_v19 = vpop.f32.mrb[14].mxu1  ;;  %v695_v20 = vpop.f32.mrb[15].mxu0 }
 0x102   : > { %v945_v21 = vmax.f32 %v829_v12, 0.0  ;;  %v911_v22 = vmax.f32 %v693_v13, 0.0  ;;  %v832_v23 = vadd.f32 %v1688_v19, %v1914_v38  ;;  %v696_v24 = vadd.f32 %v1914_v38, %v695_v20  ;;  %v823_v25 = vpop.f32.mrb[15].mxu1 }
 0x103   : > { %v1553_v26 = vpack.c.bf16 %v913_v16, %v913_v16  ;;  %v943_v27 = vmax.f32 %v821_v17, 0.0  ;;  %v914_v28 = vmax.f32 %v704_v18, 0.0  ;;  %v824_v29 = vadd.f32 %v1914_v38, %v823_v25 }
 0x104   : > { %v1585_v30 = vpack.c.bf16 %v945_v21, %v945_v21  ;;  %v1551_v31 = vpack.c.bf16 %v911_v22, %v911_v22  ;;  %v946_v32 = vmax.f32 %v832_v23, 0.0  ;;  %v912_v33 = vmax.f32 %v696_v24, 0.0 }
 0x105   : > { %1234 = vst.msk [vmem:[%s1926_s29 + $0x38] sm:$0xf] %vm1219_vm3, %v1553_v26  ;;  %v1583_v34 = vpack.c.bf16 %v943_v27, %v943_v27  ;;  %v1554_v35 = vpack.c.bf16 %v914_v28, %v914_v28  ;;  %v944_v36 = vmax.f32 %v824_v29, 0.0 }
 0x106   : > { %1266 = vst.msk [vmem:[%s1926_s29 + $0xb8] sm:$0xf] %vm1219_vm3, %v1585_v30  ;;  %1232 = vst.msk [vmem:[%s1926_s29 + $0x30] sm:$0xf] %vm1219_vm3, %v1551_v31  ;;  %v1586_v37 = vpack.c.bf16 %v946_v32, %v946_v32  ;;  %v1552_v39 = vpack.c.bf16 %v912_v33, %v912_v33  ;;  %v1659_v40 = vpop.f32.mrb[16].mxu0 }
 0x107   : > { %1264 = vst.msk [vmem:[%s1926_s29 + $0xb0] sm:$0xf] %vm1219_vm3, %v1583_v34  ;;  %1235 = vst.msk [vmem:[%s1926_s29 + $0x3c] sm:$0xf] %vm1219_vm3, %v1554_v35  ;;  %v1584_v41 = vpack.c.bf16 %v944_v36, %v944_v36  ;;  %v717_v42 = vadd.f32 %v1659_v40, %v1914_v38  ;;  %v1691_v43 = vpop.f32.mrb[16].mxu1  ;;  %v708_v44 = vpop.f32.mrb[17].mxu0 }
 0x108   : > { %1267 = vst.msk [vmem:[%s1926_s29 + $0xbc] sm:$0xf] %vm1219_vm3, %v1586_v37  ;;  %1233 = vst.msk [vmem:[%s1926_s29 + $0x34] sm:$0xf] %vm1219_vm3, %v1552_v39  ;;  %v845_v45 = vadd.f32 %v1691_v43, %v1914_v38  ;;  %v709_v46 = vadd.f32 %v1914_v38, %v708_v44  ;;  %v836_v47 = vpop.f32.mrb[17].mxu1  ;;  %v1660_v48 = vpop.f32.mrb[18].mxu0 }
 0x109   : > { %1265 = vst.msk [vmem:[%s1926_s29 + $0xb4] sm:$0xf] %vm1219_vm3, %v1584_v41  ;;  %v917_v49 = vmax.f32 %v717_v42, 0.0  ;;  %v837_v50 = vadd.f32 %v1914_v38, %v836_v47  ;;  %v720_v51 = vadd.f32 %v1660_v48, %v1914_v38  ;;  %v1692_v52 = vpop.f32.mrb[18].mxu1  ;;  %v711_v53 = vpop.f32.mrb[19].mxu0 }
 0x10a   : > { %v949_v54 = vmax.f32 %v845_v45, 0.0  ;;  %v915_v55 = vmax.f32 %v709_v46, 0.0  ;;  %v848_v56 = vadd.f32 %v1692_v52, %v1914_v38  ;;  %v712_v57 = vadd.f32 %v1914_v38, %v711_v53  ;;  %v839_v58 = vpop.f32.mrb[19].mxu1 }
 0x10b   : > { %v1557_v59 = vpack.c.bf16 %v917_v49, %v917_v49  ;;  %v947_v60 = vmax.f32 %v837_v50, 0.0  ;;  %v918_v61 = vmax.f32 %v720_v51, 0.0  ;;  %v840_v62 = vadd.f32 %v1914_v38, %v839_v58 }
 0x10c   : > { %v1589_v63 = vpack.c.bf16 %v949_v54, %v949_v54  ;;  %v1555_v0 = vpack.c.bf16 %v915_v55, %v915_v55  ;;  %v950_v1 = vmax.f32 %v848_v56, 0.0  ;;  %v916_v2 = vmax.f32 %v712_v57, 0.0 }
 0x10d   : > { %1238 = vst.msk [vmem:[%s1926_s29 + $0x48] sm:$0xf] %vm1219_vm3, %v1557_v59  ;;  %v1587_v3 = vpack.c.bf16 %v947_v60, %v947_v60  ;;  %v1558_v4 = vpack.c.bf16 %v918_v61, %v918_v61  ;;  %v948_v5 = vmax.f32 %v840_v62, 0.0 }
 0x10e   : > { %1270 = vst.msk [vmem:[%s1926_s29 + $0xc8] sm:$0xf] %vm1219_vm3, %v1589_v63  ;;  %1236 = vst.msk [vmem:[%s1926_s29 + $0x40] sm:$0xf] %vm1219_vm3, %v1555_v0  ;;  %v1590_v6 = vpack.c.bf16 %v950_v1, %v950_v1  ;;  %v1556_v7 = vpack.c.bf16 %v916_v2, %v916_v2  ;;  %v1663_v8 = vpop.f32.mrb[20].mxu0 }
 0x10f   : > { %1268 = vst.msk [vmem:[%s1926_s29 + $0xc0] sm:$0xf] %vm1219_vm3, %v1587_v3  ;;  %1239 = vst.msk [vmem:[%s1926_s29 + $0x4c] sm:$0xf] %vm1219_vm3, %v1558_v4  ;;  %v1588_v9 = vpack.c.bf16 %v948_v5, %v948_v5  ;;  %v733_v10 = vadd.f32 %v1663_v8, %v1914_v38  ;;  %v1695_v11 = vpop.f32.mrb[20].mxu1  ;;  %v724_v12 = vpop.f32.mrb[21].mxu0 }
 0x110   : > { %1271 = vst.msk [vmem:[%s1926_s29 + $0xcc] sm:$0xf] %vm1219_vm3, %v1590_v6  ;;  %1237 = vst.msk [vmem:[%s1926_s29 + $0x44] sm:$0xf] %vm1219_vm3, %v1556_v7  ;;  %v861_v13 = vadd.f32 %v1695_v11, %v1914_v38  ;;  %v725_v14 = vadd.f32 %v1914_v38, %v724_v12  ;;  %v852_v15 = vpop.f32.mrb[21].mxu1  ;;  %v1664_v16 = vpop.f32.mrb[22].mxu0 }
 0x111   : > { %1269 = vst.msk [vmem:[%s1926_s29 + $0xc4] sm:$0xf] %vm1219_vm3, %v1588_v9  ;;  %v921_v17 = vmax.f32 %v733_v10, 0.0  ;;  %v853_v18 = vadd.f32 %v1914_v38, %v852_v15  ;;  %v736_v19 = vadd.f32 %v1664_v16, %v1914_v38  ;;  %v1696_v20 = vpop.f32.mrb[22].mxu1  ;;  %v727_v21 = vpop.f32.mrb[23].mxu0 }
 0x112   : > { %v953_v22 = vmax.f32 %v861_v13, 0.0  ;;  %v919_v23 = vmax.f32 %v725_v14, 0.0  ;;  %v864_v24 = vadd.f32 %v1696_v20, %v1914_v38  ;;  %v728_v25 = vadd.f32 %v1914_v38, %v727_v21  ;;  %v855_v26 = vpop.f32.mrb[23].mxu1 }
 0x113   : > { %v1561_v27 = vpack.c.bf16 %v921_v17, %v921_v17  ;;  %v951_v28 = vmax.f32 %v853_v18, 0.0  ;;  %v922_v29 = vmax.f32 %v736_v19, 0.0  ;;  %v856_v30 = vadd.f32 %v1914_v38, %v855_v26 }
 0x114   : > { %v1593_v31 = vpack.c.bf16 %v953_v22, %v953_v22  ;;  %v1559_v32 = vpack.c.bf16 %v919_v23, %v919_v23  ;;  %v954_v33 = vmax.f32 %v864_v24, 0.0  ;;  %v920_v34 = vmax.f32 %v728_v25, 0.0 }
 0x115   : > { %1242 = vst.msk [vmem:[%s1926_s29 + $0x58] sm:$0xf] %vm1219_vm3, %v1561_v27  ;;  %v1591_v35 = vpack.c.bf16 %v951_v28, %v951_v28  ;;  %v1562_v36 = vpack.c.bf16 %v922_v29, %v922_v29  ;;  %v952_v37 = vmax.f32 %v856_v30, 0.0 }
 0x116   : > { %1274 = vst.msk [vmem:[%s1926_s29 + $0xd8] sm:$0xf] %vm1219_vm3, %v1593_v31  ;;  %1240 = vst.msk [vmem:[%s1926_s29 + $0x50] sm:$0xf] %vm1219_vm3, %v1559_v32  ;;  %v1594_v39 = vpack.c.bf16 %v954_v33, %v954_v33  ;;  %v1560_v40 = vpack.c.bf16 %v920_v34, %v920_v34  ;;  %v1667_v41 = vpop.f32.mrb[24].mxu0 }
 0x117   : > { %1272 = vst.msk [vmem:[%s1926_s29 + $0xd0] sm:$0xf] %vm1219_vm3, %v1591_v35  ;;  %1243 = vst.msk [vmem:[%s1926_s29 + $0x5c] sm:$0xf] %vm1219_vm3, %v1562_v36  ;;  %v1592_v42 = vpack.c.bf16 %v952_v37, %v952_v37  ;;  %v749_v43 = vadd.f32 %v1667_v41, %v1914_v38  ;;  %v1699_v44 = vpop.f32.mrb[24].mxu1  ;;  %v740_v45 = vpop.f32.mrb[25].mxu0 }
 0x118   : > { %1275 = vst.msk [vmem:[%s1926_s29 + $0xdc] sm:$0xf] %vm1219_vm3, %v1594_v39  ;;  %1241 = vst.msk [vmem:[%s1926_s29 + $0x54] sm:$0xf] %vm1219_vm3, %v1560_v40  ;;  %v877_v46 = vadd.f32 %v1699_v44, %v1914_v38  ;;  %v741_v47 = vadd.f32 %v1914_v38, %v740_v45  ;;  %v868_v48 = vpop.f32.mrb[25].mxu1  ;;  %v1668_v49 = vpop.f32.mrb[26].mxu0 }
 0x119   : > { %1273 = vst.msk [vmem:[%s1926_s29 + $0xd4] sm:$0xf] %vm1219_vm3, %v1592_v42  ;;  %v925_v50 = vmax.f32 %v749_v43, 0.0  ;;  %v869_v51 = vadd.f32 %v1914_v38, %v868_v48  ;;  %v752_v52 = vadd.f32 %v1668_v49, %v1914_v38  ;;  %v1700_v53 = vpop.f32.mrb[26].mxu1  ;;  %v743_v54 = vpop.f32.mrb[27].mxu0 }
 0x11a   : > { %v957_v55 = vmax.f32 %v877_v46, 0.0  ;;  %v923_v56 = vmax.f32 %v741_v47, 0.0  ;;  %v880_v57 = vadd.f32 %v1700_v53, %v1914_v38  ;;  %v744_v58 = vadd.f32 %v1914_v38, %v743_v54  ;;  %v871_v59 = vpop.f32.mrb[27].mxu1 }
 0x11b   : > { %v1565_v60 = vpack.c.bf16 %v925_v50, %v925_v50  ;;  %v955_v61 = vmax.f32 %v869_v51, 0.0  ;;  %v926_v62 = vmax.f32 %v752_v52, 0.0  ;;  %v872_v63 = vadd.f32 %v1914_v38, %v871_v59 }
 0x11c   : > { %v1597_v0 = vpack.c.bf16 %v957_v55, %v957_v55  ;;  %v1563_v1 = vpack.c.bf16 %v923_v56, %v923_v56  ;;  %v958_v2 = vmax.f32 %v880_v57, 0.0  ;;  %v924_v3 = vmax.f32 %v744_v58, 0.0 }
 0x11d   : > { %1246 = vst.msk [vmem:[%s1926_s29 + $0x68] sm:$0xf] %vm1219_vm3, %v1565_v60  ;;  %v1595_v4 = vpack.c.bf16 %v955_v61, %v955_v61  ;;  %v1566_v5 = vpack.c.bf16 %v926_v62, %v926_v62  ;;  %v956_v6 = vmax.f32 %v872_v63, 0.0 }
 0x11e   : > { %1278 = vst.msk [vmem:[%s1926_s29 + $0xe8] sm:$0xf] %vm1219_vm3, %v1597_v0  ;;  %1244 = vst.msk [vmem:[%s1926_s29 + $0x60] sm:$0xf] %vm1219_vm3, %v1563_v1  ;;  %v1598_v7 = vpack.c.bf16 %v958_v2, %v958_v2  ;;  %v1564_v8 = vpack.c.bf16 %v924_v3, %v924_v3  ;;  %v1671_v9 = vpop.f32.mrb[28].mxu0 }
 0x11f   : > { %1276 = vst.msk [vmem:[%s1926_s29 + $0xe0] sm:$0xf] %vm1219_vm3, %v1595_v4  ;;  %1247 = vst.msk [vmem:[%s1926_s29 + $0x6c] sm:$0xf] %vm1219_vm3, %v1566_v5  ;;  %v1596_v10 = vpack.c.bf16 %v956_v6, %v956_v6  ;;  %v765_v11 = vadd.f32 %v1671_v9, %v1914_v38  ;;  %v1703_v12 = vpop.f32.mrb[28].mxu1  ;;  %v756_v13 = vpop.f32.mrb[29].mxu0 }
 0x120   : > { %1279 = vst.msk [vmem:[%s1926_s29 + $0xec] sm:$0xf] %vm1219_vm3, %v1598_v7  ;;  %1245 = vst.msk [vmem:[%s1926_s29 + $0x64] sm:$0xf] %vm1219_vm3, %v1564_v8  ;;  %v893_v14 = vadd.f32 %v1703_v12, %v1914_v38  ;;  %v757_v15 = vadd.f32 %v1914_v38, %v756_v13  ;;  %v884_v16 = vpop.f32.mrb[29].mxu1  ;;  %v1672_v17 = vpop.f32.mrb[30].mxu0 }
 0x121   : > { %1277 = vst.msk [vmem:[%s1926_s29 + $0xe4] sm:$0xf] %vm1219_vm3, %v1596_v10  ;;  %v929_v18 = vmax.f32 %v765_v11, 0.0  ;;  %v885_v19 = vadd.f32 %v1914_v38, %v884_v16  ;;  %v768_v20 = vadd.f32 %v1672_v17, %v1914_v38  ;;  %v1704_v21 = vpop.f32.mrb[30].mxu1  ;;  %v759_v22 = vpop.f32.mrb[31].mxu0 }
 0x122   : > { %v961_v23 = vmax.f32 %v893_v14, 0.0  ;;  %v927_v24 = vmax.f32 %v757_v15, 0.0  ;;  %v896_v25 = vadd.f32 %v1704_v21, %v1914_v38  ;;  %v760_v26 = vadd.f32 %v1914_v38, %v759_v22  ;;  %v887_v27 = vpop.f32.mrb[31].mxu1 }
 0x123   : > { %v1569_v28 = vpack.c.bf16 %v929_v18, %v929_v18  ;;  %v959_v29 = vmax.f32 %v885_v19, 0.0  ;;  %v930_v30 = vmax.f32 %v768_v20, 0.0  ;;  %v888_v31 = vadd.f32 %v1914_v38, %v887_v27 }
 0x124   : > { %v1601_v32 = vpack.c.bf16 %v961_v23, %v961_v23  ;;  %v1567_v33 = vpack.c.bf16 %v927_v24, %v927_v24  ;;  %v962_v34 = vmax.f32 %v896_v25, 0.0  ;;  %v928_v35 = vmax.f32 %v760_v26, 0.0 }
 0x125   : > { %1250 = vst.msk [vmem:[%s1926_s29 + $0x78] sm:$0xf] %vm1219_vm3, %v1569_v28  ;;  %v1599_v36 = vpack.c.bf16 %v959_v29, %v959_v29  ;;  %v1570_v37 = vpack.c.bf16 %v930_v30, %v930_v30  ;;  %v960_v39 = vmax.f32 %v888_v31, 0.0 }
 0x126   : > { %1282 = vst.msk [vmem:[%s1926_s29 + $0xf8] sm:$0xf] %vm1219_vm3, %v1601_v32  ;;  %1248 = vst.msk [vmem:[%s1926_s29 + $0x70] sm:$0xf] %vm1219_vm3, %v1567_v33  ;;  %v1602_v40 = vpack.c.bf16 %v962_v34, %v962_v34  ;;  %v1568_v41 = vpack.c.bf16 %v928_v35, %v928_v35 }
 0x127   : > { %1280 = vst.msk [vmem:[%s1926_s29 + $0xf0] sm:$0xf] %vm1219_vm3, %v1599_v36  ;;  %1251 = vst.msk [vmem:[%s1926_s29 + $0x7c] sm:$0xf] %vm1219_vm3, %v1570_v37  ;;  %v1600_v38 = vpack.c.bf16 %v960_v39, %v960_v39 }
 0x128   : > { %1283 = vst.msk [vmem:[%s1926_s29 + $0xfc] sm:$0xf] %vm1219_vm3, %v1602_v40  ;;  %1249 = vst.msk [vmem:[%s1926_s29 + $0x74] sm:$0xf] %vm1219_vm3, %v1568_v41 }
 0x129   : > { %1281 = vst.msk [vmem:[%s1926_s29 + $0xf4] sm:$0xf] %vm1219_vm3, %v1600_v38 }
 0x12a PF: > { %s13_s14 = sadd.s32 1, %s1790_s14   ;;  %s2128_s12 = smov %s1786_s13 }
 0x12b   : > { %p10_p5 = scmp.ge.s32.totalorder %s13_s14, 6   ;;  %s2129_s13 = smov %s2131_s15 }
 0x12d   :  { %12 = sbr.rel (!%p10_p5) target bundleno = 2 (0x2), region = 68 }

// kernel: encoder_decoder_forward.13
= control target key start
LH: loop header
LB: loop body
LE: loop exit
PB: predicated region body
PF: predicated region fallthrough
CT: control target
= control target key end

     0   :  { %s1894_s12 = smov 0   ;;  %s1896_s13 = smov 0   ;;  %s2184_s0 = inlined_call_operand.vmem [shape: bf16[512,288], index: 0, kind: input, shape index: {}]   ;;  %s2185_s1 = inlined_call_operand.vmem [shape: bf16[288,56], index: 1, kind: input, shape index: {}]   ;;  %s2186_s2 = inlined_call_operand.vmem [shape: f32[1,56], index: 2, kind: input, shape index: {}]   ;;  %s2187_s3 = inlined_call_operand.vmem [shape: bf16[512,56], index: 3, kind: output, shape index: {}]  }
   0x1   :  { %s1898_s14 = smov 0  }
   0x2 LB: > { %s32_s15 = sadd.s32 1, %s1868_s13  ;;  %p1407_p0 = scmp.ge.s32.totalorder %s1872_s14, 1  ;;  %s1872_s14 = sphi %s1898_s14, %s13_s14   ;;  %s1868_s13 = sphi %s1896_s13, %s2189_s13   ;;  %s1864_s12 = sphi %s1894_s12, %s2188_s12  }
   0x3   : > { %p34_p1 = scmp.ge.s32.totalorder %s32_s15, 2  ;;  %p191_p2 = scmp.lt.s32.totalorder %s1872_s14, 3 }
   0x5   : > { %s2191_s15 = smov (%p34_p1, %s32_s15), 0  ;;  %p192_p3 = pnand %p1407_p0, %p191_p2 }
   0x6   : > { %v1768_v0 = vld [vmem:[%s2185_s1 + $0x40] sm:$0xff] (!%p192_p3)   ;;  %s1408_s18 = sshll.u32 (!%p192_p3), %s1864_s12, 5  ;;  %v1770_v2 = vld [vmem:[%s2185_s1 + $0x48] sm:$0xff] (!%p192_p3)   ;;  %v1772_v4 = vld [vmem:[%s2185_s1 + $0x50] sm:$0xff] (!%p192_p3)   ;;  %vm723_vm0 = vcmask (!%p192_p3), 261120   ;;  %vm1254_vm1 = vcmask (!%p192_p3), 453632  }
   0x7   : > { %195 = sbr.rel (%p192_p3) target bundleno = 353 (0x161), region = 32  ;;  %v1769_v1 = vld [vmem:[%s2185_s1] sm:$0xff] (!%p192_p3)   ;;  %1561 = vmatprep.subr.bf16.mxu0 (!%p192_p3), %v1768_v0  ;;  %1727 = vmatprep.subr.bf16.mxu1 (!%p192_p3), %v1768_v0  ;;  %p236_p4 = scmp.lt.s32.totalorder (!%p192_p3), %s1408_s18, 63  ;;  %v1771_v3 = vld [vmem:[%s2185_s1 + $0x8] sm:$0xff] (!%p192_p3)   ;;  %v1773_v5 = vld [vmem:[%s2185_s1 + $0x10] sm:$0xff] (!%p192_p3)  }
   0x8   : > { %1562 = vmatpush3.bf16.msra.mxu0 (!%p192_p3), %v1769_v1  ;;  %1735 = vmatpush3.bf16.msra.mxu1 (!%p192_p3), %v1769_v1  ;;  %v1774_v6 = vld [vmem:[%s2185_s1 + $0x58] sm:$0xff] (!%p192_p3)   ;;  %v1776_v8 = vld [vmem:[%s2185_s1 + $0x60] sm:$0xff] (!%p192_p3)   ;;  %v1778_v10 = vld [vmem:[%s2185_s1 + $0x68] sm:$0xff] (!%p192_p3)  }
   0x9   : > { %1563 = vmatprep.subr.bf16.mxu0 (!%p192_p3), %v1770_v2  ;;  %1728 = vmatprep.subr.bf16.mxu1 (!%p192_p3), %v1770_v2  ;;  %v1775_v7 = vld [vmem:[%s2185_s1 + $0x18] sm:$0xff] (!%p192_p3)   ;;  %v1777_v9 = vld [vmem:[%s2185_s1 + $0x20] sm:$0xff] (!%p192_p3)   ;;  %v1779_v13 = vld [vmem:[%s2185_s1 + $0x28] sm:$0xff] (!%p192_p3)  }
   0xa   : > { %v1780_v14 = vld [vmem:[%s2185_s1 + $0x70] sm:$0xff] (!%p192_p3)   ;;  %v1782_v16 = vld [vmem:[%s2185_s1 + $0x78] sm:$0xff] (!%p192_p3)   ;;  %v1790_v18 = vld [vmem:[%s2185_s1 + $0x80] sm:$0xff] (!%p192_p3)  }
   0xb   : > { %v1781_v15 = vld [vmem:[%s2185_s1 + $0x30] sm:$0xff] (!%p192_p3)   ;;  %v1783_v17 = vld [vmem:[%s2185_s1 + $0x38] sm:$0xff] (!%p192_p3)   ;;  %v1803_v23 = vld [vmem:[%s2185_s1 + $0x88] sm:$0xff] (!%p192_p3)  }
   0xc   : > { %1564 = vmatpush3.bf16.msra.mxu0 (!%p192_p3), %v1771_v3  ;;  %1736 = vmatpush3.bf16.msra.mxu1 (!%p192_p3), %v1771_v3 }
   0xd   : > { %1565 = vmatprep.subr.bf16.mxu0 (!%p192_p3), %v1772_v4  ;;  %1729 = vmatprep.subr.bf16.mxu1 (!%p192_p3), %v1772_v4 }
   0xe   : > { %s2193_s18 = smov (!%p236_p4, %s1408_s18), 63 }
   0xf   : > { %s1743_s4 = smul.u32 12, %s2193_s18  ;;  %s1411_s9 = sshll.u32 %s2193_s18, 2 }
  0x10   : > { %1566 = vmatpush3.bf16.msra.mxu0 %v1773_v5  ;;  %1737 = vmatpush3.bf16.msra.mxu1 %v1773_v5  ;;  %s2067_s12 = scalar_lea.vmem %s2187_s3, %s1411_s9 }
  0x11   : > { %1567 = vmatprep.subr.bf16.mxu0 %v1774_v6  ;;  %1730 = vmatprep.subr.bf16.mxu1 %v1774_v6  ;;  %s1945_s11 = scalar_lea.vmem %s2184_s0, %s1743_s4 }
  0x12   : > { %v1786_v11 = vld [vmem:[%s1945_s11 + $0x4] ss:$12 sps:$4 sm:$0xff]   ;;  %v1784_v19 = vld [vmem:[%s1945_s11] ss:$12 sps:$4 sm:$0xff]   ;;  %v1791_v21 = vld [vmem:[%s1945_s11 + $0x1c] ss:$12 sps:$4 sm:$0xff]  }
  0x13   : > { %v1789_v12 = vld [vmem:[%s1945_s11 + $0x124] ss:$12 sps:$4 sm:$0xff]   ;;  %804 = vmatprep.mubr.bf16.mxu0 %v1786_v11  ;;  %v1787_v20 = vld [vmem:[%s1945_s11 + $0x120] ss:$12 sps:$4 sm:$0xff]   ;;  %v1793_v22 = vld [vmem:[%s1945_s11 + $0x13c] ss:$12 sps:$4 sm:$0xff]  }
  0x14   : > { %1568 = vmatpush3.bf16.msra.mxu0 %v1775_v7  ;;  %1738 = vmatpush3.bf16.msra.mxu1 %v1775_v7  ;;  %v1795_v24 = vld [vmem:[%s1945_s11 + $0x18] ss:$12 sps:$4 sm:$0xff]   ;;  %v1797_v26 = vld [vmem:[%s1945_s11 + $0x34] ss:$12 sps:$4 sm:$0xff]   ;;  %v1801_v28 = vld [vmem:[%s1945_s11 + $0x30] ss:$12 sps:$4 sm:$0xff]  }
  0x15   : > { %1569 = vmatprep.subr.bf16.mxu0 %v1776_v8  ;;  %1731 = vmatprep.subr.bf16.mxu1 %v1776_v8  ;;  %v1796_v25 = vld [vmem:[%s1945_s11 + $0x138] ss:$12 sps:$4 sm:$0xff]   ;;  %v1799_v27 = vld [vmem:[%s1945_s11 + $0x154] ss:$12 sps:$4 sm:$0xff]   ;;  %v1802_v29 = vld [vmem:[%s1945_s11 + $0x150] ss:$12 sps:$4 sm:$0xff]  }
  0x16   : > { %900 = vmatprep.mubr.bf16.mxu1 %v1789_v12  ;;  %v1804_v30 = vld [vmem:[%s1945_s11 + $0x4c] ss:$12 sps:$4 sm:$0xff]   ;;  %v1808_v32 = vld [vmem:[%s1945_s11 + $0x48] ss:$12 sps:$4 sm:$0xff]   ;;  %v1810_v34 = vld [vmem:[%s1945_s11 + $0x64] ss:$12 sps:$4 sm:$0xff]  }
  0x17   : > { %v1806_v31 = vld [vmem:[%s1945_s11 + $0x16c] ss:$12 sps:$4 sm:$0xff]   ;;  %v1809_v33 = vld [vmem:[%s1945_s11 + $0x168] ss:$12 sps:$4 sm:$0xff]   ;;  %v1819_v41 = vld [vmem:[%s1945_s11 + $0x50] ss:$12 sps:$4 sm:$0xff]  }
  0x18   : > { %1570 = vmatpush3.bf16.msra.mxu0 %v1777_v9  ;;  %1739 = vmatpush3.bf16.msra.mxu1 %v1777_v9  ;;  %v1812_v35 = vld [vmem:[%s1945_s11 + $0x8] ss:$12 sps:$4 sm:$0xff]   ;;  %v1813_v36 = vld [vmem:[%s1945_s11 + $0x60] ss:$12 sps:$4 sm:$0xff]   ;;  %v1817_v39 = vld [vmem:[%s1945_s11 + $0x38] ss:$12 sps:$4 sm:$0xff]  }
  0x19   : > { %1571 = vmatprep.subr.bf16.mxu0 %v1778_v10  ;;  %1732 = vmatprep.subr.bf16.mxu1 %v1778_v10  ;;  %v1814_v37 = vld [vmem:[%s1945_s11 + $0x20] ss:$12 sps:$4 sm:$0xff]   ;;  %v1815_v38 = vld [vmem:[%s1945_s11 + $0x7c] ss:$12 sps:$4 sm:$0xff]   ;;  %v1818_v40 = vld [vmem:[%s1945_s11 + $0x78] ss:$12 sps:$4 sm:$0xff]  }
  0x1a   : > { %v1820_v42 = vld [vmem:[%s1945_s11 + $0x94] ss:$12 sps:$4 sm:$0xff]   ;;  %v1823_v44 = vld [vmem:[%s1945_s11 + $0x90] ss:$12 sps:$4 sm:$0xff]   ;;  %v1825_v46 = vld [vmem:[%s1945_s11 + $0xac] ss:$12 sps:$4 sm:$0xff]  }
  0x1b   : > { %v1822_v43 = vld [vmem:[%s1945_s11 + $0x68] ss:$12 sps:$4 sm:$0xff]   ;;  %v1824_v45 = vld [vmem:[%s1945_s11 + $0x80] ss:$12 sps:$4 sm:$0xff]   ;;  %v1827_v47 = vld [vmem:[%s1945_s11 + $0x98] ss:$12 sps:$4 sm:$0xff]  }
  0x1c   : > { %1572 = vmatpush3.bf16.msra.mxu0 %v1779_v13  ;;  %1740 = vmatpush3.bf16.msra.mxu1 %v1779_v13  ;;  %v1828_v48 = vld [vmem:[%s1945_s11 + $0xa8] ss:$12 sps:$4 sm:$0xff]   ;;  %v1829_v49 = vld [vmem:[%s1945_s11 + $0xb0] ss:$12 sps:$4 sm:$0xff]   ;;  %v1833_v52 = vld [vmem:[%s1945_s11 + $0xc0] ss:$12 sps:$4 sm:$0xff]  }
  0x1d   : > { %1573 = vmatprep.subr.bf16.mxu0 %v1780_v14  ;;  %1733 = vmatprep.subr.bf16.mxu1 %v1780_v14  ;;  %v1830_v50 = vld [vmem:[%s1945_s11 + $0xc4] ss:$12 sps:$4 sm:$0xff]   ;;  %v1832_v51 = vld [vmem:[%s1945_s11 + $0xc8] ss:$12 sps:$4 sm:$0xff]   ;;  %v1834_v53 = vld [vmem:[%s1945_s11 + $0xe0] ss:$12 sps:$4 sm:$0xff]  }
  0x1e   : > { %v1835_v54 = vld [vmem:[%s1945_s11 + $0xdc] ss:$12 sps:$4 sm:$0xff]   ;;  %v1837_v55 = vld [vmem:[%s1945_s11 + $0xf8] ss:$12 sps:$4 sm:$0xff]   ;;  %v1840_v58 = vld [vmem:[%s1945_s11 + $0xf4] ss:$12 sps:$4 sm:$0xff]  }
  0x1f   : > { %v1838_v56 = vld [vmem:[%s1945_s11 + $0xd8] ss:$12 sps:$4 sm:$0xff]   ;;  %v1839_v57 = vld [vmem:[%s1945_s11 + $0x110] ss:$12 sps:$4 sm:$0xff]   ;;  %v1842_v59 = vld [vmem:[%s1945_s11 + $0x128] ss:$12 sps:$4 sm:$0xff]  }
  0x20   : > { %1574 = vmatpush3.bf16.msra.mxu0 %v1781_v15  ;;  %1741 = vmatpush3.bf16.msra.mxu1 %v1781_v15  ;;  %v1843_v60 = vld [vmem:[%s1945_s11 + $0xf0] ss:$12 sps:$4 sm:$0xff]   ;;  %v1844_v61 = vld [vmem:[%s1945_s11 + $0x140] ss:$12 sps:$4 sm:$0xff]   ;;  %v1847_v63 = vld [vmem:[%s1945_s11 + $0x158] ss:$12 sps:$4 sm:$0xff]  }
  0x21   : > { %1575 = vmatprep.subr.bf16.mxu0 %v1782_v16  ;;  %1734 = vmatprep.subr.bf16.mxu1 %v1782_v16  ;;  %v1845_v62 = vld [vmem:[%s1945_s11 + $0x10c] ss:$12 sps:$4 sm:$0xff]   ;;  %v1848_v0 = vld [vmem:[%s1945_s11 + $0x108] ss:$12 sps:$4 sm:$0xff]   ;;  %v1849_v1 = vld [vmem:[%s1945_s11 + $0x170] ss:$12 sps:$4 sm:$0xff]  }
  0x24   : > { %1576 = vmatpush3.bf16.msra.mxu0 %v1783_v17  ;;  %1742 = vmatpush3.bf16.msra.mxu1 %v1783_v17 }
  0x25   : > { %1691 = vmatprep.subr.bf16.mxu1 %v1790_v18 }
  0x27   : > { %805 = vmatmul.mubr.bf16.vlgmr.msra.gmra.mrb[0].mxu0 %v1784_v19  ;;  %901 = vmatmul.mubr.bf16.vlgmr.msra.gmra.mrb[0].mxu1 %v1787_v20 }
  0x28   : > { %1692 = vmatpush3.bf16.msra.mxu1 %v1790_v18  ;;  %812 = vmatprep.mubr.bf16.mxu0 %v1791_v21 }
  0x29   : > { %908 = vmatprep.mubr.bf16.mxu1 %v1793_v22  ;;  %1693 = vmatprep.subr.bf16.mxu1 %v1803_v23 }
  0x2c   : > { %1694 = vmatpush3.bf16.msra.mxu1 %v1803_v23 }
  0x2f   : > { %813 = vmatmul.mubr.bf16.gmra.mrb[4].mxu0 %v1795_v24  ;;  %909 = vmatmul.mubr.bf16.gmra.mrb[4].mxu1 %v1796_v25 }
  0x30   : > { %820 = vmatprep.mubr.bf16.mxu0 %v1797_v26  ;;  %916 = vmatprep.mubr.bf16.mxu1 %v1799_v27 }
  0x37   : > { %821 = vmatmul.mubr.bf16.gmra.mrb[8].mxu0 %v1801_v28  ;;  %917 = vmatmul.mubr.bf16.gmra.mrb[8].mxu1 %v1802_v29 }
  0x38   : > { %828 = vmatprep.mubr.bf16.mxu0 %v1804_v30  ;;  %924 = vmatprep.mubr.bf16.mxu1 %v1806_v31 }
  0x3f   : > { %829 = vmatmul.mubr.bf16.gmra.mrb[12].mxu0 %v1808_v32  ;;  %925 = vmatmul.mubr.bf16.gmra.mrb[12].mxu1 %v1809_v33 }
  0x40   : > { %836 = vmatprep.mubr.bf16.mxu0 %v1810_v34  ;;  %1695 = vmatprep.mubr.msk.bf16.mxu1 %vm723_vm0, %v1812_v35 }
  0x47   : > { %837 = vmatmul.mubr.bf16.gmra.mrb[16].mxu0 %v1813_v36  ;;  %1696 = vmatmul.mubr.msk.bf16.vlgmr.msra.gmra.mrb[16].mxu1 %vm723_vm0, %v1814_v37 }
  0x48   : > { %844 = vmatprep.mubr.bf16.mxu0 %v1815_v38  ;;  %1699 = vmatprep.mubr.msk.bf16.mxu1 %vm723_vm0, %v1817_v39 }
  0x4f   : > { %845 = vmatmul.mubr.bf16.gmra.mrb[20].mxu0 %v1818_v40  ;;  %1700 = vmatmul.mubr.msk.bf16.gmra.mrb[20].mxu1 %vm723_vm0, %v1819_v41 }
  0x50   : > { %852 = vmatprep.mubr.bf16.mxu0 %v1820_v42  ;;  %1703 = vmatprep.mubr.msk.bf16.mxu1 %vm723_vm0, %v1822_v43 }
  0x57   : > { %853 = vmatmul.mubr.bf16.gmra.mrb[24].mxu0 %v1823_v44  ;;  %1704 = vmatmul.mubr.msk.bf16.gmra.mrb[24].mxu1 %vm723_vm0, %v1824_v45 }
  0x58   : > { %860 = vmatprep.mubr.bf16.mxu0 %v1825_v46  ;;  %1707 = vmatprep.mubr.msk.bf16.mxu1 %vm723_vm0, %v1827_v47 }
  0x5f   : > { %861 = vmatmul.mubr.bf16.gmra.mrb[28].mxu0 %v1828_v48  ;;  %1708 = vmatmul.mubr.msk.bf16.gmra.mrb[28].mxu1 %vm723_vm0, %v1829_v49 }
  0x60   : > { %868 = vmatprep.mubr.bf16.mxu0 %v1830_v50  ;;  %1711 = vmatprep.mubr.msk.bf16.mxu1 %vm723_vm0, %v1832_v51  ;;  %v2057_v50 = vld [vmem:[%s2186_s2] ss:$0 sm:$0xff] }
  0x67   : > { %869 = vmatmul.mubr.bf16.gmra.mrb[32].mxu0 %v1833_v52  ;;  %1712 = vmatmul.mubr.msk.bf16.gmra.mrb[32].mxu1 %vm723_vm0, %v1834_v53 }
  0x68   : > { %876 = vmatprep.mubr.bf16.mxu0 %v1835_v54  ;;  %1715 = vmatprep.mubr.msk.bf16.mxu1 %vm723_vm0, %v1837_v55 }
  0x6f   : > { %877 = vmatmul.mubr.bf16.gmra.mrb[36].mxu0 %v1838_v56  ;;  %1716 = vmatmul.mubr.msk.bf16.gmra.mrb[36].mxu1 %vm723_vm0, %v1839_v57 }
  0x70   : > { %884 = vmatprep.mubr.bf16.mxu0 %v1840_v58  ;;  %1719 = vmatprep.mubr.msk.bf16.mxu1 %vm723_vm0, %v1842_v59 }
  0x77   : > { %885 = vmatmul.mubr.bf16.gmra.mrb[40].mxu0 %v1843_v60  ;;  %1720 = vmatmul.mubr.msk.bf16.gmra.mrb[40].mxu1 %vm723_vm0, %v1844_v61 }
  0x78   : > { %892 = vmatprep.mubr.bf16.mxu0 %v1845_v62  ;;  %1723 = vmatprep.mubr.msk.bf16.mxu1 %vm723_vm0, %v1847_v63 }
  0x7f   : > { %893 = vmatmul.mubr.bf16.gmra.mrb[44].mxu0 %v1848_v0  ;;  %1724 = vmatmul.mubr.msk.bf16.gmra.mrb[44].mxu1 %vm723_vm0, %v1849_v1 }
  0xfa   : > { %v1577_v2 = vpop.f32.mrb[0].mxu0  ;;  %v1649_v3 = vpop.f32.mrb[0].mxu1 }
  0xfb   : > { %v1578_v4 = vpop.f32.mrb[1].mxu0  ;;  %v1650_v5 = vpop.f32.mrb[1].mxu1 }
  0xfc   : > { %v1579_v6 = vadd.f32 %v1578_v4, %v1577_v2  ;;  %v1580_v7 = vpop.f32.mrb[2].mxu0  ;;  %v2038_v8 = vadd.f32 %v1650_v5, %v1649_v3  ;;  %v1652_v9 = vpop.f32.mrb[2].mxu1 }
  0xfd   : > { %v1581_v10 = vpop.f32.mrb[3].mxu0  ;;  %v1653_v11 = vpop.f32.mrb[3].mxu1 }
  0xfe   : > { %v1582_v12 = vadd.f32 %v1581_v10, %v1580_v7  ;;  %v2040_v13 = vadd.f32 %v1653_v11, %v1652_v9  ;;  %v807_v54 = vadd.f32 %v1579_v6, %v2057_v50 }
 0x100   : > { %v810_v63 = vadd.f32 %v1582_v12, %v2057_v50 }
 0x102   : > { %v1583_v14 = vpop.f32.mrb[4].mxu0  ;;  %v1655_v15 = vpop.f32.mrb[4].mxu1 }
 0x103   : > { %v1584_v16 = vpop.f32.mrb[5].mxu0  ;;  %v1656_v17 = vpop.f32.mrb[5].mxu1 }
 0x104   : > { %v1585_v18 = vadd.f32 %v1584_v16, %v1583_v14  ;;  %v1586_v19 = vpop.f32.mrb[6].mxu0  ;;  %v2042_v20 = vadd.f32 %v1656_v17, %v1655_v15  ;;  %v1658_v21 = vpop.f32.mrb[6].mxu1 }
 0x105   : > { %v1587_v22 = vpop.f32.mrb[7].mxu0  ;;  %v1659_v23 = vpop.f32.mrb[7].mxu1 }
 0x106   : > { %v1588_v24 = vadd.f32 %v1587_v22, %v1586_v19  ;;  %v2044_v25 = vadd.f32 %v1659_v23, %v1658_v21  ;;  %v815_v51 = vadd.f32 %v1585_v18, %v2057_v50 }
 0x108   : > { %v818_v58 = vadd.f32 %v1588_v24, %v2057_v50 }
 0x10a   : > { %v1589_v26 = vpop.f32.mrb[8].mxu0  ;;  %v1661_v27 = vpop.f32.mrb[8].mxu1 }
 0x10b   : > { %v1590_v28 = vpop.f32.mrb[9].mxu0  ;;  %v1662_v29 = vpop.f32.mrb[9].mxu1 }
 0x10c   : > { %v1591_v30 = vadd.f32 %v1590_v28, %v1589_v26  ;;  %v1592_v31 = vpop.f32.mrb[10].mxu0  ;;  %v2046_v32 = vadd.f32 %v1662_v29, %v1661_v27  ;;  %v1664_v33 = vpop.f32.mrb[10].mxu1 }
 0x10d   : > { %v1593_v34 = vpop.f32.mrb[11].mxu0  ;;  %v1665_v35 = vpop.f32.mrb[11].mxu1 }
 0x10e   : > { %v1594_v36 = vadd.f32 %v1593_v34, %v1592_v31  ;;  %v2048_v37 = vadd.f32 %v1665_v35, %v1664_v33  ;;  %v823_v18 = vadd.f32 %v1591_v30, %v2057_v50 }
 0x110   : > { %v826_v29 = vadd.f32 %v1594_v36, %v2057_v50 }
 0x112   : > { %v1595_v38 = vpop.f32.mrb[12].mxu0  ;;  %v1667_v39 = vpop.f32.mrb[12].mxu1 }
 0x113   : > { %v1596_v40 = vpop.f32.mrb[13].mxu0  ;;  %v1668_v41 = vpop.f32.mrb[13].mxu1 }
 0x114   : > { %v1597_v42 = vadd.f32 %v1596_v40, %v1595_v38  ;;  %v1598_v43 = vpop.f32.mrb[14].mxu0  ;;  %v2050_v44 = vadd.f32 %v1668_v41, %v1667_v39  ;;  %v1670_v45 = vpop.f32.mrb[14].mxu1 }
 0x115   : > { %v1599_v46 = vpop.f32.mrb[15].mxu0  ;;  %v1671_v47 = vpop.f32.mrb[15].mxu1 }
 0x116   : > { %v1600_v48 = vadd.f32 %v1599_v46, %v1598_v43  ;;  %v2052_v49 = vadd.f32 %v1671_v47, %v1670_v45  ;;  %v831_v14 = vadd.f32 %v1597_v42, %v2057_v50 }
 0x118   : > { %v834_v23 = vadd.f32 %v1600_v48, %v2057_v50 }
 0x11a   : > { %v1601_v52 = vpop.f32.mrb[16].mxu0  ;;  %v1697_v53 = vpop.f32.mrb[16].mxu1 }
 0x11b   : > { %v976_v55 = vadd.f32 %v1697_v53, %v815_v51  ;;  %v1602_v56 = vpop.f32.mrb[17].mxu0  ;;  %v967_v57 = vpop.f32.mrb[17].mxu1 }
 0x11c   : > { %v1603_v59 = vadd.f32 %v1602_v56, %v1601_v52  ;;  %v968_v60 = vadd.f32 %v967_v57, %v807_v54  ;;  %v1604_v61 = vpop.f32.mrb[18].mxu0  ;;  %v1698_v62 = vpop.f32.mrb[18].mxu1 }
 0x11d   : > { %v1096_v0 = vmax.f32 %v976_v55, 0.0  ;;  %v979_v1 = vadd.f32 %v1698_v62, %v818_v58  ;;  %v1605_v2 = vpop.f32.mrb[19].mxu0  ;;  %v970_v3 = vpop.f32.mrb[19].mxu1 }
 0x11e   : > { %v1094_v4 = vmax.f32 %v968_v60, 0.0  ;;  %v1606_v5 = vadd.f32 %v1605_v2, %v1604_v61  ;;  %v971_v6 = vadd.f32 %v970_v3, %v810_v63  ;;  %v839_v51 = vadd.f32 %v1603_v59, %v2057_v50 }
 0x11f   : > { %v1531_v7 = vpack.c.bf16 %v1096_v0, %v1096_v0  ;;  %v1097_v9 = vmax.f32 %v979_v1, 0.0 }
 0x120   : > { %v1529_v10 = vpack.c.bf16 %v1094_v4, %v1094_v4  ;;  %v1095_v11 = vmax.f32 %v971_v6, 0.0  ;;  %v842_v61 = vadd.f32 %v1606_v5, %v2057_v50 }
 0x121   : > { %1257 = vst.msk [vmem:[%s2067_s12 + $0x8] sm:$0xf] %vm1254_vm1, %v1531_v7  ;;  %v1532_v12 = vpack.c.bf16 %v1097_v9, %v1097_v9 }
 0x122   : > { %1255 = vst.msk [vmem:[%s2067_s12] sm:$0xf] %vm1254_vm1, %v1529_v10  ;;  %v1530_v15 = vpack.c.bf16 %v1095_v11, %v1095_v11  ;;  %v1607_v16 = vpop.f32.mrb[20].mxu0  ;;  %v1701_v17 = vpop.f32.mrb[20].mxu1 }
 0x123   : > { %1258 = vst.msk [vmem:[%s2067_s12 + $0xc] sm:$0xf] %vm1254_vm1, %v1532_v12  ;;  %v992_v19 = vadd.f32 %v1701_v17, %v831_v14  ;;  %v1608_v21 = vpop.f32.mrb[21].mxu0  ;;  %v983_v22 = vpop.f32.mrb[21].mxu1 }
 0x124   : > { %1256 = vst.msk [vmem:[%s2067_s12 + $0x4] sm:$0xf] %vm1254_vm1, %v1530_v15  ;;  %v1609_v24 = vadd.f32 %v1608_v21, %v1607_v16  ;;  %v984_v26 = vadd.f32 %v983_v22, %v823_v18  ;;  %v1610_v27 = vpop.f32.mrb[22].mxu0  ;;  %v1702_v28 = vpop.f32.mrb[22].mxu1 }
 0x125   : > { %v1100_v31 = vmax.f32 %v992_v19, 0.0  ;;  %v995_v33 = vadd.f32 %v1702_v28, %v834_v23  ;;  %v1611_v30 = vpop.f32.mrb[23].mxu0  ;;  %v986_v34 = vpop.f32.mrb[23].mxu1 }
 0x126   : > { %v1098_v35 = vmax.f32 %v984_v26, 0.0  ;;  %v1612_v38 = vadd.f32 %v1611_v30, %v1610_v27  ;;  %v987_v39 = vadd.f32 %v986_v34, %v826_v29  ;;  %v847_v46 = vadd.f32 %v1609_v24, %v2057_v50 }
 0x127   : > { %v1535_v40 = vpack.c.bf16 %v1100_v31, %v1100_v31  ;;  %v1101_v41 = vmax.f32 %v995_v33, 0.0 }
 0x128   : > { %v1533_v42 = vpack.c.bf16 %v1098_v35, %v1098_v35  ;;  %v1099_v43 = vmax.f32 %v987_v39, 0.0  ;;  %v850_v55 = vadd.f32 %v1612_v38, %v2057_v50 }
 0x129   : > { %1261 = vst.msk [vmem:[%s2067_s12 + $0x18] sm:$0xf] %vm1254_vm1, %v1535_v40  ;;  %v1536_v45 = vpack.c.bf16 %v1101_v41, %v1101_v41 }
 0x12a   : > { %1259 = vst.msk [vmem:[%s2067_s12 + $0x10] sm:$0xf] %vm1254_vm1, %v1533_v42  ;;  %v1534_v36 = vpack.c.bf16 %v1099_v43, %v1099_v43  ;;  %v1613_v47 = vpop.f32.mrb[24].mxu0  ;;  %v1705_v48 = vpop.f32.mrb[24].mxu1 }
 0x12b   : > { %1262 = vst.msk [vmem:[%s2067_s12 + $0x1c] sm:$0xf] %vm1254_vm1, %v1536_v45  ;;  %v1008_v52 = vadd.f32 %v1705_v48, %v847_v46  ;;  %v1614_v53 = vpop.f32.mrb[25].mxu0  ;;  %v999_v54 = vpop.f32.mrb[25].mxu1 }
 0x12c   : > { %1260 = vst.msk [vmem:[%s2067_s12 + $0x14] sm:$0xf] %vm1254_vm1, %v1534_v36  ;;  %v1615_v56 = vadd.f32 %v1614_v53, %v1613_v47  ;;  %v1000_v57 = vadd.f32 %v999_v54, %v839_v51  ;;  %v1616_v58 = vpop.f32.mrb[26].mxu0  ;;  %v1706_v60 = vpop.f32.mrb[26].mxu1 }
 0x12d   : > { %v1104_v62 = vmax.f32 %v1008_v52, 0.0  ;;  %v1011_v63 = vadd.f32 %v1706_v60, %v850_v55  ;;  %v1617_v59 = vpop.f32.mrb[27].mxu0  ;;  %v1002_v0 = vpop.f32.mrb[27].mxu1 }
 0x12e   : > { %v1102_v1 = vmax.f32 %v1000_v57, 0.0  ;;  %v1618_v2 = vadd.f32 %v1617_v59, %v1616_v58  ;;  %v1003_v3 = vadd.f32 %v1002_v0, %v842_v61  ;;  %v855_v14 = vadd.f32 %v1615_v56, %v2057_v50 }
 0x12f   : > { %v1539_v4 = vpack.c.bf16 %v1104_v62, %v1104_v62  ;;  %v1105_v6 = vmax.f32 %v1011_v63, 0.0 }
 0x130   : > { %v1537_v7 = vpack.c.bf16 %v1102_v1, %v1102_v1  ;;  %v1103_v9 = vmax.f32 %v1003_v3, 0.0  ;;  %v858_v22 = vadd.f32 %v1618_v2, %v2057_v50 }
 0x131   : > { %1265 = vst.msk [vmem:[%s2067_s12 + $0x28] sm:$0xf] %vm1254_vm1, %v1539_v4  ;;  %v1540_v10 = vpack.c.bf16 %v1105_v6, %v1105_v6 }
 0x132   : > { %1263 = vst.msk [vmem:[%s2067_s12 + $0x20] sm:$0xf] %vm1254_vm1, %v1537_v7  ;;  %v1538_v11 = vpack.c.bf16 %v1103_v9, %v1103_v9  ;;  %v1619_v5 = vpop.f32.mrb[28].mxu0  ;;  %v1709_v12 = vpop.f32.mrb[28].mxu1 }
 0x133   : > { %1266 = vst.msk [vmem:[%s2067_s12 + $0x2c] sm:$0xf] %vm1254_vm1, %v1540_v10  ;;  %v1620_v15 = vpop.f32.mrb[29].mxu0  ;;  %v1015_v16 = vpop.f32.mrb[29].mxu1 }
 0x134   : > { %1264 = vst.msk [vmem:[%s2067_s12 + $0x24] sm:$0xf] %vm1254_vm1, %v1538_v11  ;;  %v1621_v17 = vadd.f32 %v1620_v15, %v1619_v5  ;;  %v1016_v18 = vadd.f32 %v1015_v16, %v855_v14  ;;  %v1622_v19 = vpop.f32.mrb[30].mxu0  ;;  %v1710_v21 = vpop.f32.mrb[30].mxu1  ;;  %v911_v14 = vadd.f32 %v2042_v20, %v2057_v50 }
 0x135   : > { %v1623_v23 = vpop.f32.mrb[31].mxu0  ;;  %v1018_v24 = vpop.f32.mrb[31].mxu1 }
 0x136   : > { %v863_v26 = vadd.f32 %v1621_v17, %v2057_v50  ;;  %v1106_v27 = vmax.f32 %v1016_v18, 0.0  ;;  %v1624_v28 = vadd.f32 %v1623_v23, %v1622_v19  ;;  %v1019_v29 = vadd.f32 %v1018_v24, %v858_v22 }
 0x137   : > { %v903_v19 = vadd.f32 %v2038_v8, %v2057_v50  ;;  %v914_v24 = vadd.f32 %v2044_v25, %v2057_v50  ;;  %v906_v8 = vadd.f32 %v2040_v13, %v2057_v50 }
 0x138   : > { %v1024_v31 = vadd.f32 %v1709_v12, %v863_v26  ;;  %v1541_v33 = vpack.c.bf16 %v1106_v27, %v1106_v27  ;;  %v866_v30 = vadd.f32 %v1624_v28, %v2057_v50  ;;  %v1107_v34 = vmax.f32 %v1019_v29, 0.0 }
 0x13a   : > { %v1108_v35 = vmax.f32 %v1024_v31, 0.0  ;;  %1267 = vst.msk [vmem:[%s2067_s12 + $0x30] sm:$0xf] %vm1254_vm1, %v1541_v33  ;;  %v1027_v38 = vadd.f32 %v1710_v21, %v866_v30  ;;  %v1542_v39 = vpack.c.bf16 %v1107_v34, %v1107_v34  ;;  %v1625_v40 = vpop.f32.mrb[32].mxu0  ;;  %v1713_v41 = vpop.f32.mrb[32].mxu1 }
 0x13b   : > { %v1626_v42 = vpop.f32.mrb[33].mxu0  ;;  %v1031_v43 = vpop.f32.mrb[33].mxu1 }
 0x13c   : > { %v1543_v45 = vpack.c.bf16 %v1108_v35, %v1108_v35  ;;  %v1109_v46 = vmax.f32 %v1027_v38, 0.0  ;;  %1268 = vst.msk [vmem:[%s2067_s12 + $0x34] sm:$0xf] %vm1254_vm1, %v1542_v39  ;;  %v1627_v36 = vadd.f32 %v1626_v42, %v1625_v40  ;;  %v1628_v47 = vpop.f32.mrb[34].mxu0  ;;  %v1714_v48 = vpop.f32.mrb[34].mxu1 }
 0x13d   : > { %v1629_v51 = vpop.f32.mrb[35].mxu0  ;;  %v1034_v52 = vpop.f32.mrb[35].mxu1 }
 0x13e   : > { %1269 = vst.msk [vmem:[%s2067_s12 + $0x38] sm:$0xf] %vm1254_vm1, %v1543_v45  ;;  %v1544_v53 = vpack.c.bf16 %v1109_v46, %v1109_v46  ;;  %v871_v54 = vadd.f32 %v1627_v36, %v2057_v50  ;;  %v1630_v55 = vadd.f32 %v1629_v51, %v1628_v47 }
 0x140   : > { %1270 = vst.msk [vmem:[%s2067_s12 + $0x3c] sm:$0xf] %vm1254_vm1, %v1544_v53  ;;  %v1032_v56 = vadd.f32 %v1031_v43, %v871_v54  ;;  %v874_v57 = vadd.f32 %v1630_v55, %v2057_v50  ;;  %v919_v55 = vadd.f32 %v2046_v32, %v2057_v50 }
 0x142   : > { %v1110_v58 = vmax.f32 %v1032_v56, 0.0  ;;  %v1035_v60 = vadd.f32 %v1034_v52, %v874_v57  ;;  %v1631_v61 = vpop.f32.mrb[36].mxu0  ;;  %v2115_v62 = vpop.f32.mrb[36].mxu1 }
 0x143   : > { %v1632_v63 = vpop.f32.mrb[37].mxu0  ;;  %v1047_v59 = vpop.f32.mrb[37].mxu1 }
 0x144   : > { %v1545_v0 = vpack.c.bf16 %v1110_v58, %v1110_v58  ;;  %v1111_v1 = vmax.f32 %v1035_v60, 0.0  ;;  %v1633_v2 = vadd.f32 %v1632_v63, %v1631_v61  ;;  %v1634_v3 = vpop.f32.mrb[38].mxu0  ;;  %v2117_v4 = vpop.f32.mrb[38].mxu1 }
 0x145   : > { %v1635_v6 = vpop.f32.mrb[39].mxu0  ;;  %v1050_v7 = vpop.f32.mrb[39].mxu1 }
 0x146   : > { %1271 = vst.msk [vmem:[%s2067_s12 + $0x40] sm:$0xf] %vm1254_vm1, %v1545_v0  ;;  %v1546_v9 = vpack.c.bf16 %v1111_v1, %v1111_v1  ;;  %v879_v10 = vadd.f32 %v1633_v2, %v2057_v50  ;;  %v1636_v11 = vadd.f32 %v1635_v6, %v1634_v3 }
 0x148   : > { %1272 = vst.msk [vmem:[%s2067_s12 + $0x44] sm:$0xf] %vm1254_vm1, %v1546_v9  ;;  %v1040_v5 = vadd.f32 %v1713_v41, %v879_v10  ;;  %v882_v12 = vadd.f32 %v1636_v11, %v2057_v50 }
 0x14a   : > { %v1112_v15 = vmax.f32 %v1040_v5, 0.0  ;;  %v1043_v16 = vadd.f32 %v1714_v48, %v882_v12  ;;  %v1637_v17 = vpop.f32.mrb[40].mxu0  ;;  %v1721_v18 = vpop.f32.mrb[40].mxu1  ;;  %v927_v48 = vadd.f32 %v2050_v44, %v2057_v50  ;;  %v930_v44 = vadd.f32 %v2052_v49, %v2057_v50 }
 0x14b   : > { %v1072_v21 = vadd.f32 %v1721_v18, %v911_v14  ;;  %v1638_v22 = vpop.f32.mrb[41].mxu0  ;;  %v1063_v23 = vpop.f32.mrb[41].mxu1 }
 0x14c   : > { %v1547_v26 = vpack.c.bf16 %v1112_v15, %v1112_v15  ;;  %v1113_v27 = vmax.f32 %v1043_v16, 0.0  ;;  %v1639_v28 = vadd.f32 %v1638_v22, %v1637_v17  ;;  %v1064_v29 = vadd.f32 %v1063_v23, %v903_v19  ;;  %v1640_v20 = vpop.f32.mrb[42].mxu0  ;;  %v1722_v31 = vpop.f32.mrb[42].mxu1 }
 0x14d   : > { %v1120_v33 = vmax.f32 %v1072_v21, 0.0  ;;  %v1075_v30 = vadd.f32 %v1722_v31, %v914_v24  ;;  %v1641_v34 = vpop.f32.mrb[43].mxu0  ;;  %v1066_v35 = vpop.f32.mrb[43].mxu1 }
 0x14e   : > { %1273 = vst.msk [vmem:[%s2067_s12 + $0x48] sm:$0xf] %vm1254_vm1, %v1547_v26  ;;  %v1548_v38 = vpack.c.bf16 %v1113_v27, %v1113_v27  ;;  %v887_v25 = vadd.f32 %v1639_v28, %v2057_v50  ;;  %v1118_v39 = vmax.f32 %v1064_v29, 0.0  ;;  %v1642_v40 = vadd.f32 %v1641_v34, %v1640_v20 }
 0x14f   : > { %v1555_v41 = vpack.c.bf16 %v1120_v33, %v1120_v33  ;;  %v1121_v42 = vmax.f32 %v1075_v30, 0.0  ;;  %v1067_v43 = vadd.f32 %v1066_v35, %v906_v8 }
 0x150   : > { %1274 = vst.msk [vmem:[%s2067_s12 + $0x4c] sm:$0xf] %vm1254_vm1, %v1548_v38  ;;  %v1048_v45 = vadd.f32 %v1047_v59, %v887_v25  ;;  %v1553_v46 = vpack.c.bf16 %v1118_v39, %v1118_v39  ;;  %v890_v36 = vadd.f32 %v1642_v40, %v2057_v50 }
 0x151   : > { %1281 = vst.msk [vmem:[%s2067_s12 + $0x68] sm:$0xf] %vm1254_vm1, %v1555_v41  ;;  %v1556_v13 = vpack.c.bf16 %v1121_v42, %v1121_v42  ;;  %v1119_v47 = vmax.f32 %v1067_v43, 0.0 }
 0x152   : > { %v1114_v51 = vmax.f32 %v1048_v45, 0.0  ;;  %1279 = vst.msk [vmem:[%s2067_s12 + $0x60] sm:$0xf] %vm1254_vm1, %v1553_v46  ;;  %v1051_v52 = vadd.f32 %v1050_v7, %v890_v36  ;;  %v1643_v53 = vpop.f32.mrb[44].mxu0  ;;  %v1725_v54 = vpop.f32.mrb[44].mxu1  ;;  %v922_v7 = vadd.f32 %v2048_v37, %v2057_v50 }
 0x153   : > { %1282 = vst.msk [vmem:[%s2067_s12 + $0x6c] sm:$0xf] %vm1254_vm1, %v1556_v13  ;;  %v1554_v56 = vpack.c.bf16 %v1119_v47, %v1119_v47  ;;  %v1088_v57 = vadd.f32 %v1725_v54, %v927_v48  ;;  %v1644_v58 = vpop.f32.mrb[45].mxu0  ;;  %v1079_v60 = vpop.f32.mrb[45].mxu1 }
 0x154   : > { %v1549_v61 = vpack.c.bf16 %v1114_v51, %v1114_v51  ;;  %v1115_v63 = vmax.f32 %v1051_v52, 0.0  ;;  %v1645_v59 = vadd.f32 %v1644_v58, %v1643_v53  ;;  %v1080_v0 = vadd.f32 %v1079_v60, %v919_v55  ;;  %v1646_v1 = vpop.f32.mrb[46].mxu0  ;;  %v1726_v2 = vpop.f32.mrb[46].mxu1 }
 0x155   : > { %1280 = vst.msk [vmem:[%s2067_s12 + $0x64] sm:$0xf] %vm1254_vm1, %v1554_v56  ;;  %v1124_v32 = vmax.f32 %v1088_v57, 0.0  ;;  %v1091_v3 = vadd.f32 %v1726_v2, %v930_v44  ;;  %v1647_v6 = vpop.f32.mrb[47].mxu0  ;;  %v1082_v9 = vpop.f32.mrb[47].mxu1 }
 0x156   : > { %1275 = vst.msk [vmem:[%s2067_s12 + $0x50] sm:$0xf] %vm1254_vm1, %v1549_v61  ;;  %v1550_v49 = vpack.c.bf16 %v1115_v63, %v1115_v63  ;;  %v895_v10 = vadd.f32 %v1645_v59, %v2057_v50  ;;  %v1122_v11 = vmax.f32 %v1080_v0, 0.0  ;;  %v1648_v5 = vadd.f32 %v1647_v6, %v1646_v1 }
 0x157   : > { %v1559_v12 = vpack.c.bf16 %v1124_v32, %v1124_v32  ;;  %v1125_v14 = vmax.f32 %v1091_v3, 0.0  ;;  %v1083_v15 = vadd.f32 %v1082_v9, %v922_v7 }
 0x158   : > { %1276 = vst.msk [vmem:[%s2067_s12 + $0x54] sm:$0xf] %vm1254_vm1, %v1550_v49  ;;  %v1056_v16 = vadd.f32 %v2115_v62, %v895_v10  ;;  %v1557_v37 = vpack.c.bf16 %v1122_v11, %v1122_v11  ;;  %v898_v17 = vadd.f32 %v1648_v5, %v2057_v50 }
 0x159   : > { %1285 = vst.msk [vmem:[%s2067_s12 + $0x78] sm:$0xf] %vm1254_vm1, %v1559_v12  ;;  %v1560_v18 = vpack.c.bf16 %v1125_v14, %v1125_v14  ;;  %v1123_v19 = vmax.f32 %v1083_v15, 0.0 }
 0x15a   : > { %v1116_v21 = vmax.f32 %v1056_v16, 0.0  ;;  %1283 = vst.msk [vmem:[%s2067_s12 + $0x70] sm:$0xf] %vm1254_vm1, %v1557_v37  ;;  %v1059_v22 = vadd.f32 %v2117_v4, %v898_v17 }
 0x15b   : > { %1286 = vst.msk [vmem:[%s2067_s12 + $0x7c] sm:$0xf] %vm1254_vm1, %v1560_v18  ;;  %v1558_v23 = vpack.c.bf16 %v1123_v19, %v1123_v19 }
 0x15c   : > { %v1551_v24 = vpack.c.bf16 %v1116_v21, %v1116_v21  ;;  %v1117_v26 = vmax.f32 %v1059_v22, 0.0 }
 0x15d   : > { %1284 = vst.msk [vmem:[%s2067_s12 + $0x74] sm:$0xf] %vm1254_vm1, %v1558_v23 }
 0x15e   : > { %1277 = vst.msk [vmem:[%s2067_s12 + $0x58] sm:$0xf] %vm1254_vm1, %v1551_v24  ;;  %v1552_v62 = vpack.c.bf16 %v1117_v26, %v1117_v26 }
 0x160   : > { %1278 = vst.msk [vmem:[%s2067_s12 + $0x5c] sm:$0xf] %vm1254_vm1, %v1552_v62 }
 0x161 PF: > { %s13_s14 = sadd.s32 1, %s1872_s14   ;;  %s2188_s12 = smov %s1868_s13 }
 0x162   : > { %p10_p5 = scmp.ge.s32.totalorder %s13_s14, 4   ;;  %s2189_s13 = smov %s2191_s15 }
 0x164   :  { %12 = sbr.rel (!%p10_p5) target bundleno = 2 (0x2), region = 68 }

// kernel: encoder_decoder_forward.14
= control target key start
LH: loop header
LB: loop body
LE: loop exit
PB: predicated region body
PF: predicated region fallthrough
CT: control target
= control target key end

     0   :  { %s1218_s12 = smov 0   ;;  %s1220_s13 = smov 0   ;;  %s1407_s0 = inlined_call_operand.vmem [shape: bf16[128,504], index: 0, kind: input, shape index: {}]   ;;  %s1408_s1 = inlined_call_operand.vmem [shape: bf16[504,56], index: 1, kind: input, shape index: {}]   ;;  %s1409_s2 = inlined_call_operand.vmem [shape: f32[1,56], index: 2, kind: input, shape index: {}]   ;;  %s1410_s3 = inlined_call_operand.vmem [shape: bf16[128,56], index: 3, kind: output, shape index: {}]  }
   0x1   :  { %s1222_s14 = smov 0  }
   0x2 LB: > { %s32_s15 = sadd.s32 1, %s1192_s13  ;;  %p935_p0 = scmp.ge.s32.totalorder %s1196_s14, 1  ;;  %s1196_s14 = sphi %s1222_s14, %s13_s14   ;;  %s1192_s13 = sphi %s1220_s13, %s1412_s13   ;;  %s1188_s12 = sphi %s1218_s12, %s1411_s12  }
   0x3   : > { %p34_p1 = scmp.ge.s32.totalorder %s32_s15, 2  ;;  %p191_p2 = scmp.lt.s32.totalorder %s1196_s14, 3 }
   0x5   : > { %s1414_s15 = smov (%p34_p1, %s32_s15), 0  ;;  %p192_p3 = pnand %p935_p0, %p191_p2 }
   0x6   : > { %v1118_v0 = vld [vmem:[%s1408_s1 + $0x40] sm:$0xff] (!%p192_p3)   ;;  %v1122_v4 = vld [vmem:[%s1408_s1 + $0x48] sm:$0xff] (!%p192_p3)   ;;  %v1126_v8 = vld [vmem:[%s1408_s1 + $0x50] sm:$0xff] (!%p192_p3)   ;;  %s936_s25 = sshll.u32 (!%p192_p3), %s1188_s12, 3  ;;  %vm632_vm0 = vcmask (!%p192_p3), 1043456   ;;  %vm619_vm1 = vcmask (!%p192_p3), 982016  }
   0x7   : > { %195 = sbr.rel (%p192_p3) target bundleno = 290 (0x122), region = 32  ;;  %v1119_v1 = vld [vmem:[%s1408_s1 + $0xc0] sm:$0xff] (!%p192_p3)   ;;  %1013 = vmatprep.subr.bf16.mxu0 (!%p192_p3), %v1118_v0  ;;  %v1123_v5 = vld [vmem:[%s1408_s1 + $0xc8] sm:$0xff] (!%p192_p3)   ;;  %v1127_v9 = vld [vmem:[%s1408_s1 + $0xd0] sm:$0xff] (!%p192_p3)   ;;  %p236_p4 = scmp.lt.s32.totalorder (!%p192_p3), %s936_s25, 15  ;;  %vm806_vm2 = vcmask (!%p192_p3), 453632  }
   0x8   : > { %v1120_v2 = vld [vmem:[%s1408_s1] sm:$0xff] (!%p192_p3)   ;;  %1053 = vmatprep.subr.bf16.mxu1 (!%p192_p3), %v1119_v1  ;;  %v1124_v6 = vld [vmem:[%s1408_s1 + $0x8] sm:$0xff] (!%p192_p3)   ;;  %v1128_v10 = vld [vmem:[%s1408_s1 + $0x10] sm:$0xff] (!%p192_p3)  }
   0x9   : > { %v1121_v3 = vld [vmem:[%s1408_s1 + $0x80] sm:$0xff] (!%p192_p3)   ;;  %1014 = vmatpush3.bf16.msra.mxu0 (!%p192_p3), %v1120_v2  ;;  %v1125_v7 = vld [vmem:[%s1408_s1 + $0x88] sm:$0xff] (!%p192_p3)   ;;  %v1129_v11 = vld [vmem:[%s1408_s1 + $0x90] sm:$0xff] (!%p192_p3)  }
   0xa   : > { %1054 = vmatpush3.bf16.msra.mxu1 (!%p192_p3), %v1121_v3  ;;  %1015 = vmatprep.subr.bf16.mxu0 (!%p192_p3), %v1122_v4  ;;  %v1130_v12 = vld [vmem:[%s1408_s1 + $0x58] sm:$0xff] (!%p192_p3)   ;;  %v1134_v16 = vld [vmem:[%s1408_s1 + $0x60] sm:$0xff] (!%p192_p3)   ;;  %v1138_v20 = vld [vmem:[%s1408_s1 + $0x68] sm:$0xff] (!%p192_p3)  }
   0xb   : > { %1055 = vmatprep.subr.bf16.mxu1 (!%p192_p3), %v1123_v5  ;;  %v1131_v13 = vld [vmem:[%s1408_s1 + $0xd8] sm:$0xff] (!%p192_p3)   ;;  %v1135_v17 = vld [vmem:[%s1408_s1 + $0xe0] sm:$0xff] (!%p192_p3)   ;;  %v1139_v21 = vld [vmem:[%s1408_s1 + $0xe8] sm:$0xff] (!%p192_p3)  }
   0xc   : > { %v1132_v14 = vld [vmem:[%s1408_s1 + $0x18] sm:$0xff] (!%p192_p3)   ;;  %v1136_v18 = vld [vmem:[%s1408_s1 + $0x20] sm:$0xff] (!%p192_p3)   ;;  %v1140_v22 = vld [vmem:[%s1408_s1 + $0x28] sm:$0xff] (!%p192_p3)  }
   0xd   : > { %1016 = vmatpush3.bf16.msra.mxu0 (!%p192_p3), %v1124_v6  ;;  %v1133_v15 = vld [vmem:[%s1408_s1 + $0x98] sm:$0xff] (!%p192_p3)   ;;  %v1137_v19 = vld [vmem:[%s1408_s1 + $0xa0] sm:$0xff] (!%p192_p3)   ;;  %v1141_v23 = vld [vmem:[%s1408_s1 + $0xa8] sm:$0xff] (!%p192_p3)  }
   0xe   : > { %1056 = vmatpush3.bf16.msra.mxu1 %v1125_v7  ;;  %1017 = vmatprep.subr.bf16.mxu0 %v1126_v8  ;;  %s1416_s25 = smov (!%p236_p4, %s936_s25), 15  ;;  %v1142_v24 = vld [vmem:[%s1408_s1 + $0x70] sm:$0xff]   ;;  %v1146_v28 = vld [vmem:[%s1408_s1 + $0x78] sm:$0xff]   ;;  %v1366_v49 = vld [vmem:[%s1409_s2] ss:$0 sm:$0xff] }
   0xf   : > { %1057 = vmatprep.subr.bf16.mxu1 %v1127_v9  ;;  %v1143_v25 = vld [vmem:[%s1408_s1 + $0xf0] sm:$0xff]   ;;  %s1004_s24 = sshll.u32 %s1416_s25, 4  ;;  %v1147_v29 = vld [vmem:[%s1408_s1 + $0xf8] ss:$0 sps:$4 sm:$0xff]   ;;  %s940_s17 = sshll.u32 %s1416_s25, 2 }
  0x10   : > { %v1144_v26 = vld [vmem:[%s1408_s1 + $0x30] sm:$0xff]   ;;  %s1335_s12 = scalar_lea.vmem %s1407_s0, %s1004_s24  ;;  %v1148_v30 = vld [vmem:[%s1408_s1 + $0x38] sm:$0xff]   ;;  %s1374_s20 = scalar_lea.vmem %s1410_s3, %s940_s17 }
  0x11   : > { %1018 = vmatpush3.bf16.msra.mxu0 %v1128_v10  ;;  %v1145_v27 = vld [vmem:[%s1408_s1 + $0xb0] sm:$0xff]   ;;  %v1149_v31 = vld [vmem:[%s1408_s1 + $0xb8] sm:$0xff]  }
  0x12   : > { %1058 = vmatpush3.bf16.msra.mxu1 %v1129_v11  ;;  %1019 = vmatprep.subr.bf16.mxu0 %v1130_v12  ;;  %v1150_v32 = vld [vmem:[%s1335_s12] ss:$16 sps:$4 sm:$0xff]   ;;  %v1152_v33 = vld [vmem:[%s1335_s12 + $0x4] ss:$16 sps:$4 sm:$0xff]   ;;  %v1153_v34 = vld [vmem:[%s1335_s12 + $0x8] ss:$16 sps:$4 sm:$0xff]  }
  0x13   : > { %1059 = vmatprep.subr.bf16.mxu1 %v1131_v13  ;;  %668 = vmatprep.mubr.bf16.mxu0 %v1152_v33  ;;  %v1155_v35 = vld [vmem:[%s1335_s12 + $0xc] ss:$16 sps:$4 sm:$0xff]   ;;  %v1156_v36 = vld [vmem:[%s1335_s12 + $0x24] ss:$16 sps:$4 sm:$0xff]   ;;  %v1160_v38 = vld [vmem:[%s1335_s12 + $0x20] ss:$16 sps:$4 sm:$0xff]  }
  0x14   : > { %990 = vmatprep.mubr.msk.bf16.mxu1 %vm619_vm1, %v1155_v35  ;;  %v1158_v37 = vld [vmem:[%s1335_s12 + $0x2c] ss:$16 sps:$4 sm:$0xff]   ;;  %v1162_v39 = vld [vmem:[%s1335_s12 + $0x44] ss:$16 sps:$4 sm:$0xff]   ;;  %v1161_v40 = vld [vmem:[%s1335_s12 + $0x28] ss:$16 sps:$4 sm:$0xff]  }
  0x15   : > { %1020 = vmatpush3.bf16.msra.mxu0 %v1132_v14  ;;  %v1164_v41 = vld [vmem:[%s1335_s12 + $0x4c] ss:$16 sps:$4 sm:$0xff]   ;;  %v1166_v42 = vld [vmem:[%s1335_s12 + $0x40] ss:$16 sps:$4 sm:$0xff]   ;;  %v1168_v43 = vld [vmem:[%s1335_s12 + $0x64] ss:$16 sps:$4 sm:$0xff]  }
  0x16   : > { %1060 = vmatpush3.bf16.msra.mxu1 %v1133_v15  ;;  %1021 = vmatprep.subr.bf16.mxu0 %v1134_v16  ;;  %v1167_v44 = vld [vmem:[%s1335_s12 + $0x48] ss:$16 sps:$4 sm:$0xff]   ;;  %v1170_v45 = vld [vmem:[%s1335_s12 + $0x6c] ss:$16 sps:$4 sm:$0xff]   ;;  %v1172_v46 = vld [vmem:[%s1335_s12 + $0x60] ss:$16 sps:$4 sm:$0xff]  }
  0x17   : > { %1061 = vmatprep.subr.bf16.mxu1 %v1135_v17  ;;  %v1173_v47 = vld [vmem:[%s1335_s12 + $0x68] ss:$16 sps:$4 sm:$0xff]  }
  0x19   : > { %1022 = vmatpush3.bf16.msra.mxu0 %v1136_v18 }
  0x1a   : > { %1062 = vmatpush3.bf16.msra.mxu1 %v1137_v19  ;;  %1023 = vmatprep.subr.bf16.mxu0 %v1138_v20 }
  0x1b   : > { %1063 = vmatprep.subr.bf16.mxu1 %v1139_v21 }
  0x1d   : > { %1024 = vmatpush3.bf16.msra.mxu0 %v1140_v22 }
  0x1e   : > { %1064 = vmatpush3.bf16.msra.mxu1 %v1141_v23  ;;  %1025 = vmatprep.subr.bf16.mxu0 %v1142_v24 }
  0x1f   : > { %1065 = vmatprep.subr.bf16.mxu1 %v1143_v25 }
  0x21   : > { %1026 = vmatpush3.bf16.msra.mxu0 %v1144_v26 }
  0x22   : > { %1066 = vmatpush3.bf16.msra.mxu1 %v1145_v27  ;;  %1027 = vmatprep.subr.bf16.mxu0 %v1146_v28 }
  0x23   : > { %1093 = vmatprep.subr.msk.bf16.mxu1 %vm632_vm0, %v1147_v29 }
  0x25   : > { %1028 = vmatpush3.bf16.msra.mxu0 %v1148_v30 }
  0x26   : > { %1068 = vmatpush3.bf16.msra.mxu1 %v1149_v31 }
  0x28   : > { %669 = vmatmul.mubr.bf16.vlgmr.msra.gmra.mrb[0].mxu0 %v1150_v32 }
  0x29   : > { %734 = vmatmul.mubr.bf16.vlgmr.msra.gmra.mrb[0].mxu1 %v1153_v34  ;;  %676 = vmatprep.mubr.bf16.mxu0 %v1156_v36 }
  0x2a   : > { %991 = vmatprep.mubr.msk.bf16.mxu1 %vm619_vm1, %v1158_v37 }
  0x30   : > { %677 = vmatmul.mubr.bf16.gmra.mrb[4].mxu0 %v1160_v38 }
  0x31   : > { %684 = vmatprep.mubr.bf16.mxu0 %v1162_v39  ;;  %742 = vmatmul.mubr.bf16.gmra.mrb[4].mxu1 %v1161_v40 }
  0x32   : > { %992 = vmatprep.mubr.msk.bf16.mxu1 %vm619_vm1, %v1164_v41 }
  0x38   : > { %685 = vmatmul.mubr.bf16.gmra.mrb[8].mxu0 %v1166_v42 }
  0x39   : > { %692 = vmatprep.mubr.bf16.mxu0 %v1168_v43  ;;  %750 = vmatmul.mubr.bf16.gmra.mrb[8].mxu1 %v1167_v44 }
  0x3a   : > { %993 = vmatprep.mubr.msk.bf16.mxu1 %vm619_vm1, %v1170_v45 }
  0x40   : > { %693 = vmatmul.mubr.bf16.gmra.mrb[12].mxu0 %v1172_v46 }
  0x41   : > { %758 = vmatmul.mubr.bf16.gmra.mrb[12].mxu1 %v1173_v47 }
  0xfb   : > { %v1029_v48 = vpop.f32.mrb[0].mxu0 }
  0xfc   : > { %v1030_v50 = vpop.f32.mrb[1].mxu0  ;;  %v1069_v51 = vpop.f32.mrb[0].mxu1 }
  0xfd   : > { %v1031_v52 = vadd.f32 %v1030_v50, %v1029_v48  ;;  %v1032_v53 = vpop.f32.mrb[2].mxu0  ;;  %v1070_v54 = vpop.f32.mrb[1].mxu1 }
  0xfe   : > { %v1033_v55 = vpop.f32.mrb[3].mxu0  ;;  %v1071_v57 = vadd.f32 %v1070_v54, %v1069_v51  ;;  %v1072_v58 = vpop.f32.mrb[2].mxu1 }
  0xff   : > { %v671_v56 = vadd.f32 %v1031_v52, %v1366_v49  ;;  %v1034_v59 = vadd.f32 %v1033_v55, %v1032_v53  ;;  %v1073_v60 = vpop.f32.mrb[3].mxu1 }
 0x100   : > { %v1074_v63 = vadd.f32 %v1073_v60, %v1072_v58 }
 0x101   : > { %v736_v61 = vadd.f32 %v1071_v57, %v671_v56  ;;  %v674_v62 = vadd.f32 %v1034_v59, %v1366_v49 }
 0x103   : > { %v766_v0 = vmax.f32 %v736_v61, 0.0  ;;  %v739_v1 = vadd.f32 %v1074_v63, %v674_v62  ;;  %v1035_v2 = vpop.f32.mrb[4].mxu0 }
 0x104   : > { %v1036_v3 = vpop.f32.mrb[5].mxu0  ;;  %v1075_v6 = vpop.f32.mrb[4].mxu1 }
 0x105   : > { %v1005_v4 = vpack.c.bf16 %v766_v0, %v766_v0  ;;  %v767_v5 = vmax.f32 %v739_v1, 0.0  ;;  %v1037_v7 = vadd.f32 %v1036_v3, %v1035_v2  ;;  %v1038_v8 = vpop.f32.mrb[6].mxu0  ;;  %v1076_v9 = vpop.f32.mrb[5].mxu1 }
 0x106   : > { %v1039_v10 = vpop.f32.mrb[7].mxu0  ;;  %v1077_v13 = vadd.f32 %v1076_v9, %v1075_v6  ;;  %v1078_v14 = vpop.f32.mrb[6].mxu1 }
 0x107   : > { %807 = vst.msk [vmem:[%s1374_s20] sm:$0xf] %vm806_vm2, %v1005_v4  ;;  %v1006_v11 = vpack.c.bf16 %v767_v5, %v767_v5  ;;  %v679_v12 = vadd.f32 %v1037_v7, %v1366_v49  ;;  %v1040_v15 = vadd.f32 %v1039_v10, %v1038_v8  ;;  %v1079_v16 = vpop.f32.mrb[7].mxu1 }
 0x108   : > { %v1080_v19 = vadd.f32 %v1079_v16, %v1078_v14 }
 0x109   : > { %808 = vst.msk [vmem:[%s1374_s20 + $0x4] sm:$0xf] %vm806_vm2, %v1006_v11  ;;  %v744_v17 = vadd.f32 %v1077_v13, %v679_v12  ;;  %v682_v18 = vadd.f32 %v1040_v15, %v1366_v49 }
 0x10b   : > { %v768_v20 = vmax.f32 %v744_v17, 0.0  ;;  %v747_v21 = vadd.f32 %v1080_v19, %v682_v18  ;;  %v1041_v22 = vpop.f32.mrb[8].mxu0 }
 0x10c   : > { %v1042_v23 = vpop.f32.mrb[9].mxu0  ;;  %v1081_v26 = vpop.f32.mrb[8].mxu1 }
 0x10d   : > { %v1007_v24 = vpack.c.bf16 %v768_v20, %v768_v20  ;;  %v769_v25 = vmax.f32 %v747_v21, 0.0  ;;  %v1043_v27 = vadd.f32 %v1042_v23, %v1041_v22  ;;  %v1044_v28 = vpop.f32.mrb[10].mxu0  ;;  %v1082_v29 = vpop.f32.mrb[9].mxu1 }
 0x10e   : > { %v1045_v30 = vpop.f32.mrb[11].mxu0  ;;  %v1083_v33 = vadd.f32 %v1082_v29, %v1081_v26  ;;  %v1084_v34 = vpop.f32.mrb[10].mxu1 }
 0x10f   : > { %809 = vst.msk [vmem:[%s1374_s20 + $0x8] sm:$0xf] %vm806_vm2, %v1007_v24  ;;  %v1008_v31 = vpack.c.bf16 %v769_v25, %v769_v25  ;;  %v687_v32 = vadd.f32 %v1043_v27, %v1366_v49  ;;  %v1046_v35 = vadd.f32 %v1045_v30, %v1044_v28  ;;  %v1085_v36 = vpop.f32.mrb[11].mxu1 }
 0x110   : > { %v1086_v39 = vadd.f32 %v1085_v36, %v1084_v34 }
 0x111   : > { %810 = vst.msk [vmem:[%s1374_s20 + $0xc] sm:$0xf] %vm806_vm2, %v1008_v31  ;;  %v752_v37 = vadd.f32 %v1083_v33, %v687_v32  ;;  %v690_v38 = vadd.f32 %v1046_v35, %v1366_v49 }
 0x113   : > { %v770_v40 = vmax.f32 %v752_v37, 0.0  ;;  %v755_v41 = vadd.f32 %v1086_v39, %v690_v38  ;;  %v1047_v42 = vpop.f32.mrb[12].mxu0 }
 0x114   : > { %v1048_v43 = vpop.f32.mrb[13].mxu0  ;;  %v1087_v46 = vpop.f32.mrb[12].mxu1 }
 0x115   : > { %v1009_v44 = vpack.c.bf16 %v770_v40, %v770_v40  ;;  %v771_v45 = vmax.f32 %v755_v41, 0.0  ;;  %v1049_v47 = vadd.f32 %v1048_v43, %v1047_v42  ;;  %v1050_v48 = vpop.f32.mrb[14].mxu0  ;;  %v1088_v50 = vpop.f32.mrb[13].mxu1 }
 0x116   : > { %v1051_v51 = vpop.f32.mrb[15].mxu0  ;;  %v1089_v54 = vadd.f32 %v1088_v50, %v1087_v46  ;;  %v1090_v55 = vpop.f32.mrb[14].mxu1 }
 0x117   : > { %811 = vst.msk [vmem:[%s1374_s20 + $0x10] sm:$0xf] %vm806_vm2, %v1009_v44  ;;  %v1010_v52 = vpack.c.bf16 %v771_v45, %v771_v45  ;;  %v695_v53 = vadd.f32 %v1049_v47, %v1366_v49  ;;  %v1052_v56 = vadd.f32 %v1051_v51, %v1050_v48  ;;  %v1091_v57 = vpop.f32.mrb[15].mxu1 }
 0x118   : > { %v1092_v60 = vadd.f32 %v1091_v57, %v1090_v55 }
 0x119   : > { %812 = vst.msk [vmem:[%s1374_s20 + $0x14] sm:$0xf] %vm806_vm2, %v1010_v52  ;;  %v760_v58 = vadd.f32 %v1089_v54, %v695_v53  ;;  %v698_v59 = vadd.f32 %v1052_v56, %v1366_v49 }
 0x11b   : > { %v772_v61 = vmax.f32 %v760_v58, 0.0  ;;  %v763_v62 = vadd.f32 %v1092_v60, %v698_v59 }
 0x11d   : > { %v1011_v63 = vpack.c.bf16 %v772_v61, %v772_v61  ;;  %v773_v0 = vmax.f32 %v763_v62, 0.0 }
 0x11f   : > { %813 = vst.msk [vmem:[%s1374_s20 + $0x18] sm:$0xf] %vm806_vm2, %v1011_v63  ;;  %v1012_v1 = vpack.c.bf16 %v773_v0, %v773_v0 }
 0x121   : > { %814 = vst.msk [vmem:[%s1374_s20 + $0x1c] sm:$0xf] %vm806_vm2, %v1012_v1 }
 0x122 PF: > { %s13_s14 = sadd.s32 1, %s1196_s14   ;;  %s1411_s12 = smov %s1192_s13 }
 0x123   : > { %p10_p5 = scmp.ge.s32.totalorder %s13_s14, 4   ;;  %s1412_s13 = smov %s1414_s15 }
 0x125   :  { %12 = sbr.rel (!%p10_p5) target bundleno = 2 (0x2), region = 68 }

// kernel: encoder_decoder_forward.15
= control target key start
LH: loop header
LB: loop body
LE: loop exit
PB: predicated region body
PF: predicated region fallthrough
CT: control target
= control target key end

     0   :  { %s1209_s12 = smov 0   ;;  %s1211_s13 = smov 0   ;;  %s1450_s0 = inlined_call_operand.vmem [shape: bf16[32,504], index: 0, kind: input, shape index: {}]   ;;  %s1451_s1 = inlined_call_operand.vmem [shape: bf16[504,160], index: 1, kind: input, shape index: {}]   ;;  %s1452_s2 = inlined_call_operand.vmem [shape: f32[1,160], index: 2, kind: input, shape index: {}]   ;;  %s1453_s3 = inlined_call_operand.vmem [shape: bf16[32,160], index: 3, kind: output, shape index: {}]  }
   0x1   :  { %s1213_s14 = smov 0  }
   0x2 LB: > { %s32_s15 = sadd.s32 1, %s1183_s13  ;;  %p947_p0 = scmp.ge.s32.totalorder %s1187_s14, 1  ;;  %s1187_s14 = sphi %s1213_s14, %s13_s14   ;;  %s1183_s13 = sphi %s1211_s13, %s1455_s13   ;;  %s1179_s12 = sphi %s1209_s12, %s1454_s12  }
   0x3   : > { %p34_p1 = scmp.ge.s32.totalorder %s32_s15, 2  ;;  %p196_p2 = scmp.lt.s32.totalorder %s1187_s14, 3 }
   0x5   : > { %s1457_s15 = smov (%p34_p1, %s32_s15), 0  ;;  %p197_p3 = pnand %p947_p0, %p196_p2 }
   0x6   : > { %v1064_v0 = vld [vmem:[%s1451_s1 + $0x4] ss:$8 sps:$4 sm:$0xff] (!%p197_p3)   ;;  %v1068_v2 = vld [vmem:[%s1451_s1] ss:$8 sps:$4 sm:$0xff] (!%p197_p3)   ;;  %v1070_v4 = vld [vmem:[%s1451_s1 + $0x14] ss:$8 sps:$4 sm:$0xff] (!%p197_p3)  }
   0x7   : > { %200 = sbr.rel (%p197_p3) target bundleno = 295 (0x127), region = 32  ;;  %v1066_v1 = vld [vmem:[%s1451_s1 + $0x104] ss:$8 sps:$4 sm:$0xff] (!%p197_p3)   ;;  %709 = vmatprep.subr.bf16.mxu1 (!%p197_p3), %v1064_v0  ;;  %v1069_v3 = vld [vmem:[%s1451_s1 + $0x100] ss:$8 sps:$4 sm:$0xff] (!%p197_p3)   ;;  %s948_s30 = sshll.u32 (!%p197_p3), %s1179_s12, 1 }
   0x8   : > { %752 = vmatprep.subr.bf16.mxu0 (!%p197_p3), %v1066_v1  ;;  %710 = vmatpush1.bf16.msra.mxu1 (!%p197_p3), %v1068_v2  ;;  %v1072_v5 = vld [vmem:[%s1451_s1 + $0x114] ss:$8 sps:$4 sm:$0xff] (!%p197_p3)   ;;  %v1074_v6 = vld [vmem:[%s1451_s1 + $0x10] ss:$8 sps:$4 sm:$0xff] (!%p197_p3)   ;;  %v1076_v8 = vld [vmem:[%s1451_s1 + $0x24] ss:$8 sps:$4 sm:$0xff] (!%p197_p3)  }
   0x9   : > { %753 = vmatpush1.bf16.msra.mxu0 (!%p197_p3), %v1069_v3  ;;  %711 = vmatprep.subr.bf16.mxu1 (!%p197_p3), %v1070_v4  ;;  %v1075_v7 = vld [vmem:[%s1451_s1 + $0x110] ss:$8 sps:$4 sm:$0xff] (!%p197_p3)   ;;  %v1078_v9 = vld [vmem:[%s1451_s1 + $0x124] ss:$8 sps:$4 sm:$0xff] (!%p197_p3)   ;;  %v1080_v10 = vld [vmem:[%s1451_s1 + $0x20] ss:$8 sps:$4 sm:$0xff] (!%p197_p3)  }
   0xa   : > { %754 = vmatprep.subr.bf16.mxu0 (!%p197_p3), %v1072_v5  ;;  %v1081_v11 = vld [vmem:[%s1451_s1 + $0x120] ss:$8 sps:$4 sm:$0xff] (!%p197_p3)   ;;  %v1082_v12 = vld [vmem:[%s1451_s1 + $0x34] ss:$8 sps:$4 sm:$0xff] (!%p197_p3)   ;;  %v1086_v14 = vld [vmem:[%s1451_s1 + $0x30] ss:$8 sps:$4 sm:$0xff] (!%p197_p3)  }
   0xb   : > { %v1084_v13 = vld [vmem:[%s1451_s1 + $0x134] ss:$8 sps:$4 sm:$0xff] (!%p197_p3)   ;;  %v1087_v15 = vld [vmem:[%s1451_s1 + $0x130] ss:$8 sps:$4 sm:$0xff] (!%p197_p3)   ;;  %v1088_v16 = vld [vmem:[%s1451_s1 + $0x44] ss:$8 sps:$4 sm:$0xff] (!%p197_p3)  }
   0xc   : > { %712 = vmatpush1.bf16.msra.mxu1 (!%p197_p3), %v1074_v6  ;;  %v1090_v17 = vld [vmem:[%s1451_s1 + $0x144] ss:$8 sps:$4 sm:$0xff] (!%p197_p3)   ;;  %v1092_v18 = vld [vmem:[%s1451_s1 + $0x40] ss:$8 sps:$4 sm:$0xff] (!%p197_p3)   ;;  %v1094_v20 = vld [vmem:[%s1451_s1 + $0x54] ss:$8 sps:$4 sm:$0xff] (!%p197_p3)   ;;  %v354_v6 = vlaneseq (!%p197_p3) }
   0xd   : > { %755 = vmatpush1.bf16.msra.mxu0 (!%p197_p3), %v1075_v7  ;;  %713 = vmatprep.subr.bf16.mxu1 (!%p197_p3), %v1076_v8  ;;  %v1093_v19 = vld [vmem:[%s1451_s1 + $0x140] ss:$8 sps:$4 sm:$0xff] (!%p197_p3)   ;;  %v1096_v21 = vld [vmem:[%s1451_s1 + $0x154] ss:$8 sps:$4 sm:$0xff] (!%p197_p3)   ;;  %v1098_v22 = vld [vmem:[%s1451_s1 + $0x50] ss:$8 sps:$4 sm:$0xff] (!%p197_p3)  }
   0xe   : > { %756 = vmatprep.subr.bf16.mxu0 %v1078_v9  ;;  %v1099_v23 = vld [vmem:[%s1451_s1 + $0x150] ss:$8 sps:$4 sm:$0xff]   ;;  %v1100_v24 = vld [vmem:[%s1451_s1 + $0x64] ss:$8 sps:$4 sm:$0xff]   ;;  %v1104_v26 = vld [vmem:[%s1451_s1 + $0x60] ss:$8 sps:$4 sm:$0xff]  }
   0xf   : > { %v1102_v25 = vld [vmem:[%s1451_s1 + $0x164] ss:$8 sps:$4 sm:$0xff]   ;;  %v1105_v27 = vld [vmem:[%s1451_s1 + $0x160] ss:$8 sps:$4 sm:$0xff]   ;;  %v1106_v28 = vld [vmem:[%s1451_s1 + $0x74] ss:$8 sps:$4 sm:$0xff]  }
  0x10   : > { %714 = vmatpush1.bf16.msra.mxu1 %v1080_v10  ;;  %v1108_v29 = vld [vmem:[%s1451_s1 + $0x174] ss:$8 sps:$4 sm:$0xff]   ;;  %v1110_v30 = vld [vmem:[%s1451_s1 + $0x70] ss:$8 sps:$4 sm:$0xff]   ;;  %v1112_v32 = vld [vmem:[%s1451_s1 + $0x84] ss:$8 sps:$4 sm:$0xff]  }
  0x11   : > { %757 = vmatpush1.bf16.msra.mxu0 %v1081_v11  ;;  %715 = vmatprep.subr.bf16.mxu1 %v1082_v12  ;;  %v1111_v31 = vld [vmem:[%s1451_s1 + $0x170] ss:$8 sps:$4 sm:$0xff]   ;;  %v1114_v33 = vld [vmem:[%s1451_s1 + $0x184] ss:$8 sps:$4 sm:$0xff]   ;;  %p246_p4 = scmp.lt.s32.totalorder %s948_s30, 3  ;;  %vm698_vm0 = vcmask 982016  }
  0x12   : > { %758 = vmatprep.subr.bf16.mxu0 %v1084_v13  ;;  %v1116_v34 = vld [vmem:[%s1451_s1 + $0x80] ss:$8 sps:$4 sm:$0xff]   ;;  %v1118_v36 = vld [vmem:[%s1451_s1 + $0x94] ss:$8 sps:$4 sm:$0xff]   ;;  %v1122_v38 = vld [vmem:[%s1451_s1 + $0x90] ss:$8 sps:$4 sm:$0xff]  }
  0x13   : > { %v1117_v35 = vld [vmem:[%s1451_s1 + $0x180] ss:$8 sps:$4 sm:$0xff]   ;;  %v1120_v37 = vld [vmem:[%s1451_s1 + $0x194] ss:$8 sps:$4 sm:$0xff]   ;;  %s1459_s30 = smov (!%p246_p4, %s948_s30), 3  ;;  %vm702_vm1 = vcmask 1043456  }
  0x14   : > { %716 = vmatpush1.bf16.msra.mxu1 %v1086_v14  ;;  %v1123_v39 = vld [vmem:[%s1451_s1 + $0x190] ss:$8 sps:$4 sm:$0xff]   ;;  %v1124_v40 = vld [vmem:[%s1451_s1 + $0xa4] ss:$8 sps:$4 sm:$0xff]   ;;  %s1028_s5 = sshll.u32 %s1459_s30, 4  ;;  %v355_v7 = vshrl.u32 %v354_v6, 7 }
  0x15   : > { %759 = vmatpush1.bf16.msra.mxu0 %v1087_v15  ;;  %717 = vmatprep.subr.bf16.mxu1 %v1088_v16  ;;  %v1126_v41 = vld [vmem:[%s1451_s1 + $0x1a4] ss:$8 sps:$4 sm:$0xff]   ;;  %v1128_v42 = vld [vmem:[%s1451_s1 + $0xa0] ss:$8 sps:$4 sm:$0xff]   ;;  %s1368_s12 = scalar_lea.vmem %s1450_s0, %s1028_s5  ;;  %v1130_v44 = vld [vmem:[%s1451_s1 + $0xb4] ss:$8 sps:$4 sm:$0xff]  }
  0x16   : > { %760 = vmatprep.subr.bf16.mxu0 %v1090_v17  ;;  %v1129_v43 = vld [vmem:[%s1451_s1 + $0x1a0] ss:$8 sps:$4 sm:$0xff]   ;;  %v1132_v45 = vld [vmem:[%s1451_s1 + $0x1b4] ss:$8 sps:$4 sm:$0xff]   ;;  %v1134_v47 = vld [vmem:[%s1451_s1 + $0xb0] ss:$8 sps:$4 sm:$0xff]  }
  0x17   : > { %v1161_v46 = vld [vmem:[%s1368_s12 + $0x4] ss:$16 sps:$4 sm:$0xff]   ;;  %v1135_v48 = vld [vmem:[%s1451_s1 + $0x1b0] ss:$8 sps:$4 sm:$0xff]   ;;  %v1164_v49 = vld [vmem:[%s1368_s12 + $0xc] ss:$16 sps:$4 sm:$0xff]  }
  0x18   : > { %718 = vmatpush1.bf16.msra.mxu1 %v1092_v18  ;;  %v1136_v50 = vld [vmem:[%s1451_s1 + $0xc4] ss:$8 sps:$4 sm:$0xff]   ;;  %741 = vmatprep.mubr.bf16.mxu1 %v1161_v46  ;;  %v1140_v52 = vld [vmem:[%s1451_s1 + $0xc0] ss:$8 sps:$4 sm:$0xff]   ;;  %v1142_v54 = vld [vmem:[%s1451_s1 + $0xd4] ss:$8 sps:$4 sm:$0xff]  }
  0x19   : > { %761 = vmatpush1.bf16.msra.mxu0 %v1093_v19  ;;  %719 = vmatprep.subr.bf16.mxu1 %v1094_v20  ;;  %v1138_v51 = vld [vmem:[%s1451_s1 + $0x1c4] ss:$8 sps:$4 sm:$0xff]   ;;  %v1141_v53 = vld [vmem:[%s1451_s1 + $0x1c0] ss:$8 sps:$4 sm:$0xff]   ;;  %v1144_v55 = vld [vmem:[%s1451_s1 + $0x1d4] ss:$8 sps:$4 sm:$0xff]  }
  0x1a   : > { %762 = vmatprep.subr.bf16.mxu0 %v1096_v21  ;;  %1023 = vmatprep.mubr.msk.bf16.mxu0 %vm698_vm0, %v1164_v49  ;;  %v1146_v56 = vld [vmem:[%s1451_s1 + $0xd0] ss:$8 sps:$4 sm:$0xff]   ;;  %v1148_v58 = vld [vmem:[%s1451_s1 + $0xe4] ss:$8 sps:$4 sm:$0xff]   ;;  %v1152_v61 = vld [vmem:[%s1451_s1 + $0xe0] ss:$8 sps:$4 sm:$0xff]  }
  0x1b   : > { %v1147_v57 = vld [vmem:[%s1451_s1 + $0x1d0] ss:$8 sps:$4 sm:$0xff]   ;;  %v1150_v59 = vld [vmem:[%s1451_s1 + $0x1e4] ss:$8 sps:$4 sm:$0xff]   ;;  %v1153_v62 = vld [vmem:[%s1451_s1 + $0x1e0] ss:$8 sps:$4 sm:$0xff]  }
  0x1c   : > { %720 = vmatpush1.bf16.msra.mxu1 %v1098_v22  ;;  %v351_v60 = vld [vmem:[%s1451_s1 + $0x1f0] sm:$0xff]  ;;  %v1162_v5 = vld [vmem:[%s1368_s12 + $0x8] ss:$16 sps:$4 sm:$0xff]   ;;  %v356_v8 = vsub.s32 0, %v355_v7  ;;  %v352_v9 = vld [vmem:[%s1452_s2] sm:$0x3] }
  0x1d   : > { %763 = vmatpush1.bf16.msra.mxu0 %v1099_v23  ;;  %721 = vmatprep.subr.bf16.mxu1 %v1100_v24  ;;  %v1154_v63 = vld [vmem:[%s1451_s1 + $0xf4] ss:$8 sps:$4 sm:$0xff]   ;;  %v1021_v0 = vcombine.high %v351_v60, %v351_v60  ;;  %v1020_v1 = vcombine.low %v351_v60, %v351_v60  ;;  %v1157_v2 = vld [vmem:[%s1451_s1 + $0xf0] ss:$8 sps:$4 sm:$0xff]   ;;  %v360_v10 = vsub.s32 1, %v355_v7  ;;  %vm811_vm2 = vcmask 261124  }
  0x1e   : > { %764 = vmatprep.subr.bf16.mxu0 %v1102_v25  ;;  %v1159_v4 = vld [vmem:[%s1368_s12] ss:$16 sps:$4 sm:$0xff]   ;;  %v357_v11 = vrot.slane %v352_v9, %v356_v8  ;;  %s1029_s12 = sshll.u32 %s1459_s30, 3  ;;  %vm812_vm3 = vmor %vm811_vm2, %vm702_vm1 }
  0x1f   : > { %v704_v3 = vsel %vm702_vm1, %v1020_v1, 0  ;;  %v361_v12 = vrot.slane %v352_v9, %v360_v10  ;;  %s282_s10 = scalar_lea.vmem %s1453_s3, %s1029_s12 }
  0x20   : > { %722 = vmatpush1.bf16.msra.mxu1 %v1104_v26 }
  0x21   : > { %765 = vmatpush1.bf16.msra.mxu0 %v1105_v27  ;;  %723 = vmatprep.subr.bf16.mxu1 %v1106_v28 }
  0x22   : > { %766 = vmatprep.subr.bf16.mxu0 %v1108_v29 }
  0x24   : > { %724 = vmatpush1.bf16.msra.mxu1 %v1110_v30 }
  0x25   : > { %767 = vmatpush1.bf16.msra.mxu0 %v1111_v31  ;;  %725 = vmatprep.subr.bf16.mxu1 %v1112_v32 }
  0x26   : > { %768 = vmatprep.subr.bf16.mxu0 %v1114_v33 }
  0x28   : > { %726 = vmatpush1.bf16.msra.mxu1 %v1116_v34 }
  0x29   : > { %769 = vmatpush1.bf16.msra.mxu0 %v1117_v35  ;;  %727 = vmatprep.subr.bf16.mxu1 %v1118_v36 }
  0x2a   : > { %770 = vmatprep.subr.bf16.mxu0 %v1120_v37 }
  0x2c   : > { %728 = vmatpush1.bf16.msra.mxu1 %v1122_v38 }
  0x2d   : > { %771 = vmatpush1.bf16.msra.mxu0 %v1123_v39  ;;  %729 = vmatprep.subr.bf16.mxu1 %v1124_v40 }
  0x2e   : > { %772 = vmatprep.subr.bf16.mxu0 %v1126_v41 }
  0x30   : > { %730 = vmatpush1.bf16.msra.mxu1 %v1128_v42 }
  0x31   : > { %773 = vmatpush1.bf16.msra.mxu0 %v1129_v43  ;;  %731 = vmatprep.subr.bf16.mxu1 %v1130_v44 }
  0x32   : > { %774 = vmatprep.subr.bf16.mxu0 %v1132_v45 }
  0x34   : > { %732 = vmatpush1.bf16.msra.mxu1 %v1134_v47 }
  0x35   : > { %775 = vmatpush1.bf16.msra.mxu0 %v1135_v48  ;;  %733 = vmatprep.subr.bf16.mxu1 %v1136_v50 }
  0x36   : > { %776 = vmatprep.subr.bf16.mxu0 %v1138_v51 }
  0x38   : > { %734 = vmatpush1.bf16.msra.mxu1 %v1140_v52 }
  0x39   : > { %777 = vmatpush1.bf16.msra.mxu0 %v1141_v53  ;;  %735 = vmatprep.subr.bf16.mxu1 %v1142_v54 }
  0x3a   : > { %778 = vmatprep.subr.bf16.mxu0 %v1144_v55 }
  0x3c   : > { %736 = vmatpush1.bf16.msra.mxu1 %v1146_v56 }
  0x3d   : > { %779 = vmatpush1.bf16.msra.mxu0 %v1147_v57  ;;  %737 = vmatprep.subr.bf16.mxu1 %v1148_v58 }
  0x3e   : > { %780 = vmatprep.subr.bf16.mxu0 %v1150_v59 }
  0x40   : > { %738 = vmatpush1.bf16.msra.mxu1 %v1152_v61 }
  0x41   : > { %781 = vmatpush1.bf16.msra.mxu0 %v1153_v62  ;;  %739 = vmatprep.subr.bf16.mxu1 %v1154_v63 }
  0x42   : > { %1022 = vmatprep.subr.msk.bf16.mxu0 %vm702_vm1, %v1021_v0 }
  0x44   : > { %740 = vmatpush1.bf16.msra.mxu1 %v1157_v2 }
  0x45   : > { %783 = vmatpush1.bf16.msra.mxu0 %v704_v3 }
  0x47   : > { %742 = vmatmul.mubr.bf16.vlgmr.msra.gmra.mrb[0].mxu1 %v1159_v4 }
  0x48   : > { %785 = vmatmul.mubr.bf16.vlgmr.msra.gmra.mrb[0].mxu0 %v1162_v5 }
 0x11a   : > { %v743_v13 = vpop.f32.mrb[0].mxu1 }
 0x11b   : > { %v786_v14 = vpop.f32.mrb[0].mxu0  ;;  %v744_v15 = vadd.f32 %v743_v13, %v357_v11  ;;  %v745_v16 = vpop.f32.mrb[1].mxu1 }
 0x11c   : > { %v788_v17 = vpop.f32.mrb[1].mxu0  ;;  %v746_v18 = vadd.f32 %v745_v16, %v361_v12  ;;  %v747_v19 = vpop.f32.mrb[2].mxu1 }
 0x11d   : > { %v790_v20 = vpop.f32.mrb[2].mxu0  ;;  %v787_v21 = vadd.f32 %v786_v14, %v744_v15  ;;  %v748_v22 = vadd.f32 %v747_v19, %v357_v11  ;;  %v749_v23 = vpop.f32.mrb[3].mxu1 }
 0x11e   : > { %v792_v24 = vpop.f32.mrb[3].mxu0  ;;  %v789_v25 = vadd.f32 %v788_v17, %v746_v18  ;;  %v750_v26 = vadd.f32 %v749_v23, %v361_v12 }
 0x11f   : > { %v795_v27 = vmax.f32 %v787_v21, 0.0  ;;  %v791_v28 = vadd.f32 %v790_v20, %v748_v22 }
 0x120   : > { %v796_v29 = vmax.f32 %v789_v25, 0.0  ;;  %v793_v30 = vadd.f32 %v792_v24, %v750_v26 }
 0x121   : > { %v797_v31 = vmax.f32 %v791_v28, 0.0 }
 0x122   : > { %v1030_v32 = vpack.c.bf16 %v796_v29, %v795_v27  ;;  %v798_v33 = vmax.f32 %v793_v30, 0.0 }
 0x124   : > { %813 = vst.msk [vmem:[%s282_s10] sm:$0xff] %vm812_vm3, %v1030_v32  ;;  %v1031_v34 = vpack.c.bf16 %v798_v33, %v797_v31 }
 0x126   : > { %814 = vst.msk [vmem:[%s282_s10 + $0x8] sm:$0xff] %vm812_vm3, %v1031_v34 }
 0x127 PF: > { %s13_s14 = sadd.s32 1, %s1187_s14   ;;  %s1454_s12 = smov %s1183_s13 }
 0x128   : > { %p10_p5 = scmp.ge.s32.totalorder %s13_s14, 4   ;;  %s1455_s13 = smov %s1457_s15 }
 0x12a   :  { %12 = sbr.rel (!%p10_p5) target bundleno = 2 (0x2), region = 68 }

// kernel: encoder_decoder_forward.19
= control target key start
LH: loop header
LB: loop body
LE: loop exit
PB: predicated region body
PF: predicated region fallthrough
CT: control target
= control target key end

     0   :  { %v444_v1 = vmov 0   ;;  %vm241_vm0 = vcmask 1043456   ;;  %vm237_vm1 = vcmask 64512   ;;  %v52_v45 = vlaneseq  ;;  %s576_s1 = inlined_call_operand.vmem [shape: bf16[264,256], index: 1, kind: input, shape index: {}]   ;;  %s577_s0 = inlined_call_operand.vmem [shape: bf16[8,264], index: 0, kind: input, shape index: {}]   ;;  %s578_s2 = inlined_call_operand.vmem [shape: f32[1,256], index: 2, kind: input, shape index: {}]   ;;  %s579_s3 = inlined_call_operand.vmem [shape: bf16[8,256], index: 3, kind: output, shape index: {}]  }
   0x1   :  { %v391_v0 = vld [vmem:[%s576_s1 + $0x4] ss:$8 sps:$4 sm:$0xff]   ;;  %321 = vmatprep.mubr.bf16.mxu0 %v444_v1  ;;  %v393_v2 = vld [vmem:[%s576_s1] ss:$8 sps:$4 sm:$0xff]   ;;  %v394_v3 = vld [vmem:[%s576_s1 + $0x14] ss:$8 sps:$4 sm:$0xff]  }
   0x2   :  { %248 = vmatprep.subr.bf16.mxu1 %v391_v0  ;;  %v396_v4 = vld [vmem:[%s576_s1 + $0x10] ss:$8 sps:$4 sm:$0xff]   ;;  %v397_v5 = vld [vmem:[%s576_s1 + $0x24] ss:$8 sps:$4 sm:$0xff]   ;;  %v399_v6 = vld [vmem:[%s576_s1 + $0x20] ss:$8 sps:$4 sm:$0xff]  }
   0x3   :  { %249 = vmatpush1.bf16.msra.mxu1 %v393_v2  ;;  %v400_v7 = vld [vmem:[%s576_s1 + $0x34] ss:$8 sps:$4 sm:$0xff]   ;;  %v402_v8 = vld [vmem:[%s576_s1 + $0x30] ss:$8 sps:$4 sm:$0xff]   ;;  %v403_v9 = vld [vmem:[%s576_s1 + $0x44] ss:$8 sps:$4 sm:$0xff]  }
   0x4   :  { %250 = vmatprep.subr.bf16.mxu1 %v394_v3  ;;  %v405_v10 = vld [vmem:[%s576_s1 + $0x40] ss:$8 sps:$4 sm:$0xff]   ;;  %v406_v11 = vld [vmem:[%s576_s1 + $0x54] ss:$8 sps:$4 sm:$0xff]   ;;  %v408_v12 = vld [vmem:[%s576_s1 + $0x50] ss:$8 sps:$4 sm:$0xff]  }
   0x5   :  { %v409_v13 = vld [vmem:[%s576_s1 + $0x64] ss:$8 sps:$4 sm:$0xff]   ;;  %v411_v19 = vld [vmem:[%s576_s1 + $0x60] ss:$8 sps:$4 sm:$0xff]   ;;  %v412_v22 = vld [vmem:[%s576_s1 + $0x74] ss:$8 sps:$4 sm:$0xff]  }
   0x6   :  { %v49_v14 = vld [vmem:[%s576_s1 + $0x100] sm:$0xff]  ;;  %v443_v21 = vld [vmem:[%s577_s0 + $0x8] ss:$0 sps:$4 sm:$0xff]   ;;  %v414_v23 = vld [vmem:[%s576_s1 + $0x70] ss:$8 sps:$4 sm:$0xff]   ;;  %v53_v46 = vshrl.u32 %v52_v45, 7 }
   0x7   :  { %251 = vmatpush1.bf16.msra.mxu1 %v396_v4  ;;  %v381_v15 = vcombine.high %v49_v14, %v49_v14  ;;  %v380_v16 = vcombine.low %v49_v14, %v49_v14  ;;  %v15_v17 = vld [vmem:[%s577_s0] sm:$0xff]  ;;  %v418_v26 = vld [vmem:[%s576_s1 + $0x94] ss:$8 sps:$4 sm:$0xff]   ;;  %v420_v27 = vld [vmem:[%s576_s1 + $0x90] ss:$8 sps:$4 sm:$0xff]  }
   0x8   :  { %252 = vmatprep.subr.bf16.mxu1 %v397_v5  ;;  %v346_v18 = vcombine.high %v15_v17, %v15_v17  ;;  %v415_v24 = vld [vmem:[%s576_s1 + $0x84] ss:$8 sps:$4 sm:$0xff]   ;;  %v417_v25 = vld [vmem:[%s576_s1 + $0x80] ss:$8 sps:$4 sm:$0xff]   ;;  %v424_v30 = vld [vmem:[%s576_s1 + $0xb4] ss:$8 sps:$4 sm:$0xff]   ;;  %v345_v40 = vcombine.low %v15_v17, %v15_v17 }
   0x9   :  { %382 = vmatprep.subr.msk.bf16.mxu0 %vm241_vm0, %v381_v15  ;;  %v243_v20 = vsel %vm241_vm0, %v380_v16, 0  ;;  %v421_v28 = vld [vmem:[%s576_s1 + $0xa4] ss:$8 sps:$4 sm:$0xff]   ;;  %v423_v29 = vld [vmem:[%s576_s1 + $0xa0] ss:$8 sps:$4 sm:$0xff]   ;;  %v54_v47 = vsub.s32 0, %v53_v46 }
   0xa   :  { %290 = vmatpush1.bf16.msra.mxu0 %v243_v20  ;;  %280 = vmatprep.mubr.bf16.mxu1 %v346_v18  ;;  %v426_v31 = vld [vmem:[%s576_s1 + $0xb0] ss:$8 sps:$4 sm:$0xff]   ;;  %v427_v32 = vld [vmem:[%s576_s1 + $0xc4] ss:$8 sps:$4 sm:$0xff]   ;;  %v429_v33 = vld [vmem:[%s576_s1 + $0xc0] ss:$8 sps:$4 sm:$0xff]  }
   0xb   :  { %253 = vmatpush1.bf16.msra.mxu1 %v399_v6  ;;  %v430_v34 = vld [vmem:[%s576_s1 + $0xd4] ss:$8 sps:$4 sm:$0xff]   ;;  %v432_v35 = vld [vmem:[%s576_s1 + $0xd0] ss:$8 sps:$4 sm:$0xff]   ;;  %v433_v36 = vld [vmem:[%s576_s1 + $0xe4] ss:$8 sps:$4 sm:$0xff]  }
   0xc   :  { %254 = vmatprep.subr.bf16.mxu1 %v400_v7  ;;  %v435_v37 = vld [vmem:[%s576_s1 + $0xe0] ss:$8 sps:$4 sm:$0xff]   ;;  %v437_v38 = vld [vmem:[%s576_s1 + $0xf4] ss:$8 sps:$4 sm:$0xff]   ;;  %v440_v39 = vld [vmem:[%s576_s1 + $0xf0] ss:$8 sps:$4 sm:$0xff]  }
   0xd   :  { %383 = vmatmul.mubr.msk.bf16.vlgmr.msra.gmra.mrb[0].mxu0 %vm237_vm1, %v443_v21  ;;  %v50_v48 = vld [vmem:[%s578_s2] sm:$0x3]  ;;  %v58_v49 = vsub.s32 1, %v53_v46 }
   0xe   :  { %v55_v50 = vrot.slane %v50_v48, %v54_v47 }
   0xf   :  { %255 = vmatpush1.bf16.msra.mxu1 %v402_v8  ;;  %v59_v51 = vrot.slane %v50_v48, %v58_v49 }
  0x10   :  { %256 = vmatprep.subr.bf16.mxu1 %v403_v9 }
  0x13   :  { %257 = vmatpush1.bf16.msra.mxu1 %v405_v10 }
  0x14   :  { %258 = vmatprep.subr.bf16.mxu1 %v406_v11 }
  0x17   :  { %259 = vmatpush1.bf16.msra.mxu1 %v408_v12 }
  0x18   :  { %260 = vmatprep.subr.bf16.mxu1 %v409_v13 }
  0x1b   :  { %261 = vmatpush1.bf16.msra.mxu1 %v411_v19 }
  0x1c   :  { %262 = vmatprep.subr.bf16.mxu1 %v412_v22 }
  0x1f   :  { %263 = vmatpush1.bf16.msra.mxu1 %v414_v23 }
  0x20   :  { %264 = vmatprep.subr.bf16.mxu1 %v415_v24 }
  0x23   :  { %265 = vmatpush1.bf16.msra.mxu1 %v417_v25 }
  0x24   :  { %266 = vmatprep.subr.bf16.mxu1 %v418_v26 }
  0x27   :  { %267 = vmatpush1.bf16.msra.mxu1 %v420_v27 }
  0x28   :  { %268 = vmatprep.subr.bf16.mxu1 %v421_v28 }
  0x2b   :  { %269 = vmatpush1.bf16.msra.mxu1 %v423_v29 }
  0x2c   :  { %270 = vmatprep.subr.bf16.mxu1 %v424_v30 }
  0x2f   :  { %271 = vmatpush1.bf16.msra.mxu1 %v426_v31 }
  0x30   :  { %272 = vmatprep.subr.bf16.mxu1 %v427_v32 }
  0x33   :  { %273 = vmatpush1.bf16.msra.mxu1 %v429_v33 }
  0x34   :  { %274 = vmatprep.subr.bf16.mxu1 %v430_v34 }
  0x37   :  { %275 = vmatpush1.bf16.msra.mxu1 %v432_v35 }
  0x38   :  { %276 = vmatprep.subr.bf16.mxu1 %v433_v36 }
  0x3b   :  { %277 = vmatpush1.bf16.msra.mxu1 %v435_v37 }
  0x3c   :  { %278 = vmatprep.subr.bf16.mxu1 %v437_v38 }
  0x3f   :  { %279 = vmatpush1.bf16.msra.mxu1 %v440_v39 }
  0x42   :  { %281 = vmatmul.mubr.bf16.vlgmr.msra.gmra.mrb[0].mxu1 %v345_v40 }
  0xe0   :  { %v323_v41 = vpop.f32.mrb[0].mxu0 }
  0xe1   :  { %v325_v42 = vpop.f32.mrb[1].mxu0 }
  0xe2   :  { %v327_v43 = vpop.f32.mrb[2].mxu0 }
  0xe3   :  { %v328_v44 = vpop.f32.mrb[3].mxu0 }
 0x115   :  { %v282_v52 = vpop.f32.mrb[0].mxu1 }
 0x116   :  { %v283_v53 = vadd.f32 %v282_v52, %v55_v50  ;;  %v284_v54 = vpop.f32.mrb[1].mxu1 }
 0x117   :  { %v285_v55 = vadd.f32 %v284_v54, %v59_v51  ;;  %v286_v56 = vpop.f32.mrb[2].mxu1 }
 0x118   :  { %v324_v57 = vadd.f32 %v323_v41, %v283_v53  ;;  %v287_v58 = vpop.f32.mrb[3].mxu1 }
 0x119   :  { %v326_v59 = vadd.f32 %v325_v42, %v285_v55 }
 0x11a   :  { %v330_v60 = vmax.f32 %v324_v57, 0.0 }
 0x11b   :  { %v331_v61 = vmax.f32 %v326_v59, 0.0 }
 0x11d   :  { %v385_v62 = vpack.c.bf16 %v331_v61, %v330_v60 }
 0x11f   :  { %340 = vst [vmem:[%s579_s3] sm:$0xff] %v385_v62 }

// kernel: encoder_decoder_forward.20
= control target key start
LH: loop header
LB: loop body
LE: loop exit
PB: predicated region body
PF: predicated region fallthrough
CT: control target
= control target key end

     0   :  { %vm206_vm0 = vcmask 519168   ;;  %s356_s1 = inlined_call_operand.vmem [shape: bf16[256,64], index: 1, kind: input, shape index: {}]   ;;  %s357_s0 = inlined_call_operand.vmem [shape: bf16[8,256], index: 0, kind: input, shape index: {}]   ;;  %s358_s3 = inlined_call_operand.vmem [shape: bf16[8,64], index: 3, kind: input, shape index: {}]   ;;  %s359_s2 = inlined_call_operand.vmem [shape: f32[1,64], index: 2, kind: input, shape index: {}]   ;;  %s360_s4 = inlined_call_operand.vmem [shape: bf16[8,64], index: 4, kind: output, shape index: {}]  }
   0x1   :  { %v253_v0 = vld [vmem:[%s356_s1 + $0x40] sm:$0xff]   ;;  %v255_v2 = vld [vmem:[%s356_s1 + $0x48] sm:$0xff]   ;;  %v257_v4 = vld [vmem:[%s356_s1 + $0x50] sm:$0xff]  }
   0x2   :  { %v254_v1 = vld [vmem:[%s356_s1] sm:$0xff]   ;;  %231 = vmatprep.subr.bf16.mxu0 %v253_v0  ;;  %v256_v3 = vld [vmem:[%s356_s1 + $0x8] sm:$0xff]   ;;  %v258_v5 = vld [vmem:[%s356_s1 + $0x10] sm:$0xff]  }
   0x3   :  { %232 = vmatpush3.bf16.msra.mxu0 %v254_v1  ;;  %v259_v6 = vld [vmem:[%s356_s1 + $0x58] sm:$0xff]   ;;  %v261_v8 = vld [vmem:[%s356_s1 + $0x60] sm:$0xff]   ;;  %v263_v10 = vld [vmem:[%s356_s1 + $0x68] sm:$0xff]  }
   0x4   :  { %233 = vmatprep.subr.bf16.mxu0 %v255_v2  ;;  %v260_v7 = vld [vmem:[%s356_s1 + $0x18] sm:$0xff]   ;;  %v262_v9 = vld [vmem:[%s356_s1 + $0x20] sm:$0xff]   ;;  %v264_v13 = vld [vmem:[%s356_s1 + $0x28] sm:$0xff]  }
   0x5   :  { %v18_v11 = vld [vmem:[%s357_s0] sm:$0xff]  ;;  %v265_v14 = vld [vmem:[%s356_s1 + $0x70] sm:$0xff]   ;;  %v267_v16 = vld [vmem:[%s356_s1 + $0x78] sm:$0xff]  }
   0x6   :  { %v214_v12 = vcombine.high %v18_v11, %v18_v11  ;;  %v266_v15 = vld [vmem:[%s356_s1 + $0x30] sm:$0xff]   ;;  %v268_v17 = vld [vmem:[%s356_s1 + $0x38] sm:$0xff]   ;;  %v213_v18 = vcombine.low %v18_v11, %v18_v11  ;;  %v201_v19 = vld [vmem:[%s358_s3] sm:$0xf] }
   0x7   :  { %234 = vmatpush3.bf16.msra.mxu0 %v256_v3  ;;  %v212_v21 = vld [vmem:[%s359_s2] ss:$0 sm:$0xff]  ;;  %v202_v24 = vunpack.c.l.bf16 %v201_v19 }
   0x8   :  { %235 = vmatprep.subr.bf16.mxu0 %v257_v4  ;;  %193 = vmatprep.mubr.bf16.mxu0 %v214_v12 }
   0xb   :  { %236 = vmatpush3.bf16.msra.mxu0 %v258_v5 }
   0xc   :  { %237 = vmatprep.subr.bf16.mxu0 %v259_v6 }
   0xf   :  { %238 = vmatpush3.bf16.msra.mxu0 %v260_v7 }
  0x10   :  { %239 = vmatprep.subr.bf16.mxu0 %v261_v8 }
  0x13   :  { %240 = vmatpush3.bf16.msra.mxu0 %v262_v9 }
  0x14   :  { %241 = vmatprep.subr.bf16.mxu0 %v263_v10 }
  0x17   :  { %242 = vmatpush3.bf16.msra.mxu0 %v264_v13 }
  0x18   :  { %243 = vmatprep.subr.bf16.mxu0 %v265_v14 }
  0x1b   :  { %244 = vmatpush3.bf16.msra.mxu0 %v266_v15 }
  0x1c   :  { %245 = vmatprep.subr.bf16.mxu0 %v267_v16 }
  0x1f   :  { %246 = vmatpush3.bf16.msra.mxu0 %v268_v17 }
  0x22   :  { %194 = vmatmul.mubr.bf16.vlgmr.msra.gmra.mrb[0].mxu0 %v213_v18 }
  0xf5   :  { %v247_v20 = vpop.f32.mrb[0].mxu0 }
  0xf6   :  { %v248_v22 = vpop.f32.mrb[1].mxu0 }
  0xf7   :  { %v249_v23 = vadd.f32 %v248_v22, %v247_v20  ;;  %v250_v25 = vpop.f32.mrb[2].mxu0 }
  0xf8   :  { %v251_v26 = vpop.f32.mrb[3].mxu0 }
  0xf9   :  { %v196_v27 = vadd.f32 %v249_v23, %v212_v21 }
  0xfb   :  { %v203_v28 = vadd.f32 %v202_v24, %v196_v27 }
  0xfd   :  { %v204_v29 = vmax.f32 %v203_v28, 0.0 }
  0xff   :  { %v205_v30 = vpack.c.bf16 %v204_v29, %v204_v29 }
 0x101   :  { %207 = vst.msk [vmem:[%s360_s4] sm:$0xf] %vm206_vm0, %v205_v30 }

// kernel: encoder_decoder_forward.16
= control target key start
LH: loop header
LB: loop body
LE: loop exit
PB: predicated region body
PF: predicated region fallthrough
CT: control target
= control target key end

     0   :  { %vm1879_vm0 = vcmask 261120   ;;  %vm2386_vm1 = vcmask 60416   ;;  %s4115_s1 = inlined_call_operand.vmem [shape: bf16[1440,264], index: 1, kind: input, shape index: {}]   ;;  %s4116_s0 = inlined_call_operand.vmem [shape: bf16[8,1440], index: 0, kind: input, shape index: {}]   ;;  %s4117_s2 = inlined_call_operand.vmem [shape: f32[1,264], index: 2, kind: input, shape index: {}]   ;;  %s4118_s3 = inlined_call_operand.vmem [shape: bf16[8,264], index: 3, kind: output, shape index: {}]  }
   0x1   :  { %v2811_v0 = vld [vmem:[%s4115_s1 + $0x4] ss:$12 sps:$4 sm:$0xff]   ;;  %v2815_v2 = vld [vmem:[%s4115_s1] ss:$12 sps:$4 sm:$0xff]   ;;  %v2817_v4 = vld [vmem:[%s4115_s1 + $0x1c] ss:$12 sps:$4 sm:$0xff]  }
   0x2   :  { %v2813_v1 = vld [vmem:[%s4115_s1 + $0x184] ss:$12 sps:$4 sm:$0xff]   ;;  %1883 = vmatprep.subr.bf16.mxu1 %v2811_v0  ;;  %v2816_v3 = vld [vmem:[%s4115_s1 + $0x180] ss:$12 sps:$4 sm:$0xff]   ;;  %v2819_v5 = vld [vmem:[%s4115_s1 + $0x19c] ss:$12 sps:$4 sm:$0xff]  }
   0x3   :  { %1924 = vmatprep.subr.bf16.mxu0 %v2813_v1  ;;  %1884 = vmatpush1.bf16.msra.mxu1 %v2815_v2  ;;  %v2821_v6 = vld [vmem:[%s4115_s1 + $0x18] ss:$12 sps:$4 sm:$0xff]   ;;  %v2823_v8 = vld [vmem:[%s4115_s1 + $0x34] ss:$12 sps:$4 sm:$0xff]   ;;  %v2827_v10 = vld [vmem:[%s4115_s1 + $0x30] ss:$12 sps:$4 sm:$0xff]  }
   0x4   :  { %1925 = vmatpush1.bf16.msra.mxu0 %v2816_v3  ;;  %1885 = vmatprep.subr.bf16.mxu1 %v2817_v4  ;;  %v2822_v7 = vld [vmem:[%s4115_s1 + $0x198] ss:$12 sps:$4 sm:$0xff]   ;;  %v2825_v9 = vld [vmem:[%s4115_s1 + $0x1b4] ss:$12 sps:$4 sm:$0xff]   ;;  %v2828_v11 = vld [vmem:[%s4115_s1 + $0x1b0] ss:$12 sps:$4 sm:$0xff]  }
   0x5   :  { %1926 = vmatprep.subr.bf16.mxu0 %v2819_v5  ;;  %v2829_v12 = vld [vmem:[%s4115_s1 + $0x4c] ss:$12 sps:$4 sm:$0xff]   ;;  %v2833_v14 = vld [vmem:[%s4115_s1 + $0x48] ss:$12 sps:$4 sm:$0xff]   ;;  %v2835_v16 = vld [vmem:[%s4115_s1 + $0x64] ss:$12 sps:$4 sm:$0xff]  }
   0x6   :  { %v2831_v13 = vld [vmem:[%s4115_s1 + $0x1cc] ss:$12 sps:$4 sm:$0xff]   ;;  %v2834_v15 = vld [vmem:[%s4115_s1 + $0x1c8] ss:$12 sps:$4 sm:$0xff]   ;;  %v2837_v17 = vld [vmem:[%s4115_s1 + $0x1e4] ss:$12 sps:$4 sm:$0xff]  }
   0x7   :  { %1886 = vmatpush1.bf16.msra.mxu1 %v2821_v6  ;;  %v2839_v18 = vld [vmem:[%s4115_s1 + $0x60] ss:$12 sps:$4 sm:$0xff]   ;;  %v2841_v20 = vld [vmem:[%s4115_s1 + $0x7c] ss:$12 sps:$4 sm:$0xff]   ;;  %v2845_v22 = vld [vmem:[%s4115_s1 + $0x78] ss:$12 sps:$4 sm:$0xff]  }
   0x8   :  { %1927 = vmatpush1.bf16.msra.mxu0 %v2822_v7  ;;  %1887 = vmatprep.subr.bf16.mxu1 %v2823_v8  ;;  %v2840_v19 = vld [vmem:[%s4115_s1 + $0x1e0] ss:$12 sps:$4 sm:$0xff]   ;;  %v2843_v21 = vld [vmem:[%s4115_s1 + $0x1fc] ss:$12 sps:$4 sm:$0xff]   ;;  %v2846_v23 = vld [vmem:[%s4115_s1 + $0x1f8] ss:$12 sps:$4 sm:$0xff]  }
   0x9   :  { %1928 = vmatprep.subr.bf16.mxu0 %v2825_v9  ;;  %v2847_v24 = vld [vmem:[%s4115_s1 + $0x94] ss:$12 sps:$4 sm:$0xff]   ;;  %v2851_v26 = vld [vmem:[%s4115_s1 + $0x90] ss:$12 sps:$4 sm:$0xff]   ;;  %v2853_v28 = vld [vmem:[%s4115_s1 + $0xac] ss:$12 sps:$4 sm:$0xff]  }
   0xa   :  { %v2849_v25 = vld [vmem:[%s4115_s1 + $0x214] ss:$12 sps:$4 sm:$0xff]   ;;  %v2852_v27 = vld [vmem:[%s4115_s1 + $0x210] ss:$12 sps:$4 sm:$0xff]   ;;  %v2855_v29 = vld [vmem:[%s4115_s1 + $0x22c] ss:$12 sps:$4 sm:$0xff]  }
   0xb   :  { %1888 = vmatpush1.bf16.msra.mxu1 %v2827_v10  ;;  %v2857_v30 = vld [vmem:[%s4115_s1 + $0xa8] ss:$12 sps:$4 sm:$0xff]   ;;  %v2859_v32 = vld [vmem:[%s4115_s1 + $0xc4] ss:$12 sps:$4 sm:$0xff]   ;;  %v2863_v34 = vld [vmem:[%s4115_s1 + $0xc0] ss:$12 sps:$4 sm:$0xff]  }
   0xc   :  { %1929 = vmatpush1.bf16.msra.mxu0 %v2828_v11  ;;  %1889 = vmatprep.subr.bf16.mxu1 %v2829_v12  ;;  %v2858_v31 = vld [vmem:[%s4115_s1 + $0x228] ss:$12 sps:$4 sm:$0xff]   ;;  %v2861_v33 = vld [vmem:[%s4115_s1 + $0x244] ss:$12 sps:$4 sm:$0xff]   ;;  %v2864_v35 = vld [vmem:[%s4115_s1 + $0x240] ss:$12 sps:$4 sm:$0xff]  }
   0xd   :  { %1930 = vmatprep.subr.bf16.mxu0 %v2831_v13  ;;  %v2865_v36 = vld [vmem:[%s4115_s1 + $0xdc] ss:$12 sps:$4 sm:$0xff]   ;;  %v2869_v38 = vld [vmem:[%s4115_s1 + $0xd8] ss:$12 sps:$4 sm:$0xff]   ;;  %v2871_v40 = vld [vmem:[%s4115_s1 + $0xf4] ss:$12 sps:$4 sm:$0xff]  }
   0xe   :  { %v2867_v37 = vld [vmem:[%s4115_s1 + $0x25c] ss:$12 sps:$4 sm:$0xff]   ;;  %v2870_v39 = vld [vmem:[%s4115_s1 + $0x258] ss:$12 sps:$4 sm:$0xff]   ;;  %v2873_v41 = vld [vmem:[%s4115_s1 + $0x274] ss:$12 sps:$4 sm:$0xff]  }
   0xf   :  { %1890 = vmatpush1.bf16.msra.mxu1 %v2833_v14  ;;  %v2875_v42 = vld [vmem:[%s4115_s1 + $0xf0] ss:$12 sps:$4 sm:$0xff]   ;;  %v2877_v44 = vld [vmem:[%s4115_s1 + $0x10c] ss:$12 sps:$4 sm:$0xff]   ;;  %v2881_v46 = vld [vmem:[%s4115_s1 + $0x108] ss:$12 sps:$4 sm:$0xff]  }
  0x10   :  { %1931 = vmatpush1.bf16.msra.mxu0 %v2834_v15  ;;  %1891 = vmatprep.subr.bf16.mxu1 %v2835_v16  ;;  %v2876_v43 = vld [vmem:[%s4115_s1 + $0x270] ss:$12 sps:$4 sm:$0xff]   ;;  %v2879_v45 = vld [vmem:[%s4115_s1 + $0x28c] ss:$12 sps:$4 sm:$0xff]   ;;  %v15_v47 = vld [vmem:[%s4116_s0] sm:$0xff] }
  0x11   :  { %1932 = vmatprep.subr.bf16.mxu0 %v2837_v17  ;;  %v3348_v48 = vcombine.high %v15_v47, %v15_v47  ;;  %v16_v49 = vld [vmem:[%s4116_s0 + $0x8] sm:$0xff]  ;;  %v2883_v51 = vld [vmem:[%s4115_s1 + $0x124] ss:$12 sps:$4 sm:$0xff]   ;;  %v2895_v60 = vld [vmem:[%s4115_s1 + $0x154] ss:$12 sps:$4 sm:$0xff]   ;;  %v3414_v6 = vcombine.low %v15_v47, %v15_v47 }
  0x12   :  { %v2882_v50 = vld [vmem:[%s4115_s1 + $0x288] ss:$12 sps:$4 sm:$0xff]   ;;  %v3359_v52 = vcombine.high %v16_v49, %v16_v49  ;;  %v2885_v53 = vld [vmem:[%s4115_s1 + $0x2a4] ss:$12 sps:$4 sm:$0xff]   ;;  %v2887_v54 = vld [vmem:[%s4115_s1 + $0x120] ss:$12 sps:$4 sm:$0xff]   ;;  %v3416_v7 = vcombine.low %v16_v49, %v16_v49 }
  0x13   :  { %1892 = vmatpush1.bf16.msra.mxu1 %v2839_v18  ;;  %1915 = vmatprep.mubr.bf16.mxu1 %v3348_v48  ;;  %v2888_v55 = vld [vmem:[%s4115_s1 + $0x2a0] ss:$12 sps:$4 sm:$0xff]   ;;  %v2889_v56 = vld [vmem:[%s4115_s1 + $0x13c] ss:$12 sps:$4 sm:$0xff]   ;;  %v2893_v58 = vld [vmem:[%s4115_s1 + $0x138] ss:$12 sps:$4 sm:$0xff]  }
  0x14   :  { %1933 = vmatpush1.bf16.msra.mxu0 %v2840_v19  ;;  %1893 = vmatprep.subr.bf16.mxu1 %v2841_v20  ;;  %v2891_v57 = vld [vmem:[%s4115_s1 + $0x2bc] ss:$12 sps:$4 sm:$0xff]   ;;  %v2894_v59 = vld [vmem:[%s4115_s1 + $0x2b8] ss:$12 sps:$4 sm:$0xff]   ;;  %v2897_v61 = vld [vmem:[%s4115_s1 + $0x2d4] ss:$12 sps:$4 sm:$0xff]  }
  0x15   :  { %1934 = vmatprep.subr.bf16.mxu0 %v2843_v21  ;;  %1956 = vmatprep.mubr.bf16.mxu0 %v3359_v52  ;;  %v2899_v62 = vld [vmem:[%s4115_s1 + $0x150] ss:$12 sps:$4 sm:$0xff]   ;;  %v2901_v0 = vld [vmem:[%s4115_s1 + $0x16c] ss:$12 sps:$4 sm:$0xff]   ;;  %v2905_v2 = vld [vmem:[%s4115_s1 + $0x168] ss:$12 sps:$4 sm:$0xff]  }
  0x16   :  { %v2900_v63 = vld [vmem:[%s4115_s1 + $0x2d0] ss:$12 sps:$4 sm:$0xff]   ;;  %v2903_v1 = vld [vmem:[%s4115_s1 + $0x2ec] ss:$12 sps:$4 sm:$0xff]   ;;  %v2906_v3 = vld [vmem:[%s4115_s1 + $0x2e8] ss:$12 sps:$4 sm:$0xff]  }
  0x17   :  { %1894 = vmatpush1.bf16.msra.mxu1 %v2845_v22  ;;  %v2913_v4 = vld [vmem:[%s4115_s1 + $0x304] ss:$12 sps:$4 sm:$0xff]   ;;  %v2914_v5 = vld [vmem:[%s4115_s1 + $0xc8] ss:$12 sps:$4 sm:$0xff]   ;;  %v2911_v8 = vld [vmem:[%s4115_s1 + $0x300] ss:$12 sps:$4 sm:$0xff]  }
  0x18   :  { %1935 = vmatpush1.bf16.msra.mxu0 %v2846_v23  ;;  %1895 = vmatprep.subr.bf16.mxu1 %v2847_v24  ;;  %v2915_v9 = vld [vmem:[%s4115_s1 + $0x8] ss:$12 sps:$4 sm:$0xff]   ;;  %v2919_v11 = vld [vmem:[%s4115_s1 + $0xe0] ss:$12 sps:$4 sm:$0xff]   ;;  %v2916_v12 = vld [vmem:[%s4115_s1 + $0x318] ss:$12 sps:$4 sm:$0xff]  }
  0x19   :  { %1936 = vmatprep.subr.bf16.mxu0 %v2849_v25  ;;  %v2918_v10 = vld [vmem:[%s4115_s1 + $0x31c] ss:$12 sps:$4 sm:$0xff]   ;;  %v2920_v13 = vld [vmem:[%s4115_s1 + $0x20] ss:$12 sps:$4 sm:$0xff]   ;;  %v2924_v15 = vld [vmem:[%s4115_s1 + $0xf8] ss:$12 sps:$4 sm:$0xff]  }
  0x1a   :  { %v2923_v14 = vld [vmem:[%s4115_s1 + $0x334] ss:$12 sps:$4 sm:$0xff]   ;;  %v2921_v16 = vld [vmem:[%s4115_s1 + $0x330] ss:$12 sps:$4 sm:$0xff]   ;;  %v2925_v17 = vld [vmem:[%s4115_s1 + $0x38] ss:$12 sps:$4 sm:$0xff]  }
  0x1b   :  { %1896 = vmatpush1.bf16.msra.mxu1 %v2851_v26  ;;  %v2928_v18 = vld [vmem:[%s4115_s1 + $0x34c] ss:$12 sps:$4 sm:$0xff]   ;;  %v2929_v19 = vld [vmem:[%s4115_s1 + $0x110] ss:$12 sps:$4 sm:$0xff]   ;;  %v2926_v20 = vld [vmem:[%s4115_s1 + $0x348] ss:$12 sps:$4 sm:$0xff]  }
  0x1c   :  { %1937 = vmatpush1.bf16.msra.mxu0 %v2852_v27  ;;  %1897 = vmatprep.subr.bf16.mxu1 %v2853_v28  ;;  %v2930_v21 = vld [vmem:[%s4115_s1 + $0x50] ss:$12 sps:$4 sm:$0xff]   ;;  %v2934_v23 = vld [vmem:[%s4115_s1 + $0x128] ss:$12 sps:$4 sm:$0xff]   ;;  %v2931_v24 = vld [vmem:[%s4115_s1 + $0x360] ss:$12 sps:$4 sm:$0xff]  }
  0x1d   :  { %1938 = vmatprep.subr.bf16.mxu0 %v2855_v29  ;;  %v2933_v22 = vld [vmem:[%s4115_s1 + $0x364] ss:$12 sps:$4 sm:$0xff]   ;;  %v2935_v25 = vld [vmem:[%s4115_s1 + $0x68] ss:$12 sps:$4 sm:$0xff]   ;;  %v2939_v27 = vld [vmem:[%s4115_s1 + $0x140] ss:$12 sps:$4 sm:$0xff]  }
  0x1e   :  { %v2938_v26 = vld [vmem:[%s4115_s1 + $0x37c] ss:$12 sps:$4 sm:$0xff]   ;;  %v2936_v28 = vld [vmem:[%s4115_s1 + $0x378] ss:$12 sps:$4 sm:$0xff]   ;;  %v2940_v29 = vld [vmem:[%s4115_s1 + $0x80] ss:$12 sps:$4 sm:$0xff]  }
  0x1f   :  { %1898 = vmatpush1.bf16.msra.mxu1 %v2857_v30  ;;  %v2943_v30 = vld [vmem:[%s4115_s1 + $0x394] ss:$12 sps:$4 sm:$0xff]   ;;  %v2964_v49 = vld [vmem:[%s4115_s1 + $0x278] ss:$12 sps:$4 sm:$0xff]  }
  0x20   :  { %1939 = vmatpush1.bf16.msra.mxu0 %v2858_v31  ;;  %1899 = vmatprep.subr.bf16.mxu1 %v2859_v32  ;;  %v2944_v31 = vld [vmem:[%s4115_s1 + $0x158] ss:$12 sps:$4 sm:$0xff]   ;;  %v2941_v32 = vld [vmem:[%s4115_s1 + $0x390] ss:$12 sps:$4 sm:$0xff]   ;;  %v2960_v47 = vld [vmem:[%s4115_s1 + $0x1a0] ss:$12 sps:$4 sm:$0xff]  }
  0x21   :  { %1940 = vmatprep.subr.bf16.mxu0 %v2861_v33  ;;  %v2945_v33 = vld [vmem:[%s4115_s1 + $0x98] ss:$12 sps:$4 sm:$0xff]  }
  0x23   :  { %1900 = vmatpush1.bf16.msra.mxu1 %v2863_v34  ;;  %v2948_v34 = vld [vmem:[%s4115_s1 + $0x3ac] ss:$12 sps:$4 sm:$0xff]  }
  0x24   :  { %1941 = vmatpush1.bf16.msra.mxu0 %v2864_v35  ;;  %1901 = vmatprep.subr.bf16.mxu1 %v2865_v36  ;;  %v2949_v35 = vld [vmem:[%s4115_s1 + $0x170] ss:$12 sps:$4 sm:$0xff]   ;;  %v2946_v36 = vld [vmem:[%s4115_s1 + $0x3a8] ss:$12 sps:$4 sm:$0xff]  }
  0x25   :  { %1942 = vmatprep.subr.bf16.mxu0 %v2867_v37  ;;  %v2950_v37 = vld [vmem:[%s4115_s1 + $0xb0] ss:$12 sps:$4 sm:$0xff]  }
  0x27   :  { %1902 = vmatpush1.bf16.msra.mxu1 %v2869_v38  ;;  %v2953_v38 = vld [vmem:[%s4115_s1 + $0x3c4] ss:$12 sps:$4 sm:$0xff]  }
  0x28   :  { %1943 = vmatpush1.bf16.msra.mxu0 %v2870_v39  ;;  %1903 = vmatprep.subr.bf16.mxu1 %v2871_v40  ;;  %v2954_v39 = vld [vmem:[%s4115_s1 + $0x248] ss:$12 sps:$4 sm:$0xff]   ;;  %v2951_v40 = vld [vmem:[%s4115_s1 + $0x3c0] ss:$12 sps:$4 sm:$0xff]  }
  0x29   :  { %1944 = vmatprep.subr.bf16.mxu0 %v2873_v41  ;;  %v2955_v41 = vld [vmem:[%s4115_s1 + $0x188] ss:$12 sps:$4 sm:$0xff]  }
  0x2b   :  { %1904 = vmatpush1.bf16.msra.mxu1 %v2875_v42  ;;  %v2958_v42 = vld [vmem:[%s4115_s1 + $0x3dc] ss:$12 sps:$4 sm:$0xff]  }
  0x2c   :  { %1945 = vmatpush1.bf16.msra.mxu0 %v2876_v43  ;;  %1905 = vmatprep.subr.bf16.mxu1 %v2877_v44  ;;  %v3529_v43 = vld [vmem:[%s4116_s0 + $0x10] sm:$0xff]  ;;  %v2959_v44 = vld [vmem:[%s4115_s1 + $0x260] ss:$12 sps:$4 sm:$0xff]  }
  0x2d   :  { %1946 = vmatprep.subr.bf16.mxu0 %v2879_v45  ;;  %v3536_v45 = vcombine.high %v3529_v43, %v3529_v43 }
  0x2f   :  { %1906 = vmatpush1.bf16.msra.mxu1 %v2881_v46  ;;  %v2956_v46 = vld [vmem:[%s4115_s1 + $0x3d8] ss:$12 sps:$4 sm:$0xff]  }
  0x30   :  { %1947 = vmatpush1.bf16.msra.mxu0 %v2882_v50  ;;  %1907 = vmatprep.subr.bf16.mxu1 %v2883_v51  ;;  %v2961_v50 = vld [vmem:[%s4115_s1 + $0x3f0] ss:$12 sps:$4 sm:$0xff]   ;;  %v2965_v51 = vld [vmem:[%s4115_s1 + $0x1b8] ss:$12 sps:$4 sm:$0xff]  }
  0x31   :  { %1948 = vmatprep.subr.bf16.mxu0 %v2885_v53  ;;  %v2968_v53 = vld [vmem:[%s4115_s1 + $0x40c] ss:$12 sps:$4 sm:$0xff]  }
  0x33   :  { %1908 = vmatpush1.bf16.msra.mxu1 %v2887_v54  ;;  %v2966_v54 = vld [vmem:[%s4115_s1 + $0x408] ss:$12 sps:$4 sm:$0xff]  }
  0x34   :  { %1949 = vmatpush1.bf16.msra.mxu0 %v2888_v55  ;;  %1909 = vmatprep.subr.bf16.mxu1 %v2889_v56  ;;  %v2970_v55 = vld [vmem:[%s4115_s1 + $0x1d0] ss:$12 sps:$4 sm:$0xff]  }
  0x35   :  { %1950 = vmatprep.subr.bf16.mxu0 %v2891_v57  ;;  %v2973_v56 = vld [vmem:[%s4115_s1 + $0x424] ss:$12 sps:$4 sm:$0xff]   ;;  %v2974_v57 = vld [vmem:[%s4115_s1 + $0x2a8] ss:$12 sps:$4 sm:$0xff]  }
  0x37   :  { %1910 = vmatpush1.bf16.msra.mxu1 %v2893_v58  ;;  %v2971_v58 = vld [vmem:[%s4115_s1 + $0x420] ss:$12 sps:$4 sm:$0xff]  }
  0x38   :  { %1951 = vmatpush1.bf16.msra.mxu0 %v2894_v59  ;;  %1911 = vmatprep.subr.bf16.mxu1 %v2895_v60  ;;  %v2975_v59 = vld [vmem:[%s4115_s1 + $0x1e8] ss:$12 sps:$4 sm:$0xff]  }
  0x39   :  { %1952 = vmatprep.subr.bf16.mxu0 %v2897_v61  ;;  %v2978_v60 = vld [vmem:[%s4115_s1 + $0x43c] ss:$12 sps:$4 sm:$0xff]   ;;  %v2979_v61 = vld [vmem:[%s4115_s1 + $0x2c0] ss:$12 sps:$4 sm:$0xff]  }
  0x3b   :  { %1912 = vmatpush1.bf16.msra.mxu1 %v2899_v62  ;;  %v2976_v62 = vld [vmem:[%s4115_s1 + $0x438] ss:$12 sps:$4 sm:$0xff]  }
  0x3c   :  { %1953 = vmatpush1.bf16.msra.mxu0 %v2900_v63  ;;  %1913 = vmatprep.subr.bf16.mxu1 %v2901_v0  ;;  %v2980_v63 = vld [vmem:[%s4115_s1 + $0x200] ss:$12 sps:$4 sm:$0xff]  }
  0x3d   :  { %1954 = vmatprep.subr.bf16.mxu0 %v2903_v1  ;;  %v2983_v0 = vld [vmem:[%s4115_s1 + $0x454] ss:$12 sps:$4 sm:$0xff]   ;;  %v2984_v1 = vld [vmem:[%s4115_s1 + $0x2d8] ss:$12 sps:$4 sm:$0xff]  }
  0x3f   :  { %1914 = vmatpush1.bf16.msra.mxu1 %v2905_v2  ;;  %v2981_v2 = vld [vmem:[%s4115_s1 + $0x450] ss:$12 sps:$4 sm:$0xff]  }
  0x40   :  { %1955 = vmatpush1.bf16.msra.mxu0 %v2906_v3  ;;  %2680 = vmatprep.subr.bf16.mxu1 %v2914_v5  ;;  %v2985_v3 = vld [vmem:[%s4115_s1 + $0x218] ss:$12 sps:$4 sm:$0xff]   ;;  %v2989_v5 = vld [vmem:[%s4115_s1 + $0x2f0] ss:$12 sps:$4 sm:$0xff]  }
  0x41   :  { %1965 = vmatprep.subr.bf16.mxu0 %v2913_v4  ;;  %v2988_v4 = vld [vmem:[%s4115_s1 + $0x46c] ss:$12 sps:$4 sm:$0xff]  }
  0x42   :  { %1916 = vmatmul.mubr.bf16.vlgmr.msra.gmra.mrb[0].mxu1 %v3414_v6 }
  0x43   :  { %1957 = vmatmul.mubr.bf16.vlgmr.msra.gmra.mrb[0].mxu0 %v3416_v7  ;;  %2681 = vmatpush3.bf16.msra.mxu1 %v2915_v9  ;;  %v2995_v9 = vld [vmem:[%s4115_s1 + $0x484] ss:$12 sps:$4 sm:$0xff]  }
  0x44   :  { %1966 = vmatpush1.bf16.msra.mxu0 %v2911_v8  ;;  %2682 = vmatprep.subr.bf16.mxu1 %v2919_v11  ;;  %v2990_v8 = vld [vmem:[%s4115_s1 + $0x230] ss:$12 sps:$4 sm:$0xff]   ;;  %v2993_v11 = vld [vmem:[%s4115_s1 + $0x480] ss:$12 sps:$4 sm:$0xff]  }
  0x45   :  { %1967 = vmatprep.subr.bf16.mxu0 %v2918_v10  ;;  %2161 = vmatprep.mubr.bf16.mxu1 %v3348_v48  ;;  %v2963_v48 = vld [vmem:[%s4115_s1 + $0x3f4] ss:$12 sps:$4 sm:$0xff]  }
  0x46   :  { %1997 = vmatprep.mubr.bf16.mxu0 %v3536_v45  ;;  %v2996_v10 = vld [vmem:[%s4115_s1 + $0x3c8] ss:$12 sps:$4 sm:$0xff]  }
  0x47   :  { %2683 = vmatpush3.bf16.msra.mxu1 %v2920_v13  ;;  %v2997_v13 = vld [vmem:[%s4115_s1 + $0x308] ss:$12 sps:$4 sm:$0xff]  }
  0x48   :  { %1968 = vmatpush1.bf16.msra.mxu0 %v2916_v12  ;;  %2684 = vmatprep.subr.bf16.mxu1 %v2924_v15  ;;  %v3630_v12 = vcombine.low %v3529_v43, %v3529_v43  ;;  %v3001_v15 = vld [vmem:[%s4115_s1 + $0x3e0] ss:$12 sps:$4 sm:$0xff]   ;;  %v3035_v43 = vld [vmem:[%s4115_s1 + $0x544] ss:$12 sps:$4 sm:$0xff]  }
  0x49   :  { %1969 = vmatprep.subr.bf16.mxu0 %v2923_v14  ;;  %v3000_v14 = vld [vmem:[%s4115_s1 + $0x49c] ss:$12 sps:$4 sm:$0xff]  }
  0x4b   :  { %2685 = vmatpush3.bf16.msra.mxu1 %v2925_v17  ;;  %v3002_v17 = vld [vmem:[%s4115_s1 + $0x320] ss:$12 sps:$4 sm:$0xff]  }
  0x4c   :  { %1970 = vmatpush1.bf16.msra.mxu0 %v2921_v16  ;;  %2686 = vmatprep.subr.bf16.mxu1 %v2929_v19  ;;  %v2998_v16 = vld [vmem:[%s4115_s1 + $0x498] ss:$12 sps:$4 sm:$0xff]   ;;  %v3003_v19 = vld [vmem:[%s4115_s1 + $0x4b0] ss:$12 sps:$4 sm:$0xff]  }
  0x4d   :  { %1971 = vmatprep.subr.bf16.mxu0 %v2928_v18  ;;  %v3005_v18 = vld [vmem:[%s4115_s1 + $0x4b4] ss:$12 sps:$4 sm:$0xff]  }
  0x4f   :  { %2687 = vmatpush3.bf16.msra.mxu1 %v2930_v21  ;;  %v3010_v21 = vld [vmem:[%s4115_s1 + $0x4cc] ss:$12 sps:$4 sm:$0xff]  }
  0x50   :  { %1972 = vmatpush1.bf16.msra.mxu0 %v2926_v20  ;;  %2688 = vmatprep.subr.bf16.mxu1 %v2934_v23  ;;  %v3007_v20 = vld [vmem:[%s4115_s1 + $0x338] ss:$12 sps:$4 sm:$0xff]   ;;  %v3008_v23 = vld [vmem:[%s4115_s1 + $0x4c8] ss:$12 sps:$4 sm:$0xff]  }
  0x51   :  { %1973 = vmatprep.subr.bf16.mxu0 %v2933_v22  ;;  %v3011_v22 = vld [vmem:[%s4115_s1 + $0x410] ss:$12 sps:$4 sm:$0xff]  }
  0x53   :  { %2689 = vmatpush3.bf16.msra.mxu1 %v2935_v25  ;;  %v3015_v25 = vld [vmem:[%s4115_s1 + $0x4e4] ss:$12 sps:$4 sm:$0xff]  }
  0x54   :  { %1974 = vmatpush1.bf16.msra.mxu0 %v2931_v24  ;;  %2690 = vmatprep.subr.bf16.mxu1 %v2939_v27  ;;  %v3012_v24 = vld [vmem:[%s4115_s1 + $0x350] ss:$12 sps:$4 sm:$0xff]   ;;  %v3013_v27 = vld [vmem:[%s4115_s1 + $0x4e0] ss:$12 sps:$4 sm:$0xff]  }
  0x55   :  { %1975 = vmatprep.subr.bf16.mxu0 %v2938_v26  ;;  %v3016_v26 = vld [vmem:[%s4115_s1 + $0x428] ss:$12 sps:$4 sm:$0xff]  }
  0x57   :  { %2691 = vmatpush3.bf16.msra.mxu1 %v2940_v29  ;;  %v3020_v29 = vld [vmem:[%s4115_s1 + $0x4fc] ss:$12 sps:$4 sm:$0xff]  }
  0x58   :  { %1976 = vmatpush1.bf16.msra.mxu0 %v2936_v28  ;;  %2692 = vmatprep.subr.bf16.mxu1 %v2944_v31  ;;  %v3017_v28 = vld [vmem:[%s4115_s1 + $0x368] ss:$12 sps:$4 sm:$0xff]   ;;  %v3018_v31 = vld [vmem:[%s4115_s1 + $0x4f8] ss:$12 sps:$4 sm:$0xff]  }
  0x59   :  { %1977 = vmatprep.subr.bf16.mxu0 %v2943_v30  ;;  %v3021_v30 = vld [vmem:[%s4115_s1 + $0x440] ss:$12 sps:$4 sm:$0xff]  }
  0x5b   :  { %2693 = vmatpush3.bf16.msra.mxu1 %v2945_v33  ;;  %v3025_v33 = vld [vmem:[%s4115_s1 + $0x514] ss:$12 sps:$4 sm:$0xff]  }
  0x5c   :  { %1978 = vmatpush1.bf16.msra.mxu0 %v2941_v32  ;;  %2694 = vmatprep.subr.bf16.mxu1 %v2949_v35  ;;  %v3022_v32 = vld [vmem:[%s4115_s1 + $0x380] ss:$12 sps:$4 sm:$0xff]   ;;  %v3707_v35 = vld [vmem:[%s4116_s0 + $0x18] sm:$0xff] }
  0x5d   :  { %1979 = vmatprep.subr.bf16.mxu0 %v2948_v34  ;;  %v3026_v34 = vld [vmem:[%s4115_s1 + $0x458] ss:$12 sps:$4 sm:$0xff]  }
  0x5f   :  { %2695 = vmatpush3.bf16.msra.mxu1 %v2950_v37  ;;  %v3027_v37 = vld [vmem:[%s4115_s1 + $0x398] ss:$12 sps:$4 sm:$0xff]  }
  0x60   :  { %1980 = vmatpush1.bf16.msra.mxu0 %v2946_v36  ;;  %2702 = vmatprep.subr.bf16.mxu1 %v2954_v39  ;;  %v3023_v36 = vld [vmem:[%s4115_s1 + $0x510] ss:$12 sps:$4 sm:$0xff]   ;;  %v3030_v39 = vld [vmem:[%s4115_s1 + $0x52c] ss:$12 sps:$4 sm:$0xff]  }
  0x61   :  { %1981 = vmatprep.subr.bf16.mxu0 %v2953_v38  ;;  %v2399_v38 = vcombine.high %v3707_v35, %v3707_v35 }
  0x62   :  { %2162 = vmatmul.mubr.bf16.vlgmr.msra.gmra.mrb[4].mxu1 %v3414_v6  ;;  %v2986_v6 = vld [vmem:[%s4115_s1 + $0x468] ss:$12 sps:$4 sm:$0xff]  }
  0x63   :  { %2703 = vmatpush3.bf16.msra.mxu1 %v2955_v41  ;;  %2201 = vmatprep.mubr.bf16.mxu1 %v3359_v52  ;;  %v2969_v52 = vld [vmem:[%s4115_s1 + $0x290] ss:$12 sps:$4 sm:$0xff]   ;;  %v3028_v41 = vld [vmem:[%s4115_s1 + $0x528] ss:$12 sps:$4 sm:$0xff]  }
  0x64   :  { %1982 = vmatpush1.bf16.msra.mxu0 %v2951_v40  ;;  %2704 = vmatprep.subr.bf16.mxu1 %v2959_v44  ;;  %v3031_v40 = vld [vmem:[%s4115_s1 + $0x470] ss:$12 sps:$4 sm:$0xff]   ;;  %v3036_v44 = vld [vmem:[%s4115_s1 + $0x548] ss:$12 sps:$4 sm:$0xff]  }
  0x65   :  { %1983 = vmatprep.subr.bf16.mxu0 %v2958_v42  ;;  %v3032_v42 = vld [vmem:[%s4115_s1 + $0x3b0] ss:$12 sps:$4 sm:$0xff]  }
  0x67   :  { %2705 = vmatpush3.bf16.msra.mxu1 %v2960_v47  ;;  %v3040_v47 = vld [vmem:[%s4115_s1 + $0x55c] ss:$12 sps:$4 sm:$0xff]  }
  0x68   :  { %1984 = vmatpush1.bf16.msra.mxu0 %v2956_v46  ;;  %2706 = vmatprep.subr.bf16.mxu1 %v2964_v49  ;;  %v3037_v46 = vld [vmem:[%s4115_s1 + $0x488] ss:$12 sps:$4 sm:$0xff]   ;;  %v3038_v49 = vld [vmem:[%s4115_s1 + $0x558] ss:$12 sps:$4 sm:$0xff]  }
  0x69   :  { %1985 = vmatprep.subr.bf16.mxu0 %v2963_v48  ;;  %v3041_v48 = vld [vmem:[%s4115_s1 + $0x560] ss:$12 sps:$4 sm:$0xff]  }
  0x6b   :  { %2707 = vmatpush3.bf16.msra.mxu1 %v2965_v51  ;;  %v3045_v51 = vld [vmem:[%s4115_s1 + $0x574] ss:$12 sps:$4 sm:$0xff]  }
  0x6c   :  { %1986 = vmatpush1.bf16.msra.mxu0 %v2961_v50  ;;  %2708 = vmatprep.subr.bf16.mxu1 %v2969_v52  ;;  %v3042_v50 = vld [vmem:[%s4115_s1 + $0x4a0] ss:$12 sps:$4 sm:$0xff]   ;;  %v3043_v52 = vld [vmem:[%s4115_s1 + $0x570] ss:$12 sps:$4 sm:$0xff]  }
  0x6d   :  { %1987 = vmatprep.subr.bf16.mxu0 %v2968_v53  ;;  %v3046_v53 = vld [vmem:[%s4115_s1 + $0x578] ss:$12 sps:$4 sm:$0xff]  }
  0x6f   :  { %2709 = vmatpush3.bf16.msra.mxu1 %v2970_v55  ;;  %v3050_v55 = vld [vmem:[%s4115_s1 + $0x58c] ss:$12 sps:$4 sm:$0xff]  }
  0x70   :  { %1988 = vmatpush1.bf16.msra.mxu0 %v2966_v54  ;;  %2710 = vmatprep.subr.bf16.mxu1 %v2974_v57  ;;  %v3047_v54 = vld [vmem:[%s4115_s1 + $0x4b8] ss:$12 sps:$4 sm:$0xff]   ;;  %v3048_v57 = vld [vmem:[%s4115_s1 + $0x588] ss:$12 sps:$4 sm:$0xff]  }
  0x71   :  { %1989 = vmatprep.subr.bf16.mxu0 %v2973_v56  ;;  %v3051_v56 = vld [vmem:[%s4115_s1 + $0x590] ss:$12 sps:$4 sm:$0xff]  }
  0x73   :  { %2711 = vmatpush3.bf16.msra.mxu1 %v2975_v59  ;;  %v3055_v59 = vld [vmem:[%s4115_s1 + $0x5a4] ss:$12 sps:$4 sm:$0xff]  }
  0x74   :  { %1990 = vmatpush1.bf16.msra.mxu0 %v2971_v58  ;;  %2712 = vmatprep.subr.bf16.mxu1 %v2979_v61  ;;  %v3052_v58 = vld [vmem:[%s4115_s1 + $0x4d0] ss:$12 sps:$4 sm:$0xff]   ;;  %v3053_v61 = vld [vmem:[%s4115_s1 + $0x5a0] ss:$12 sps:$4 sm:$0xff]  }
  0x75   :  { %1991 = vmatprep.subr.bf16.mxu0 %v2978_v60  ;;  %v3056_v60 = vld [vmem:[%s4115_s1 + $0x5a8] ss:$12 sps:$4 sm:$0xff]  }
  0x77   :  { %2713 = vmatpush3.bf16.msra.mxu1 %v2980_v63  ;;  %v3060_v63 = vld [vmem:[%s4115_s1 + $0x5bc] ss:$12 sps:$4 sm:$0xff]  }
  0x78   :  { %1992 = vmatpush1.bf16.msra.mxu0 %v2976_v62  ;;  %2714 = vmatprep.subr.bf16.mxu1 %v2984_v1  ;;  %v3057_v62 = vld [vmem:[%s4115_s1 + $0x4e8] ss:$12 sps:$4 sm:$0xff]   ;;  %v3058_v1 = vld [vmem:[%s4115_s1 + $0x5b8] ss:$12 sps:$4 sm:$0xff]  }
  0x79   :  { %1993 = vmatprep.subr.bf16.mxu0 %v2983_v0  ;;  %v3061_v0 = vld [vmem:[%s4115_s1 + $0x5c0] ss:$12 sps:$4 sm:$0xff]  }
  0x7b   :  { %2715 = vmatpush3.bf16.msra.mxu1 %v2985_v3  ;;  %v3065_v3 = vld [vmem:[%s4115_s1 + $0x5d4] ss:$12 sps:$4 sm:$0xff]  }
  0x7c   :  { %1994 = vmatpush1.bf16.msra.mxu0 %v2981_v2  ;;  %2716 = vmatprep.subr.bf16.mxu1 %v2989_v5  ;;  %v3062_v2 = vld [vmem:[%s4115_s1 + $0x500] ss:$12 sps:$4 sm:$0xff]   ;;  %v3063_v5 = vld [vmem:[%s4115_s1 + $0x5d0] ss:$12 sps:$4 sm:$0xff]  }
  0x7d   :  { %1995 = vmatprep.subr.bf16.mxu0 %v2988_v4  ;;  %v3066_v4 = vld [vmem:[%s4115_s1 + $0x5d8] ss:$12 sps:$4 sm:$0xff]  }
  0x7f   :  { %2717 = vmatpush3.bf16.msra.mxu1 %v2990_v8  ;;  %v3070_v8 = vld [vmem:[%s4115_s1 + $0x5ec] ss:$12 sps:$4 sm:$0xff]  }
  0x80   :  { %1996 = vmatpush1.bf16.msra.mxu0 %v2986_v6  ;;  %2724 = vmatprep.subr.bf16.mxu1 %v2996_v10  ;;  %v3067_v6 = vld [vmem:[%s4115_s1 + $0x518] ss:$12 sps:$4 sm:$0xff]   ;;  %v3068_v10 = vld [vmem:[%s4115_s1 + $0x5e8] ss:$12 sps:$4 sm:$0xff]  }
  0x81   :  { %2006 = vmatprep.subr.bf16.mxu0 %v2995_v9  ;;  %v3071_v9 = vld [vmem:[%s4115_s1 + $0x5f0] ss:$12 sps:$4 sm:$0xff]  }
  0x82   :  { %2202 = vmatmul.mubr.bf16.vlgmr.msra.gmra.mrb[8].mxu1 %v3416_v7  ;;  %v3006_v7 = vld [vmem:[%s4115_s1 + $0x3f8] ss:$12 sps:$4 sm:$0xff]  }
  0x83   :  { %1998 = vmatmul.mubr.bf16.vlgmr.msra.gmra.mrb[0].mxu0 %v3630_v12  ;;  %2725 = vmatpush3.bf16.msra.mxu1 %v2997_v13  ;;  %v3078_v13 = vld [vmem:[%s4115_s1 + $0x6c8] ss:$12 sps:$4 sm:$0xff]  }
  0x84   :  { %2007 = vmatpush1.bf16.msra.mxu0 %v2993_v11  ;;  %2726 = vmatprep.subr.bf16.mxu1 %v3001_v15  ;;  %v3072_v11 = vld [vmem:[%s4115_s1 + $0x530] ss:$12 sps:$4 sm:$0xff]   ;;  %v2398_v15 = vcombine.low %v3707_v35, %v3707_v35  ;;  %v3103_v35 = vld [vmem:[%s4115_s1 + $0x740] ss:$12 sps:$4 sm:$0xff]  }
  0x85   :  { %2008 = vmatprep.subr.bf16.mxu0 %v3000_v14  ;;  %2241 = vmatprep.mubr.bf16.mxu1 %v3536_v45  ;;  %v3033_v45 = vld [vmem:[%s4115_s1 + $0x540] ss:$12 sps:$4 sm:$0xff]  }
  0x86   :  { %2038 = vmatprep.mubr.bf16.mxu0 %v2399_v38  ;;  %v3075_v14 = vld [vmem:[%s4115_s1 + $0x600] ss:$12 sps:$4 sm:$0xff]  }
  0x87   :  { %2727 = vmatpush3.bf16.msra.mxu1 %v3002_v17  ;;  %v3079_v17 = vld [vmem:[%s4115_s1 + $0x608] ss:$12 sps:$4 sm:$0xff]  }
  0x88   :  { %2009 = vmatpush1.bf16.msra.mxu0 %v2998_v16  ;;  %2728 = vmatprep.subr.bf16.mxu1 %v3006_v7  ;;  %v3840_v16 = vld [vmem:[%s4116_s0 + $0x20] sm:$0xff] }
  0x89   :  { %2010 = vmatprep.subr.bf16.mxu0 %v3005_v18  ;;  %v3082_v18 = vld [vmem:[%s4115_s1 + $0x61c] ss:$12 sps:$4 sm:$0xff]   ;;  %v3083_v7 = vld [vmem:[%s4115_s1 + $0x6e0] ss:$12 sps:$4 sm:$0xff]  }
  0x8b   :  { %2729 = vmatpush3.bf16.msra.mxu1 %v3007_v20  ;;  %v3080_v20 = vld [vmem:[%s4115_s1 + $0x618] ss:$12 sps:$4 sm:$0xff]  }
  0x8c   :  { %2011 = vmatpush1.bf16.msra.mxu0 %v3003_v19  ;;  %2730 = vmatprep.subr.bf16.mxu1 %v3011_v22  ;;  %v2401_v19 = vcombine.high %v3840_v16, %v3840_v16  ;;  %v3087_v22 = vld [vmem:[%s4115_s1 + $0x634] ss:$12 sps:$4 sm:$0xff]  }
  0x8d   :  { %2012 = vmatprep.subr.bf16.mxu0 %v3010_v21  ;;  %v3084_v21 = vld [vmem:[%s4115_s1 + $0x620] ss:$12 sps:$4 sm:$0xff]  }
  0x8f   :  { %2731 = vmatpush3.bf16.msra.mxu1 %v3012_v24  ;;  %v3085_v24 = vld [vmem:[%s4115_s1 + $0x630] ss:$12 sps:$4 sm:$0xff]  }
  0x90   :  { %2013 = vmatpush1.bf16.msra.mxu0 %v3008_v23  ;;  %2732 = vmatprep.subr.bf16.mxu1 %v3016_v26  ;;  %v3088_v23 = vld [vmem:[%s4115_s1 + $0x6f8] ss:$12 sps:$4 sm:$0xff]  }
  0x91   :  { %2014 = vmatprep.subr.bf16.mxu0 %v3015_v25  ;;  %v3089_v25 = vld [vmem:[%s4115_s1 + $0x638] ss:$12 sps:$4 sm:$0xff]  }
  0x92   :  { %v3092_v26 = vld [vmem:[%s4115_s1 + $0x64c] ss:$12 sps:$4 sm:$0xff]  }
  0x93   :  { %2733 = vmatpush3.bf16.msra.mxu1 %v3017_v28  ;;  %v3090_v28 = vld [vmem:[%s4115_s1 + $0x648] ss:$12 sps:$4 sm:$0xff]  }
  0x94   :  { %2015 = vmatpush1.bf16.msra.mxu0 %v3013_v27  ;;  %2734 = vmatprep.subr.bf16.mxu1 %v3021_v30  ;;  %v3093_v27 = vld [vmem:[%s4115_s1 + $0x710] ss:$12 sps:$4 sm:$0xff]  }
  0x95   :  { %2016 = vmatprep.subr.bf16.mxu0 %v3020_v29  ;;  %v3094_v29 = vld [vmem:[%s4115_s1 + $0x650] ss:$12 sps:$4 sm:$0xff]  }
  0x96   :  { %v3097_v30 = vld [vmem:[%s4115_s1 + $0x664] ss:$12 sps:$4 sm:$0xff]  }
  0x97   :  { %2735 = vmatpush3.bf16.msra.mxu1 %v3022_v32  ;;  %v3095_v32 = vld [vmem:[%s4115_s1 + $0x660] ss:$12 sps:$4 sm:$0xff]  }
  0x98   :  { %2017 = vmatpush1.bf16.msra.mxu0 %v3018_v31  ;;  %2736 = vmatprep.subr.bf16.mxu1 %v3026_v34  ;;  %v3098_v31 = vld [vmem:[%s4115_s1 + $0x728] ss:$12 sps:$4 sm:$0xff]  }
  0x99   :  { %2018 = vmatprep.subr.bf16.mxu0 %v3025_v33  ;;  %v3099_v33 = vld [vmem:[%s4115_s1 + $0x668] ss:$12 sps:$4 sm:$0xff]  }
  0x9a   :  { %v3102_v34 = vld [vmem:[%s4115_s1 + $0x67c] ss:$12 sps:$4 sm:$0xff]  }
  0x9b   :  { %2737 = vmatpush3.bf16.msra.mxu1 %v3027_v37  ;;  %v3104_v37 = vld [vmem:[%s4115_s1 + $0x680] ss:$12 sps:$4 sm:$0xff]  }
  0x9c   :  { %2019 = vmatpush1.bf16.msra.mxu0 %v3023_v36  ;;  %2738 = vmatprep.subr.bf16.mxu1 %v3031_v40  ;;  %v3100_v36 = vld [vmem:[%s4115_s1 + $0x678] ss:$12 sps:$4 sm:$0xff]   ;;  %v3105_v40 = vld [vmem:[%s4115_s1 + $0x690] ss:$12 sps:$4 sm:$0xff]  }
  0x9d   :  { %2020 = vmatprep.subr.bf16.mxu0 %v3030_v39  ;;  %v3108_v39 = vld [vmem:[%s4115_s1 + $0x758] ss:$12 sps:$4 sm:$0xff]  }
  0x9f   :  { %2739 = vmatpush3.bf16.msra.mxu1 %v3032_v42  ;;  %v3112_v42 = vld [vmem:[%s4115_s1 + $0x6ac] ss:$12 sps:$4 sm:$0xff]  }
  0xa0   :  { %2021 = vmatpush1.bf16.msra.mxu0 %v3028_v41  ;;  %2746 = vmatprep.subr.bf16.mxu1 %v3036_v44  ;;  %v3109_v41 = vld [vmem:[%s4115_s1 + $0x698] ss:$12 sps:$4 sm:$0xff]   ;;  %v3110_v44 = vld [vmem:[%s4115_s1 + $0x6a8] ss:$12 sps:$4 sm:$0xff]  }
  0xa1   :  { %2022 = vmatprep.subr.bf16.mxu0 %v3035_v43  ;;  %v3113_v43 = vld [vmem:[%s4115_s1 + $0x770] ss:$12 sps:$4 sm:$0xff]  }
  0xa2   :  { %2242 = vmatmul.mubr.bf16.vlgmr.msra.gmra.mrb[12].mxu1 %v3630_v12  ;;  %v3077_v12 = vld [vmem:[%s4115_s1 + $0x604] ss:$12 sps:$4 sm:$0xff]  }
  0xa3   :  { %2747 = vmatpush3.bf16.msra.mxu1 %v3037_v46  ;;  %2281 = vmatprep.mubr.bf16.mxu1 %v2399_v38  ;;  %v3107_v38 = vld [vmem:[%s4115_s1 + $0x694] ss:$12 sps:$4 sm:$0xff]   ;;  %v3119_v46 = vld [vmem:[%s4115_s1 + $0x6c4] ss:$12 sps:$4 sm:$0xff]  }
  0xa4   :  { %2023 = vmatpush1.bf16.msra.mxu0 %v3033_v45  ;;  %2748 = vmatprep.subr.bf16.mxu1 %v3041_v48  ;;  %v3114_v45 = vld [vmem:[%s4115_s1 + $0x6b0] ss:$12 sps:$4 sm:$0xff]   ;;  %v3941_v48 = vld [vmem:[%s4116_s0 + $0x28] sm:$0xff] }
  0xa5   :  { %2024 = vmatprep.subr.bf16.mxu0 %v3040_v47  ;;  %v3936_v47 = vcombine.low %v3840_v16, %v3840_v16  ;;  %v3156_v16 = vld [vmem:[%s4115_s1 + $0x860] ss:$12 sps:$4 sm:$0xff]  }
  0xa7   :  { %2749 = vmatpush3.bf16.msra.mxu1 %v3042_v50  ;;  %v3120_v50 = vld [vmem:[%s4115_s1 + $0x788] ss:$12 sps:$4 sm:$0xff]  }
  0xa8   :  { %2025 = vmatpush1.bf16.msra.mxu0 %v3038_v49  ;;  %2750 = vmatprep.subr.bf16.mxu1 %v3046_v53  ;;  %v3117_v49 = vld [vmem:[%s4115_s1 + $0x6c0] ss:$12 sps:$4 sm:$0xff]   ;;  %v3123_v53 = vld [vmem:[%s4115_s1 + $0x6dc] ss:$12 sps:$4 sm:$0xff]  }
  0xa9   :  { %2026 = vmatprep.subr.bf16.mxu0 %v3045_v51  ;;  %v3183_v51 = vmov 0  }
  0xab   :  { %2751 = vmatpush3.bf16.msra.mxu1 %v3047_v54  ;;  %v3121_v54 = vld [vmem:[%s4115_s1 + $0x6d8] ss:$12 sps:$4 sm:$0xff]  }
  0xac   :  { %2027 = vmatpush1.bf16.msra.mxu0 %v3043_v52  ;;  %2752 = vmatprep.subr.bf16.mxu1 %v3051_v56  ;;  %v3955_v52 = vcombine.high %v3941_v48, %v3941_v48  ;;  %v3127_v56 = vld [vmem:[%s4115_s1 + $0x6f4] ss:$12 sps:$4 sm:$0xff]  }
  0xad   :  { %2028 = vmatprep.subr.bf16.mxu0 %v3050_v55  ;;  %v3124_v55 = vld [vmem:[%s4115_s1 + $0x7a0] ss:$12 sps:$4 sm:$0xff]  }
  0xaf   :  { %2753 = vmatpush3.bf16.msra.mxu1 %v3052_v58  ;;  %v3128_v58 = vld [vmem:[%s4115_s1 + $0x7b8] ss:$12 sps:$4 sm:$0xff]  }
  0xb0   :  { %2029 = vmatpush1.bf16.msra.mxu0 %v3048_v57  ;;  %2754 = vmatprep.subr.bf16.mxu1 %v3056_v60  ;;  %v3125_v57 = vld [vmem:[%s4115_s1 + $0x6f0] ss:$12 sps:$4 sm:$0xff]   ;;  %v3129_v60 = vld [vmem:[%s4115_s1 + $0x708] ss:$12 sps:$4 sm:$0xff]  }
  0xb1   :  { %2030 = vmatprep.subr.bf16.mxu0 %v3055_v59  ;;  %v3131_v59 = vld [vmem:[%s4115_s1 + $0x70c] ss:$12 sps:$4 sm:$0xff]  }
  0xb3   :  { %2755 = vmatpush3.bf16.msra.mxu1 %v3057_v62  ;;  %v3135_v62 = vld [vmem:[%s4115_s1 + $0x724] ss:$12 sps:$4 sm:$0xff]  }
  0xb4   :  { %2031 = vmatpush1.bf16.msra.mxu0 %v3053_v61  ;;  %2756 = vmatprep.subr.bf16.mxu1 %v3061_v0  ;;  %v3132_v61 = vld [vmem:[%s4115_s1 + $0x7d0] ss:$12 sps:$4 sm:$0xff]   ;;  %v3136_v0 = vld [vmem:[%s4115_s1 + $0x7e8] ss:$12 sps:$4 sm:$0xff]  }
  0xb5   :  { %2032 = vmatprep.subr.bf16.mxu0 %v3060_v63  ;;  %v3133_v63 = vld [vmem:[%s4115_s1 + $0x720] ss:$12 sps:$4 sm:$0xff]  }
  0xb7   :  { %2757 = vmatpush3.bf16.msra.mxu1 %v3062_v2  ;;  %v3137_v2 = vld [vmem:[%s4115_s1 + $0x738] ss:$12 sps:$4 sm:$0xff]  }
  0xb8   :  { %2033 = vmatpush1.bf16.msra.mxu0 %v3058_v1  ;;  %2758 = vmatprep.subr.bf16.mxu1 %v3066_v4  ;;  %v3139_v1 = vld [vmem:[%s4115_s1 + $0x73c] ss:$12 sps:$4 sm:$0xff]   ;;  %v3143_v4 = vld [vmem:[%s4115_s1 + $0x754] ss:$12 sps:$4 sm:$0xff]  }
  0xb9   :  { %2034 = vmatprep.subr.bf16.mxu0 %v3065_v3  ;;  %v3140_v3 = vld [vmem:[%s4115_s1 + $0x800] ss:$12 sps:$4 sm:$0xff]  }
  0xbb   :  { %2759 = vmatpush3.bf16.msra.mxu1 %v3067_v6  ;;  %v3144_v6 = vld [vmem:[%s4115_s1 + $0x818] ss:$12 sps:$4 sm:$0xff]  }
  0xbc   :  { %2035 = vmatpush1.bf16.msra.mxu0 %v3063_v5  ;;  %2760 = vmatprep.subr.bf16.mxu1 %v3071_v9  ;;  %v3141_v5 = vld [vmem:[%s4115_s1 + $0x750] ss:$12 sps:$4 sm:$0xff]   ;;  %v3145_v9 = vld [vmem:[%s4115_s1 + $0x768] ss:$12 sps:$4 sm:$0xff]  }
  0xbd   :  { %2036 = vmatprep.subr.bf16.mxu0 %v3070_v8  ;;  %v3147_v8 = vld [vmem:[%s4115_s1 + $0x76c] ss:$12 sps:$4 sm:$0xff]  }
  0xbf   :  { %2761 = vmatpush3.bf16.msra.mxu1 %v3072_v11  ;;  %v3151_v11 = vld [vmem:[%s4115_s1 + $0x784] ss:$12 sps:$4 sm:$0xff]  }
  0xc0   :  { %2037 = vmatpush1.bf16.msra.mxu0 %v3068_v10  ;;  %2768 = vmatprep.subr.bf16.mxu1 %v3078_v13  ;;  %v3148_v10 = vld [vmem:[%s4115_s1 + $0x830] ss:$12 sps:$4 sm:$0xff]   ;;  %v3152_v13 = vld [vmem:[%s4115_s1 + $0x848] ss:$12 sps:$4 sm:$0xff]  }
  0xc1   :  { %2047 = vmatprep.subr.bf16.mxu0 %v3077_v12  ;;  %v3149_v12 = vld [vmem:[%s4115_s1 + $0x780] ss:$12 sps:$4 sm:$0xff]  }
  0xc2   :  { %2282 = vmatmul.mubr.bf16.vlgmr.msra.gmra.mrb[16].mxu1 %v2398_v15 }
  0xc3   :  { %2039 = vmatmul.mubr.bf16.vlgmr.msra.gmra.mrb[0].mxu0 %v2398_v15  ;;  %2769 = vmatpush3.bf16.msra.mxu1 %v3079_v17  ;;  %v3153_v15 = vld [vmem:[%s4115_s1 + $0x798] ss:$12 sps:$4 sm:$0xff]   ;;  %v3160_v17 = vld [vmem:[%s4115_s1 + $0x7b4] ss:$12 sps:$4 sm:$0xff]  }
  0xc4   :  { %2048 = vmatpush1.bf16.msra.mxu0 %v3075_v14  ;;  %2770 = vmatprep.subr.bf16.mxu1 %v3083_v7  ;;  %v3155_v14 = vld [vmem:[%s4115_s1 + $0x79c] ss:$12 sps:$4 sm:$0xff]  }
  0xc5   :  { %2049 = vmatprep.subr.bf16.mxu0 %v3082_v18  ;;  %2321 = vmatprep.mubr.bf16.mxu1 %v2401_v19  ;;  %v2402_v18 = vcombine.low %v3941_v48, %v3941_v48  ;;  %v3158_v7 = vld [vmem:[%s4115_s1 + $0x7b0] ss:$12 sps:$4 sm:$0xff]  }
  0xc6   :  { %2079 = vmatprep.mubr.bf16.mxu0 %v2401_v19  ;;  %v3164_v19 = vld [vmem:[%s4115_s1 + $0x7cc] ss:$12 sps:$4 sm:$0xff]  }
  0xc7   :  { %2771 = vmatpush3.bf16.msra.mxu1 %v3084_v21  ;;  %v3167_v21 = vld [vmem:[%s4115_s1 + $0x7e4] ss:$12 sps:$4 sm:$0xff]  }
  0xc8   :  { %2050 = vmatpush1.bf16.msra.mxu0 %v3080_v20  ;;  %2772 = vmatprep.subr.bf16.mxu1 %v3088_v23  ;;  %v3162_v20 = vld [vmem:[%s4115_s1 + $0x7c8] ss:$12 sps:$4 sm:$0xff]  }
  0xc9   :  { %2051 = vmatprep.subr.bf16.mxu0 %v3087_v22  ;;  %v3165_v22 = vld [vmem:[%s4115_s1 + $0x7e0] ss:$12 sps:$4 sm:$0xff]   ;;  %v3170_v23 = vld [vmem:[%s4115_s1 + $0x7fc] ss:$12 sps:$4 sm:$0xff]  }
  0xcb   :  { %2773 = vmatpush3.bf16.msra.mxu1 %v3089_v25  ;;  %v3173_v25 = vld [vmem:[%s4115_s1 + $0x814] ss:$12 sps:$4 sm:$0xff]  }
  0xcc   :  { %2052 = vmatpush1.bf16.msra.mxu0 %v3085_v24  ;;  %2774 = vmatprep.subr.bf16.mxu1 %v3093_v27  ;;  %v3168_v24 = vld [vmem:[%s4115_s1 + $0x7f8] ss:$12 sps:$4 sm:$0xff]  }
  0xcd   :  { %2053 = vmatprep.subr.bf16.mxu0 %v3092_v26 }
  0xcf   :  { %2775 = vmatpush3.bf16.msra.mxu1 %v3094_v29 }
  0xd0   :  { %2054 = vmatpush1.bf16.msra.mxu0 %v3090_v28  ;;  %2776 = vmatprep.subr.bf16.mxu1 %v3098_v31  ;;  %v3171_v28 = vld [vmem:[%s4115_s1 + $0x810] ss:$12 sps:$4 sm:$0xff]  }
  0xd1   :  { %2055 = vmatprep.subr.bf16.mxu0 %v3097_v30  ;;  %v3176_v30 = vld [vmem:[%s4115_s1 + $0x82c] ss:$12 sps:$4 sm:$0xff]  }
  0xd3   :  { %2777 = vmatpush3.bf16.msra.mxu1 %v3099_v33  ;;  %v3179_v33 = vld [vmem:[%s4115_s1 + $0x844] ss:$12 sps:$4 sm:$0xff]  }
  0xd4   :  { %2056 = vmatpush1.bf16.msra.mxu0 %v3095_v32  ;;  %2778 = vmatprep.subr.bf16.mxu1 %v3103_v35  ;;  %v3174_v32 = vld [vmem:[%s4115_s1 + $0x828] ss:$12 sps:$4 sm:$0xff]  }
  0xd5   :  { %2057 = vmatprep.subr.bf16.mxu0 %v3102_v34  ;;  %v3177_v34 = vld [vmem:[%s4115_s1 + $0x840] ss:$12 sps:$4 sm:$0xff]   ;;  %v3182_v35 = vld [vmem:[%s4115_s1 + $0x85c] ss:$12 sps:$4 sm:$0xff]  }
  0xd7   :  { %2779 = vmatpush3.bf16.msra.mxu1 %v3104_v37 }
  0xd8   :  { %2058 = vmatpush1.bf16.msra.mxu0 %v3100_v36  ;;  %2780 = vmatprep.subr.bf16.mxu1 %v3108_v39  ;;  %v3180_v36 = vld [vmem:[%s4115_s1 + $0x858] ss:$12 sps:$4 sm:$0xff]  }
  0xd9   :  { %2059 = vmatprep.subr.bf16.mxu0 %v3107_v38 }
  0xdb   :  { %2781 = vmatpush3.bf16.msra.mxu1 %v3109_v41 }
  0xdc   :  { %2060 = vmatpush1.bf16.msra.mxu0 %v3105_v40  ;;  %2782 = vmatprep.subr.bf16.mxu1 %v3113_v43 }
  0xdd   :  { %2061 = vmatprep.subr.bf16.mxu0 %v3112_v42  ;;  %v383_v42 = vlaneseq }
  0xdf   :  { %2783 = vmatpush3.bf16.msra.mxu1 %v3114_v45  ;;  %v384_v43 = vshrl.u32 %v383_v42, 7  ;;  %v381_v45 = vld [vmem:[%s4117_s2] sm:$0x7] }
  0xe0   :  { %2062 = vmatpush1.bf16.msra.mxu0 %v3110_v44  ;;  %2329 = vmatprep.subr.bf16.mxu1 %v3183_v51 }
  0xe1   :  { %2063 = vmatprep.subr.bf16.mxu0 %v3119_v46  ;;  %v393_v44 = vsub.s32 2, %v384_v43 }
  0xe2   :  { %2322 = vmatmul.mubr.bf16.vlgmr.msra.gmra.mrb[20].mxu1 %v3936_v47 }
  0xe3   :  { %2330 = vmatpush1.bf16.msra.mxu1 %v3120_v50  ;;  %2675 = vmatprep.mubr.msk.bf16.mxu1 %vm1879_vm0, %v3955_v52  ;;  %v394_v46 = vrot.slane %v381_v45, %v393_v44 }
  0xe4   :  { %2064 = vmatpush1.bf16.msra.mxu0 %v3117_v49  ;;  %2331 = vmatprep.subr.bf16.mxu1 %v3183_v51 }
  0xe5   :  { %2065 = vmatprep.subr.bf16.mxu0 %v3123_v53 }
  0xe7   :  { %2332 = vmatpush1.bf16.msra.mxu1 %v3124_v55 }
  0xe8   :  { %2066 = vmatpush1.bf16.msra.mxu0 %v3121_v54  ;;  %2333 = vmatprep.subr.bf16.mxu1 %v3183_v51 }
  0xe9   :  { %2067 = vmatprep.subr.bf16.mxu0 %v3127_v56 }
  0xeb   :  { %2334 = vmatpush1.bf16.msra.mxu1 %v3128_v58 }
  0xec   :  { %2068 = vmatpush1.bf16.msra.mxu0 %v3125_v57  ;;  %2335 = vmatprep.subr.bf16.mxu1 %v3183_v51 }
  0xed   :  { %2069 = vmatprep.subr.bf16.mxu0 %v3131_v59 }
  0xef   :  { %2336 = vmatpush1.bf16.msra.mxu1 %v3132_v61 }
  0xf0   :  { %2070 = vmatpush1.bf16.msra.mxu0 %v3129_v60  ;;  %2337 = vmatprep.subr.bf16.mxu1 %v3183_v51 }
  0xf1   :  { %2071 = vmatprep.subr.bf16.mxu0 %v3135_v62 }
  0xf3   :  { %2338 = vmatpush1.bf16.msra.mxu1 %v3136_v0 }
  0xf4   :  { %2072 = vmatpush1.bf16.msra.mxu0 %v3133_v63  ;;  %2339 = vmatprep.subr.bf16.mxu1 %v3183_v51 }
  0xf5   :  { %2073 = vmatprep.subr.bf16.mxu0 %v3139_v1 }
  0xf7   :  { %2340 = vmatpush1.bf16.msra.mxu1 %v3140_v3 }
  0xf8   :  { %2074 = vmatpush1.bf16.msra.mxu0 %v3137_v2  ;;  %2341 = vmatprep.subr.bf16.mxu1 %v3183_v51 }
  0xf9   :  { %2075 = vmatprep.subr.bf16.mxu0 %v3143_v4 }
  0xfb   :  { %2342 = vmatpush1.bf16.msra.mxu1 %v3144_v6 }
  0xfc   :  { %2076 = vmatpush1.bf16.msra.mxu0 %v3141_v5  ;;  %2343 = vmatprep.subr.bf16.mxu1 %v3183_v51 }
  0xfd   :  { %2077 = vmatprep.subr.bf16.mxu0 %v3147_v8 }
  0xff   :  { %2344 = vmatpush1.bf16.msra.mxu1 %v3148_v10 }
 0x100   :  { %2078 = vmatpush1.bf16.msra.mxu0 %v3145_v9  ;;  %2345 = vmatprep.subr.bf16.mxu1 %v3183_v51 }
 0x101   :  { %2088 = vmatprep.subr.bf16.mxu0 %v3151_v11 }
 0x103   :  { %2080 = vmatmul.mubr.bf16.vlgmr.msra.gmra.mrb[0].mxu0 %v3936_v47  ;;  %2346 = vmatpush1.bf16.msra.mxu1 %v3152_v13 }
 0x104   :  { %2089 = vmatpush1.bf16.msra.mxu0 %v3149_v12  ;;  %2347 = vmatprep.subr.bf16.mxu1 %v3183_v51 }
 0x105   :  { %2090 = vmatprep.subr.bf16.mxu0 %v3155_v14  ;;  %2674 = vmatprep.mubr.msk.bf16.mxu0 %vm1879_vm0, %v3955_v52 }
 0x107   :  { %2348 = vmatpush1.bf16.msra.mxu1 %v3156_v16  ;;  %v385_v16 = vsub.s32 0, %v384_v43 }
 0x108   :  { %2091 = vmatpush1.bf16.msra.mxu0 %v3153_v15 }
 0x109   :  { %2092 = vmatprep.subr.bf16.mxu0 %v3160_v17  ;;  %v389_v17 = vsub.s32 1, %v384_v43 }
 0x10a   :  { %2362 = vmatmul.mubr.bf16.vlgmr.msra.gmra.mrb[24].mxu1 %v2402_v18 }
 0x10c   :  { %2093 = vmatpush1.bf16.msra.mxu0 %v3158_v7  ;;  %v390_v7 = vrot.slane %v381_v45, %v389_v17 }
 0x10d   :  { %2094 = vmatprep.subr.bf16.mxu0 %v3164_v19 }
 0x110   :  { %2095 = vmatpush1.bf16.msra.mxu0 %v3162_v20 }
 0x111   :  { %2096 = vmatprep.subr.bf16.mxu0 %v3167_v21 }
 0x114   :  { %2097 = vmatpush1.bf16.msra.mxu0 %v3165_v22 }
 0x115   :  { %2098 = vmatprep.subr.bf16.mxu0 %v3170_v23  ;;  %v4079_v26 = vpop.f32.mrb[0].mxu1 }
 0x116   :  { %v4081_v27 = vpop.f32.mrb[1].mxu1 }
 0x117   :  { %v1921_v29 = vpop.f32.mrb[2].mxu1  ;;  %v1920_v20 = vadd.f32 %v4081_v27, %v390_v7 }
 0x118   :  { %2099 = vmatpush1.bf16.msra.mxu0 %v3168_v24  ;;  %v1922_v31 = vpop.f32.mrb[3].mxu1 }
 0x119   :  { %2100 = vmatprep.subr.bf16.mxu0 %v3173_v25 }
 0x11c   :  { %2101 = vmatpush1.bf16.msra.mxu0 %v3171_v28 }
 0x11d   :  { %2102 = vmatprep.subr.bf16.mxu0 %v3176_v30 }
 0x120   :  { %2103 = vmatpush1.bf16.msra.mxu0 %v3174_v32 }
 0x121   :  { %2104 = vmatprep.subr.bf16.mxu0 %v3179_v33 }
 0x124   :  { %2105 = vmatpush1.bf16.msra.mxu0 %v3177_v34 }
 0x125   :  { %2106 = vmatprep.subr.bf16.mxu0 %v3182_v35 }
 0x128   :  { %2107 = vmatpush1.bf16.msra.mxu0 %v3180_v36 }
 0x12b   :  { %2121 = vmatmul.mubr.bf16.vlgmr.msra.gmra.mrb[0].mxu0 %v2402_v18  ;;  %v386_v18 = vrot.slane %v381_v45, %v385_v16 }
 0x12d   :  { %v1918_v19 = vadd.f32 %v4079_v26, %v386_v18 }
 0x135   :  { %v2696_v37 = vpop.f32.mrb[4].mxu1 }
 0x136   :  { %v2697_v38 = vpop.f32.mrb[5].mxu1 }
 0x137   :  { %v2698_v39 = vadd.f32 %v2697_v38, %v2696_v37  ;;  %v2699_v40 = vpop.f32.mrb[6].mxu1 }
 0x138   :  { %v2700_v41 = vpop.f32.mrb[7].mxu1 }
 0x139   :  { %v2164_v47 = vadd.f32 %v2698_v39, %v394_v46 }
 0x155   :  { %v2718_v48 = vpop.f32.mrb[8].mxu1 }
 0x156   :  { %v2719_v49 = vpop.f32.mrb[9].mxu1 }
 0x157   :  { %v2720_v50 = vadd.f32 %v2719_v49, %v2718_v48  ;;  %v2721_v51 = vpop.f32.mrb[10].mxu1 }
 0x158   :  { %v2722_v53 = vpop.f32.mrb[11].mxu1 }
 0x159   :  { %v2204_v52 = vadd.f32 %v2720_v50, %v2164_v47 }
 0x175   :  { %v2740_v54 = vpop.f32.mrb[12].mxu1 }
 0x176   :  { %v2741_v55 = vpop.f32.mrb[13].mxu1 }
 0x177   :  { %v2742_v56 = vadd.f32 %v2741_v55, %v2740_v54  ;;  %v2743_v57 = vpop.f32.mrb[14].mxu1 }
 0x178   :  { %v2744_v58 = vpop.f32.mrb[15].mxu1 }
 0x179   :  { %v2244_v59 = vadd.f32 %v2742_v56, %v2204_v52 }
 0x195   :  { %v2762_v60 = vpop.f32.mrb[16].mxu1 }
 0x196   :  { %v2763_v61 = vpop.f32.mrb[17].mxu1 }
 0x197   :  { %v2764_v62 = vadd.f32 %v2763_v61, %v2762_v60  ;;  %v2765_v63 = vpop.f32.mrb[18].mxu1 }
 0x198   :  { %v2766_v0 = vpop.f32.mrb[19].mxu1 }
 0x199   :  { %v2284_v1 = vadd.f32 %v2764_v62, %v2244_v59 }
 0x1b5   :  { %v2784_v2 = vpop.f32.mrb[20].mxu1 }
 0x1b6   :  { %v2785_v3 = vpop.f32.mrb[21].mxu1 }
 0x1b7   :  { %v2786_v4 = vadd.f32 %v2785_v3, %v2784_v2  ;;  %v2787_v5 = vpop.f32.mrb[22].mxu1 }
 0x1b8   :  { %v2788_v6 = vpop.f32.mrb[23].mxu1 }
 0x1b9   :  { %v2324_v8 = vadd.f32 %v2786_v4, %v2284_v1 }
 0x1dd   :  { %v2363_v9 = vpop.f32.mrb[24].mxu1 }
 0x1de   :  { %v2364_v10 = vadd.f32 %v2363_v9, %v2324_v8  ;;  %v2365_v11 = vpop.f32.mrb[25].mxu1 }
 0x1df   :  { %v2366_v12 = vpop.f32.mrb[26].mxu1 }
 0x1e0   :  { %v2371_v13 = vmax.f32 %v2364_v10, 0.0  ;;  %v2367_v14 = vpop.f32.mrb[27].mxu1 }
 0x1e2   :  { %v2679_v15 = vpack.c.bf16 %v2371_v13, %v2371_v13 }
 0x1e4   :  { %2387 = vst.msk [vmem:[%s4118_s3 + $0x8] sm:$0xf] %vm2386_vm1, %v2679_v15 }
 0x1fe   :  { %v2122_v21 = vpop.f32.mrb[0].mxu0 }
 0x1ff   :  { %v2791_v22 = vadd.f32 %v2122_v21, %v1918_v19  ;;  %v2124_v23 = vpop.f32.mrb[1].mxu0 }
 0x200   :  { %v2793_v24 = vadd.f32 %v2124_v23, %v1920_v20  ;;  %v2126_v25 = vpop.f32.mrb[2].mxu0 }
 0x201   :  { %v2369_v28 = vmax.f32 %v2791_v22, 0.0  ;;  %v2127_v29 = vpop.f32.mrb[3].mxu0 }
 0x202   :  { %v2370_v30 = vmax.f32 %v2793_v24, 0.0 }
 0x204   :  { %v2678_v31 = vpack.c.bf16 %v2370_v30, %v2369_v28 }
 0x206   :  { %2385 = vst [vmem:[%s4118_s3] sm:$0xff] %v2678_v31 }

// kernel: encoder_decoder_forward.21
= control target key start
LH: loop header
LB: loop body
LE: loop exit
PB: predicated region body
PF: predicated region fallthrough
CT: control target
= control target key end

     0   :  { %s1175_s15 = smov 0   ;;  %s1177_s16 = smov 0   ;;  %s1336_s0 = inlined_call_operand.vmem [shape: bf16[32,576], index: 0, kind: input, shape index: {}]   ;;  %s1337_s1 = inlined_call_operand.vmem [shape: bf16[576,64], index: 1, kind: input, shape index: {}]   ;;  %s1338_s2 = inlined_call_operand.vmem [shape: f32[1,64], index: 2, kind: input, shape index: {}]   ;;  %s1339_s3 = inlined_call_operand.vmem [shape: bf16[32,64], index: 3, kind: input, shape index: {}]   ;;  %s1340_s4 = inlined_call_operand.vmem [shape: bf16[32,64], index: 4, kind: output, shape index: {}]  }
   0x1   :  { %s1179_s17 = smov 0  }
   0x2 LB: > { %s33_s18 = sadd.s32 1, %s1142_s16  ;;  %p933_p0 = scmp.ge.s32.totalorder %s1146_s17, 1  ;;  %s1146_s17 = sphi %s1179_s17, %s14_s17   ;;  %s1142_s16 = sphi %s1177_s16, %s1342_s16   ;;  %s1138_s15 = sphi %s1175_s15, %s1341_s15  }
   0x3   : > { %p35_p1 = scmp.ge.s32.totalorder %s33_s18, 2  ;;  %p232_p2 = scmp.lt.s32.totalorder %s1146_s17, 3 }
   0x5   : > { %s1344_s18 = smov (%p35_p1, %s33_s18), 0  ;;  %p233_p3 = pnand %p933_p0, %p232_p2 }
   0x6   : > { %v1081_v0 = vld [vmem:[%s1337_s1 + $0x40] sm:$0xff] (!%p233_p3)   ;;  %v1085_v4 = vld [vmem:[%s1337_s1 + $0x48] sm:$0xff] (!%p233_p3)   ;;  %v1089_v8 = vld [vmem:[%s1337_s1 + $0x50] sm:$0xff] (!%p233_p3)   ;;  %s934_s25 = sshll.u32 (!%p233_p3), %s1138_s15, 1  ;;  %v1148_v33 = vmov (!%p233_p3), 0.0   ;;  %vm1149_vm0 = vmmov (!%p233_p3), 0  }
   0x7   : > { %236 = sbr.rel (%p233_p3) target bundleno = 276 (0x114), region = 36  ;;  %v1082_v1 = vld [vmem:[%s1337_s1] sm:$0xff] (!%p233_p3)   ;;  %993 = vmatprep.subr.bf16.mxu0 (!%p233_p3), %v1081_v0  ;;  %v1086_v5 = vld [vmem:[%s1337_s1 + $0x8] sm:$0xff] (!%p233_p3)   ;;  %v1090_v9 = vld [vmem:[%s1337_s1 + $0x10] sm:$0xff] (!%p233_p3)   ;;  %p287_p4 = scmp.lt.s32.totalorder (!%p233_p3), %s934_s25, 3  ;;  %vm654_vm1 = vcmask (!%p233_p3), 523264  }
   0x8   : > { %v1083_v2 = vld [vmem:[%s1337_s1 + $0xc0] sm:$0xff] (!%p233_p3)   ;;  %994 = vmatpush3.bf16.msra.mxu0 (!%p233_p3), %v1082_v1  ;;  %v1087_v6 = vld [vmem:[%s1337_s1 + $0xc8] sm:$0xff] (!%p233_p3)   ;;  %v1091_v10 = vld [vmem:[%s1337_s1 + $0xd0] sm:$0xff] (!%p233_p3)   ;;  %vm795_vm2 = vcmask (!%p233_p3), 519168  }
   0x9   : > { %v1084_v3 = vld [vmem:[%s1337_s1 + $0x80] sm:$0xff] (!%p233_p3)   ;;  %1015 = vmatprep.subr.bf16.mxu1 (!%p233_p3), %v1083_v2  ;;  %995 = vmatprep.subr.bf16.mxu0 (!%p233_p3), %v1085_v4  ;;  %v1088_v7 = vld [vmem:[%s1337_s1 + $0x88] sm:$0xff] (!%p233_p3)   ;;  %v1092_v11 = vld [vmem:[%s1337_s1 + $0x90] sm:$0xff] (!%p233_p3)  }
   0xa   : > { %1016 = vmatpush3.bf16.msra.mxu1 (!%p233_p3), %v1084_v3  ;;  %v1093_v12 = vld [vmem:[%s1337_s1 + $0x58] sm:$0xff] (!%p233_p3)   ;;  %v1097_v16 = vld [vmem:[%s1337_s1 + $0x60] sm:$0xff] (!%p233_p3)   ;;  %v1101_v20 = vld [vmem:[%s1337_s1 + $0x68] sm:$0xff] (!%p233_p3)  }
   0xb   : > { %1017 = vmatprep.subr.bf16.mxu1 (!%p233_p3), %v1087_v6  ;;  %v1094_v13 = vld [vmem:[%s1337_s1 + $0x18] sm:$0xff] (!%p233_p3)   ;;  %v1098_v17 = vld [vmem:[%s1337_s1 + $0x20] sm:$0xff] (!%p233_p3)   ;;  %v1102_v21 = vld [vmem:[%s1337_s1 + $0x28] sm:$0xff] (!%p233_p3)  }
   0xc   : > { %996 = vmatpush3.bf16.msra.mxu0 (!%p233_p3), %v1086_v5  ;;  %v1095_v14 = vld [vmem:[%s1337_s1 + $0xd8] sm:$0xff] (!%p233_p3)   ;;  %v1099_v18 = vld [vmem:[%s1337_s1 + $0xe0] sm:$0xff] (!%p233_p3)   ;;  %v1103_v22 = vld [vmem:[%s1337_s1 + $0xe8] sm:$0xff] (!%p233_p3)  }
   0xd   : > { %997 = vmatprep.subr.bf16.mxu0 (!%p233_p3), %v1089_v8  ;;  %v1096_v15 = vld [vmem:[%s1337_s1 + $0x98] sm:$0xff] (!%p233_p3)   ;;  %v1100_v19 = vld [vmem:[%s1337_s1 + $0xa0] sm:$0xff] (!%p233_p3)   ;;  %v1104_v23 = vld [vmem:[%s1337_s1 + $0xa8] sm:$0xff] (!%p233_p3)  }
   0xe   : > { %1018 = vmatpush3.bf16.msra.mxu1 %v1088_v7  ;;  %s1346_s25 = smov (!%p287_p4, %s934_s25), 3  ;;  %v1105_v24 = vld [vmem:[%s1337_s1 + $0x70] sm:$0xff]   ;;  %v1109_v28 = vld [vmem:[%s1337_s1 + $0x78] sm:$0xff]   ;;  %v1119_v37 = vld [vmem:[%s1337_s1 + $0x100] sm:$0xff]  }
   0xf   : > { %1019 = vmatprep.subr.bf16.mxu1 %v1091_v10  ;;  %s1054_s26 = smul.u32 20, %s1346_s25  ;;  %v1106_v25 = vld [vmem:[%s1337_s1 + $0x30] sm:$0xff]   ;;  %v1110_v29 = vld [vmem:[%s1337_s1 + $0x38] sm:$0xff]   ;;  %v1120_v38 = vld [vmem:[%s1337_s1 + $0x108] sm:$0xff]   ;;  %s937_s6 = sshll.u32 %s1346_s25, 2 }
  0x10   : > { %998 = vmatpush3.bf16.msra.mxu0 %v1090_v9  ;;  %v1107_v26 = vld [vmem:[%s1337_s1 + $0xf0] sm:$0xff]   ;;  %v1111_v30 = vld [vmem:[%s1337_s1 + $0xf8] sm:$0xff]   ;;  %v940_v43 = vld [vmem:[%s1338_s2] ss:$0 sm:$0xff]  ;;  %s316_s8 = scalar_lea.vmem %s1339_s3, %s937_s6  ;;  %s325_s25 = scalar_lea.vmem %s1340_s4, %s937_s6 }
  0x11   : > { %999 = vmatprep.subr.bf16.mxu0 %v1093_v12  ;;  %v1108_v27 = vld [vmem:[%s1337_s1 + $0xb0] sm:$0xff]   ;;  %s1289_s10 = scalar_lea.vmem %s1336_s0, %s1054_s26  ;;  %v1115_v34 = vld [vmem:[%s1337_s1 + $0xb8] sm:$0xff]   ;;  %v990_v59 = vld [vmem:[%s316_s8] sm:$0xff]  }
  0x12   : > { %1020 = vmatpush3.bf16.msra.mxu1 %v1092_v11  ;;  %v1112_v31 = vld [vmem:[%s1289_s10] ss:$20 sps:$4 sm:$0xff]   ;;  %v1114_v32 = vld [vmem:[%s1289_s10 + $0x4] ss:$20 sps:$4 sm:$0xff]   ;;  %v1116_v35 = vld [vmem:[%s1289_s10 + $0x8] ss:$20 sps:$4 sm:$0xff]   ;;  %v991_v60 = vunpack.c.l.bf16 %v990_v59  ;;  %v992_v0 = vunpack.c.h.bf16 %v990_v59 }
  0x13   : > { %1021 = vmatprep.subr.bf16.mxu1 %v1095_v14  ;;  %690 = vmatprep.mubr.bf16.mxu0 %v1114_v32  ;;  %v1118_v36 = vld [vmem:[%s1289_s10 + $0xc] ss:$20 sps:$4 sm:$0xff]   ;;  %v1121_v39 = vld [vmem:[%s1337_s1 + $0x110] sm:$0xff]   ;;  %v1122_v40 = vld [vmem:[%s1337_s1 + $0x118] sm:$0xff]  }
  0x14   : > { %1000 = vmatpush3.bf16.msra.mxu0 %v1094_v13  ;;  %731 = vmatprep.mubr.bf16.mxu1 %v1118_v36  ;;  %v1123_v41 = vld [vmem:[%s1289_s10 + $0x10] ss:$20 sps:$4 sm:$0xff]  }
  0x15   : > { %1001 = vmatprep.subr.bf16.mxu0 %v1097_v16 }
  0x16   : > { %1022 = vmatpush3.bf16.msra.mxu1 %v1096_v15 }
  0x17   : > { %1023 = vmatprep.subr.bf16.mxu1 %v1099_v18 }
  0x18   : > { %1002 = vmatpush3.bf16.msra.mxu0 %v1098_v17 }
  0x19   : > { %1003 = vmatprep.subr.bf16.mxu0 %v1101_v20 }
  0x1a   : > { %1024 = vmatpush3.bf16.msra.mxu1 %v1100_v19 }
  0x1b   : > { %1025 = vmatprep.subr.bf16.mxu1 %v1103_v22 }
  0x1c   : > { %1004 = vmatpush3.bf16.msra.mxu0 %v1102_v21 }
  0x1d   : > { %1005 = vmatprep.subr.bf16.mxu0 %v1105_v24 }
  0x1e   : > { %1026 = vmatpush3.bf16.msra.mxu1 %v1104_v23 }
  0x1f   : > { %1027 = vmatprep.subr.bf16.mxu1 %v1107_v26 }
  0x20   : > { %1006 = vmatpush3.bf16.msra.mxu0 %v1106_v25 }
  0x21   : > { %1007 = vmatprep.subr.bf16.mxu0 %v1109_v28 }
  0x22   : > { %1028 = vmatpush3.bf16.msra.mxu1 %v1108_v27 }
  0x23   : > { %1029 = vmatprep.subr.bf16.mxu1 %v1111_v30 }
  0x24   : > { %1008 = vmatpush3.bf16.msra.mxu0 %v1110_v29 }
  0x25   : > { %1042 = vmatprep.subr.bf16.mxu0 %v1148_v33 }
  0x26   : > { %1030 = vmatpush3.bf16.msra.mxu1 %v1115_v34 }
  0x27   : > { %691 = vmatmul.mubr.bf16.vlgmr.msra.gmra.mrb[0].mxu0 %v1112_v31 }
  0x28   : > { %1050 = vmatprep.mubr.msk.bf16.mxu0 %vm1149_vm0, %v1148_v33  ;;  %1043 = vmatpush3.bf16.msra.mxu0 %v1119_v37 }
  0x29   : > { %732 = vmatmul.mubr.bf16.vlgmr.msra.gmra.mrb[0].mxu1 %v1116_v35  ;;  %1044 = vmatprep.subr.bf16.mxu0 %v1148_v33 }
  0x2c   : > { %1045 = vmatpush3.bf16.msra.mxu0 %v1120_v38 }
  0x2d   : > { %1046 = vmatprep.subr.bf16.mxu0 %v1148_v33 }
  0x30   : > { %1047 = vmatpush3.bf16.msra.mxu0 %v1121_v39 }
  0x31   : > { %1048 = vmatprep.subr.bf16.mxu0 %v1148_v33 }
  0x34   : > { %1049 = vmatpush3.bf16.msra.mxu0 %v1122_v40 }
  0x37   : > { %1051 = vmatmul.mubr.msk.bf16.vlgmr.msra.gmra.mrb[4].mxu0 %vm654_vm1, %v1123_v41 }
  0xfa   : > { %v1009_v42 = vpop.f32.mrb[0].mxu0 }
  0xfb   : > { %v1010_v44 = vpop.f32.mrb[1].mxu0 }
  0xfc   : > { %v1011_v45 = vadd.f32 %v1010_v44, %v1009_v42  ;;  %v1012_v46 = vpop.f32.mrb[2].mxu0  ;;  %v1031_v47 = vpop.f32.mrb[0].mxu1 }
  0xfd   : > { %v1013_v48 = vpop.f32.mrb[3].mxu0  ;;  %v1032_v51 = vpop.f32.mrb[1].mxu1 }
  0xfe   : > { %v693_v49 = vadd.f32 %v1011_v45, %v940_v43  ;;  %v1014_v50 = vadd.f32 %v1013_v48, %v1012_v46  ;;  %v1033_v52 = vadd.f32 %v1032_v51, %v1031_v47  ;;  %v1034_v53 = vpop.f32.mrb[2].mxu1 }
  0xff   : > { %v1035_v55 = vpop.f32.mrb[3].mxu1 }
 0x100   : > { %v696_v54 = vadd.f32 %v1014_v50, %v940_v43  ;;  %v1036_v56 = vadd.f32 %v1035_v55, %v1034_v53  ;;  %v734_v57 = vadd.f32 %v1033_v52, %v693_v49 }
 0x102   : > { %v737_v58 = vadd.f32 %v1036_v56, %v696_v54 }
 0x10a   : > { %v774_v61 = vpop.f32.mrb[4].mxu0 }
 0x10b   : > { %v775_v62 = vadd.f32 %v774_v61, %v734_v57  ;;  %v1052_v63 = vpop.f32.mrb[5].mxu0 }
 0x10c   : > { %v777_v1 = vpop.f32.mrb[6].mxu0 }
 0x10d   : > { %v785_v2 = vadd.f32 %v991_v60, %v775_v62  ;;  %v778_v3 = vadd.f32 %v777_v1, %v737_v58  ;;  %v1053_v4 = vpop.f32.mrb[7].mxu0 }
 0x10f   : > { %v987_v5 = vpack.c.bf16 %v785_v2, %v785_v2  ;;  %v786_v6 = vadd.f32 %v992_v0, %v778_v3 }
 0x111   : > { %796 = vst.msk [vmem:[%s325_s25] sm:$0xf] %vm795_vm2, %v987_v5  ;;  %v988_v7 = vpack.c.bf16 %v786_v6, %v786_v6 }
 0x113   : > { %797 = vst.msk [vmem:[%s325_s25 + $0x4] sm:$0xf] %vm795_vm2, %v988_v7 }
 0x114 PF: > { %s14_s17 = sadd.s32 1, %s1146_s17   ;;  %s1341_s15 = smov %s1142_s16 }
 0x115   : > { %p11_p5 = scmp.ge.s32.totalorder %s14_s17, 4   ;;  %s1342_s16 = smov %s1344_s18 }
 0x117   :  { %13 = sbr.rel (!%p11_p5) target bundleno = 2 (0x2), region = 75 }

// kernel: encoder_decoder_forward.18
= control target key start
LH: loop header
LB: loop body
LE: loop exit
PB: predicated region body
PF: predicated region fallthrough
CT: control target
= control target key end

     0   :  { %s652_s12 = smov 0   ;;  %s654_s13 = smov 0   ;;  %s722_s0 = inlined_call_operand.vmem [shape: bf16[32,160], index: 0, kind: input, shape index: {}]   ;;  %s723_s1 = inlined_call_operand.vmem [shape: bf16[160,64], index: 1, kind: input, shape index: {}]   ;;  %s724_s2 = inlined_call_operand.vmem [shape: f32[1,64], index: 2, kind: input, shape index: {}]   ;;  %s725_s3 = inlined_call_operand.vmem [shape: bf16[32,64], index: 3, kind: output, shape index: {}]  }
   0x1   :  { %s656_s14 = smov 0  }
   0x2 LB: > { %s32_s15 = sadd.s32 1, %s625_s13  ;;  %p542_p0 = scmp.ge.s32.totalorder %s629_s14, 1  ;;  %s629_s14 = sphi %s656_s14, %s13_s14   ;;  %s625_s13 = sphi %s654_s13, %s727_s13   ;;  %s621_s12 = sphi %s652_s12, %s726_s12  }
   0x3   : > { %p34_p1 = scmp.ge.s32.totalorder %s32_s15, 2  ;;  %p191_p2 = scmp.lt.s32.totalorder %s629_s14, 3 }
   0x5   : > { %s729_s15 = smov (%p34_p1, %s32_s15), 0  ;;  %p192_p3 = pnand %p542_p0, %p191_p2 }
   0x6   : > { %v594_v0 = vld [vmem:[%s723_s1] sm:$0xff] (!%p192_p3)   ;;  %v631_v1 = vmov (!%p192_p3), 0   ;;  %s543_s18 = sshll.u32 (!%p192_p3), %s621_s12, 1  ;;  %v595_v2 = vld [vmem:[%s723_s1 + $0x8] sm:$0xff] (!%p192_p3)   ;;  %v596_v3 = vld [vmem:[%s723_s1 + $0x10] sm:$0xff] (!%p192_p3)   ;;  %vm366_vm0 = vcmask (!%p192_p3), 261120  }
   0x7   : > { %195 = sbr.rel (%p192_p3) target bundleno = 266 (0x10a), region = 32  ;;  %370 = vmatprep.subr.bf16.mxu0 (!%p192_p3), %v631_v1  ;;  %p236_p4 = scmp.lt.s32.totalorder (!%p192_p3), %s543_s18, 3  ;;  %v597_v4 = vld [vmem:[%s723_s1 + $0x18] sm:$0xff] (!%p192_p3)   ;;  %v598_v6 = vld [vmem:[%s723_s1 + $0x20] sm:$0xff] (!%p192_p3)   ;;  %v599_v7 = vld [vmem:[%s723_s1 + $0x28] sm:$0xff] (!%p192_p3)   ;;  %vm419_vm1 = vcmask (!%p192_p3), 519168  }
   0x8   : > { %371 = vmatpush1.bf16.msra.mxu0 (!%p192_p3), %v594_v0  ;;  %v600_v8 = vld [vmem:[%s723_s1 + $0x30] sm:$0xff] (!%p192_p3)   ;;  %v601_v9 = vld [vmem:[%s723_s1 + $0x38] sm:$0xff] (!%p192_p3)   ;;  %v602_v10 = vld [vmem:[%s723_s1 + $0x40] sm:$0xff] (!%p192_p3)  }
   0x9   : > { %372 = vmatprep.subr.bf16.mxu0 (!%p192_p3), %v631_v1  ;;  %v603_v11 = vld [vmem:[%s723_s1 + $0x48] sm:$0xff] (!%p192_p3)   ;;  %v548_v13 = vld [vmem:[%s724_s2] ss:$0 sm:$0xff] (!%p192_p3) }
   0xc   : > { %373 = vmatpush1.bf16.msra.mxu0 (!%p192_p3), %v595_v2 }
   0xd   : > { %374 = vmatprep.subr.bf16.mxu0 (!%p192_p3), %v631_v1 }
   0xe   : > { %s731_s18 = smov (!%p236_p4, %s543_s18), 3 }
   0xf   : > { %s566_s23 = sshll.u32 %s731_s18, 3  ;;  %s547_s20 = sshll.u32 %s731_s18, 2 }
  0x10   : > { %s243_s26 = scalar_lea.vmem %s722_s0, %s566_s23  ;;  %375 = vmatpush1.bf16.msra.mxu0 %v596_v3  ;;  %s265_s23 = scalar_lea.vmem %s725_s3, %s547_s20 }
  0x11   : > { %376 = vmatprep.subr.bf16.mxu0 %v631_v1  ;;  %v606_v5 = vld [vmem:[%s243_s26 + $0x4] ss:$8 sps:$4 sm:$0xff]   ;;  %v604_v12 = vld [vmem:[%s243_s26] ss:$8 sps:$4 sm:$0xff]  }
  0x12   : > { %561 = vmatprep.mubr.msk.bf16.mxu0 %vm366_vm0, %v606_v5 }
  0x14   : > { %377 = vmatpush1.bf16.msra.mxu0 %v597_v4 }
  0x15   : > { %378 = vmatprep.subr.bf16.mxu0 %v631_v1 }
  0x18   : > { %379 = vmatpush1.bf16.msra.mxu0 %v598_v6 }
  0x19   : > { %380 = vmatprep.subr.bf16.mxu0 %v631_v1 }
  0x1c   : > { %381 = vmatpush1.bf16.msra.mxu0 %v599_v7 }
  0x1d   : > { %382 = vmatprep.subr.bf16.mxu0 %v631_v1 }
  0x20   : > { %383 = vmatpush1.bf16.msra.mxu0 %v600_v8 }
  0x21   : > { %384 = vmatprep.subr.bf16.mxu0 %v631_v1 }
  0x24   : > { %385 = vmatpush1.bf16.msra.mxu0 %v601_v9 }
  0x25   : > { %386 = vmatprep.subr.bf16.mxu0 %v631_v1 }
  0x28   : > { %387 = vmatpush1.bf16.msra.mxu0 %v602_v10 }
  0x29   : > { %388 = vmatprep.subr.bf16.mxu0 %v631_v1 }
  0x2c   : > { %389 = vmatpush1.bf16.msra.mxu0 %v603_v11 }
  0x2f   : > { %403 = vmatmul.mubr.bf16.vlgmr.msra.gmra.mrb[0].mxu0 %v604_v12 }
 0x102   : > { %v404_v14 = vpop.f32.mrb[0].mxu0 }
 0x103   : > { %v405_v15 = vadd.f32 %v548_v13, %v404_v14  ;;  %v406_v16 = vpop.f32.mrb[1].mxu0 }
 0x104   : > { %v407_v17 = vpop.f32.mrb[2].mxu0 }
 0x105   : > { %v567_v18 = vpack.c.bf16 %v405_v15, %v405_v15  ;;  %v408_v19 = vadd.f32 %v548_v13, %v407_v17  ;;  %v409_v20 = vpop.f32.mrb[3].mxu0 }
 0x107   : > { %420 = vst.msk [vmem:[%s265_s23] sm:$0xf] %vm419_vm1, %v567_v18  ;;  %v568_v21 = vpack.c.bf16 %v408_v19, %v408_v19 }
 0x109   : > { %421 = vst.msk [vmem:[%s265_s23 + $0x4] sm:$0xf] %vm419_vm1, %v568_v21 }
 0x10a PF: > { %s13_s14 = sadd.s32 1, %s629_s14   ;;  %s726_s12 = smov %s625_s13 }
 0x10b   : > { %p10_p5 = scmp.ge.s32.totalorder %s13_s14, 4   ;;  %s727_s13 = smov %s729_s15 }
 0x10d   :  { %12 = sbr.rel (!%p10_p5) target bundleno = 2 (0x2), region = 68 }

// kernel: encoder_decoder_forward.17
= control target key start
LH: loop header
LB: loop body
LE: loop exit
PB: predicated region body
PF: predicated region fallthrough
CT: control target
= control target key end

     0   :  { %s709_s12 = smov 0   ;;  %s711_s13 = smov 0   ;;  %s776_s0 = inlined_call_operand.vmem [shape: bf16[128,56], index: 0, kind: input, shape index: {}]   ;;  %s777_s1 = inlined_call_operand.vmem [shape: bf16[56,64], index: 1, kind: input, shape index: {}]   ;;  %s778_s2 = inlined_call_operand.vmem [shape: f32[1,64], index: 2, kind: input, shape index: {}]   ;;  %s779_s3 = inlined_call_operand.vmem [shape: bf16[128,64], index: 3, kind: output, shape index: {}]  }
   0x1   :  { %s713_s14 = smov 0  }
   0x2 LB: > { %s32_s15 = sadd.s32 1, %s683_s13  ;;  %p563_p0 = scmp.ge.s32.totalorder %s687_s14, 1  ;;  %s687_s14 = sphi %s713_s14, %s13_s14   ;;  %s683_s13 = sphi %s711_s13, %s781_s13   ;;  %s679_s12 = sphi %s709_s12, %s780_s12  }
   0x3   : > { %p34_p1 = scmp.ge.s32.totalorder %s32_s15, 2  ;;  %p188_p2 = scmp.lt.s32.totalorder %s687_s14, 3 }
   0x5   : > { %s783_s15 = smov (%p34_p1, %s32_s15), 0  ;;  %p189_p3 = pnand %p563_p0, %p188_p2 }
   0x6   : > { %v657_v0 = vld [vmem:[%s777_s1] sm:$0xff] (!%p189_p3)   ;;  %v658_v1 = vld [vmem:[%s777_s1 + $0x8] sm:$0xff] (!%p189_p3)   ;;  %s564_s20 = sshll.u32 (!%p189_p3), %s679_s12, 3  ;;  %v659_v2 = vld [vmem:[%s777_s1 + $0x10] sm:$0xff] (!%p189_p3)   ;;  %vm323_vm0 = vcmask (!%p189_p3), 457728   ;;  %vm336_vm1 = vcmask (!%p189_p3), 1043456  }
   0x7   : > { %192 = sbr.rel (%p189_p3) target bundleno = 243 (0xf3), region = 32  ;;  %607 = vmatprep.subr.bf16.mxu0 (!%p189_p3), %v657_v0  ;;  %623 = vmatprep.subr.bf16.mxu1 (!%p189_p3), %v657_v0  ;;  %p230_p4 = scmp.lt.s32.totalorder (!%p189_p3), %s564_s20, 15  ;;  %v660_v3 = vld [vmem:[%s777_s1 + $0x18] ss:$0 sps:$4 sm:$0xff] (!%p189_p3)   ;;  %v568_v9 = vld [vmem:[%s778_s2] ss:$0 sm:$0xff] (!%p189_p3) }
   0x8   : > { %608 = vmatpush3.bf16.msra.mxu0 (!%p189_p3), %v657_v0  ;;  %627 = vmatpush3.bf16.msra.mxu1 (!%p189_p3), %v657_v0  ;;  %v338_v6 = vsel (!%p189_p3), %vm336_vm1, %v660_v3, 0  ;;  %vm437_vm2 = vcmask (!%p189_p3), 519168  }
   0x9   : > { %609 = vmatprep.subr.bf16.mxu0 (!%p189_p3), %v658_v1  ;;  %624 = vmatprep.subr.bf16.mxu1 (!%p189_p3), %v658_v1 }
   0xc   : > { %610 = vmatpush3.bf16.msra.mxu0 (!%p189_p3), %v658_v1  ;;  %628 = vmatpush3.bf16.msra.mxu1 (!%p189_p3), %v658_v1 }
   0xd   : > { %611 = vmatprep.subr.bf16.mxu0 (!%p189_p3), %v659_v2  ;;  %625 = vmatprep.subr.bf16.mxu1 (!%p189_p3), %v659_v2 }
   0xe   : > { %s785_s20 = smov (!%p230_p4, %s564_s20), 15 }
   0xf   : > { %s565_s23 = sshll.u32 %s785_s20, 2 }
  0x10   : > { %s236_s28 = scalar_lea.vmem %s776_s0, %s565_s23  ;;  %612 = vmatpush3.bf16.msra.mxu0 %v659_v2  ;;  %629 = vmatpush3.bf16.msra.mxu1 %v659_v2  ;;  %s257_s6 = scalar_lea.vmem %s779_s3, %s565_s23 }
  0x11   : > { %v661_v4 = vld [vmem:[%s236_s28] sm:$0xff]   ;;  %v662_v5 = vld [vmem:[%s236_s28 + $0x10] sm:$0xff]   ;;  %631 = vmatprep.subr.msk.bf16.mxu0 %vm336_vm1, %v660_v3  ;;  %632 = vmatprep.subr.msk.bf16.mxu1 %vm336_vm1, %v660_v3  ;;  %v663_v7 = vld [vmem:[%s236_s28 + $0x8] sm:$0xff]  }
  0x12   : > { %615 = vmatprep.mubr.msk.bf16.mxu0 %vm323_vm0, %v661_v4  ;;  %619 = vmatprep.mubr.msk.bf16.mxu1 %vm323_vm0, %v662_v5  ;;  %v664_v8 = vld [vmem:[%s236_s28 + $0x18] sm:$0xff]  }
  0x14   : > { %614 = vmatpush3.bf16.msra.mxu0 %v338_v6  ;;  %630 = vmatpush3.bf16.msra.mxu1 %v338_v6 }
  0x17   : > { %616 = vmatmul.mubr.msk.bf16.vlgmr.msra.gmra.mrb[0].mxu0 %vm323_vm0, %v663_v7  ;;  %620 = vmatmul.mubr.msk.bf16.vlgmr.msra.gmra.mrb[0].mxu1 %vm323_vm0, %v664_v8 }
  0xea   : > { %v617_v10 = vpop.f32.mrb[0].mxu0  ;;  %v621_v11 = vpop.f32.mrb[0].mxu1 }
  0xeb   : > { %v383_v12 = vadd.f32 %v617_v10, %v568_v9  ;;  %v399_v13 = vadd.f32 %v621_v11, %v568_v9  ;;  %v374_v14 = vpop.f32.mrb[1].mxu0  ;;  %v390_v15 = vpop.f32.mrb[1].mxu1 }
  0xec   : > { %v375_v16 = vadd.f32 %v568_v9, %v374_v14  ;;  %v391_v17 = vadd.f32 %v568_v9, %v390_v15  ;;  %v618_v18 = vpop.f32.mrb[2].mxu0  ;;  %v622_v19 = vpop.f32.mrb[2].mxu1 }
  0xed   : > { %v593_v20 = vpack.c.bf16 %v383_v12, %v383_v12  ;;  %v597_v21 = vpack.c.bf16 %v399_v13, %v399_v13  ;;  %v386_v22 = vadd.f32 %v618_v18, %v568_v9  ;;  %v402_v23 = vadd.f32 %v622_v19, %v568_v9  ;;  %v377_v24 = vpop.f32.mrb[3].mxu0  ;;  %v393_v25 = vpop.f32.mrb[3].mxu1 }
  0xee   : > { %v591_v26 = vpack.c.bf16 %v375_v16, %v375_v16  ;;  %v595_v27 = vpack.c.bf16 %v391_v17, %v391_v17  ;;  %v378_v28 = vadd.f32 %v568_v9, %v377_v24  ;;  %v394_v29 = vadd.f32 %v568_v9, %v393_v25 }
  0xef   : > { %440 = vst.msk [vmem:[%s257_s6 + $0x8] sm:$0xf] %vm437_vm2, %v593_v20  ;;  %444 = vst.msk [vmem:[%s257_s6 + $0x18] sm:$0xf] %vm437_vm2, %v597_v21  ;;  %v594_v30 = vpack.c.bf16 %v386_v22, %v386_v22  ;;  %v598_v31 = vpack.c.bf16 %v402_v23, %v402_v23 }
  0xf0   : > { %438 = vst.msk [vmem:[%s257_s6] sm:$0xf] %vm437_vm2, %v591_v26  ;;  %442 = vst.msk [vmem:[%s257_s6 + $0x10] sm:$0xf] %vm437_vm2, %v595_v27  ;;  %v592_v32 = vpack.c.bf16 %v378_v28, %v378_v28  ;;  %v596_v33 = vpack.c.bf16 %v394_v29, %v394_v29 }
  0xf1   : > { %441 = vst.msk [vmem:[%s257_s6 + $0xc] sm:$0xf] %vm437_vm2, %v594_v30  ;;  %445 = vst.msk [vmem:[%s257_s6 + $0x1c] sm:$0xf] %vm437_vm2, %v598_v31 }
  0xf2   : > { %439 = vst.msk [vmem:[%s257_s6 + $0x4] sm:$0xf] %vm437_vm2, %v592_v32  ;;  %443 = vst.msk [vmem:[%s257_s6 + $0x14] sm:$0xf] %vm437_vm2, %v596_v33 }
  0xf3 PF: > { %s13_s14 = sadd.s32 1, %s687_s14   ;;  %s780_s12 = smov %s683_s13 }
  0xf4   : > { %p10_p5 = scmp.ge.s32.totalorder %s13_s14, 4   ;;  %s781_s13 = smov %s783_s15 }
  0xf6   :  { %12 = sbr.rel (!%p10_p5) target bundleno = 2 (0x2), region = 68 }

// kernel: encoder_decoder_forward.22
= control target key start
LH: loop header
LB: loop body
LE: loop exit
PB: predicated region body
PF: predicated region fallthrough
CT: control target
= control target key end

     0   :  { %s1510_s15 = smov 0   ;;  %s1512_s16 = smov 0   ;;  %s1714_s0 = inlined_call_operand.vmem [shape: bf16[128,576], index: 0, kind: input, shape index: {}]   ;;  %s1715_s1 = inlined_call_operand.vmem [shape: bf16[576,64], index: 1, kind: input, shape index: {}]   ;;  %s1716_s2 = inlined_call_operand.vmem [shape: f32[1,64], index: 2, kind: input, shape index: {}]   ;;  %s1717_s3 = inlined_call_operand.vmem [shape: bf16[128,64], index: 3, kind: input, shape index: {}]   ;;  %s1718_s4 = inlined_call_operand.vmem [shape: bf16[128,64], index: 4, kind: output, shape index: {}]  }
   0x1   :  { %s1514_s17 = smov 0  }
   0x2 LB: > { %s33_s18 = sadd.s32 1, %s1479_s16  ;;  %p1155_p0 = scmp.ge.s32.totalorder %s1483_s17, 1  ;;  %s1483_s17 = sphi %s1514_s17, %s14_s17   ;;  %s1479_s16 = sphi %s1512_s16, %s1720_s16   ;;  %s1475_s15 = sphi %s1510_s15, %s1719_s15  }
   0x3   : > { %p35_p1 = scmp.ge.s32.totalorder %s33_s18, 2  ;;  %p232_p2 = scmp.lt.s32.totalorder %s1483_s17, 3 }
   0x5   : > { %s1722_s18 = smov (%p35_p1, %s33_s18), 0  ;;  %p233_p3 = pnand %p1155_p0, %p232_p2 }
   0x6   : > { %v1397_v0 = vld [vmem:[%s1715_s1 + $0x40] sm:$0xff] (!%p233_p3)   ;;  %v1401_v4 = vld [vmem:[%s1715_s1 + $0x48] sm:$0xff] (!%p233_p3)   ;;  %v1405_v8 = vld [vmem:[%s1715_s1 + $0x50] sm:$0xff] (!%p233_p3)   ;;  %s1156_s27 = sshll.u32 (!%p233_p3), %s1475_s15, 3  ;;  %vm747_vm0 = vcmask (!%p233_p3), 523264   ;;  %vm1011_vm1 = vcmask (!%p233_p3), 519168  }
   0x7   : > { %236 = sbr.rel (%p233_p3) target bundleno = 295 (0x127), region = 36  ;;  %v1398_v1 = vld [vmem:[%s1715_s1 + $0xc0] sm:$0xff] (!%p233_p3)   ;;  %1260 = vmatprep.subr.bf16.mxu0 (!%p233_p3), %v1397_v0  ;;  %v1402_v5 = vld [vmem:[%s1715_s1 + $0xc8] sm:$0xff] (!%p233_p3)   ;;  %v1406_v9 = vld [vmem:[%s1715_s1 + $0xd0] sm:$0xff] (!%p233_p3)   ;;  %p287_p4 = scmp.lt.s32.totalorder (!%p233_p3), %s1156_s27, 15 }
   0x8   : > { %v1399_v2 = vld [vmem:[%s1715_s1] sm:$0xff] (!%p233_p3)   ;;  %1300 = vmatprep.subr.bf16.mxu1 (!%p233_p3), %v1398_v1  ;;  %v1403_v6 = vld [vmem:[%s1715_s1 + $0x8] sm:$0xff] (!%p233_p3)   ;;  %v1407_v10 = vld [vmem:[%s1715_s1 + $0x10] sm:$0xff] (!%p233_p3)  }
   0x9   : > { %v1400_v3 = vld [vmem:[%s1715_s1 + $0x80] sm:$0xff] (!%p233_p3)   ;;  %1261 = vmatpush3.bf16.msra.mxu0 (!%p233_p3), %v1399_v2  ;;  %v1404_v7 = vld [vmem:[%s1715_s1 + $0x88] sm:$0xff] (!%p233_p3)   ;;  %v1408_v11 = vld [vmem:[%s1715_s1 + $0x90] sm:$0xff] (!%p233_p3)  }
   0xa   : > { %1301 = vmatpush3.bf16.msra.mxu1 (!%p233_p3), %v1400_v3  ;;  %1262 = vmatprep.subr.bf16.mxu0 (!%p233_p3), %v1401_v4  ;;  %v1409_v12 = vld [vmem:[%s1715_s1 + $0x58] sm:$0xff] (!%p233_p3)   ;;  %v1413_v16 = vld [vmem:[%s1715_s1 + $0x60] sm:$0xff] (!%p233_p3)   ;;  %v1417_v20 = vld [vmem:[%s1715_s1 + $0x68] sm:$0xff] (!%p233_p3)  }
   0xb   : > { %1302 = vmatprep.subr.bf16.mxu1 (!%p233_p3), %v1402_v5  ;;  %v1410_v13 = vld [vmem:[%s1715_s1 + $0xd8] sm:$0xff] (!%p233_p3)   ;;  %v1414_v17 = vld [vmem:[%s1715_s1 + $0xe0] sm:$0xff] (!%p233_p3)   ;;  %v1418_v21 = vld [vmem:[%s1715_s1 + $0xe8] sm:$0xff] (!%p233_p3)  }
   0xc   : > { %v1411_v14 = vld [vmem:[%s1715_s1 + $0x18] sm:$0xff] (!%p233_p3)   ;;  %v1415_v18 = vld [vmem:[%s1715_s1 + $0x20] sm:$0xff] (!%p233_p3)   ;;  %v1419_v22 = vld [vmem:[%s1715_s1 + $0x28] sm:$0xff] (!%p233_p3)  }
   0xd   : > { %1263 = vmatpush3.bf16.msra.mxu0 (!%p233_p3), %v1403_v6  ;;  %v1412_v15 = vld [vmem:[%s1715_s1 + $0x98] sm:$0xff] (!%p233_p3)   ;;  %v1416_v19 = vld [vmem:[%s1715_s1 + $0xa0] sm:$0xff] (!%p233_p3)   ;;  %v1420_v23 = vld [vmem:[%s1715_s1 + $0xa8] sm:$0xff] (!%p233_p3)  }
   0xe   : > { %1303 = vmatpush3.bf16.msra.mxu1 %v1404_v7  ;;  %1264 = vmatprep.subr.bf16.mxu0 %v1405_v8  ;;  %s1724_s27 = smov (!%p287_p4, %s1156_s27), 15  ;;  %v1421_v24 = vld [vmem:[%s1715_s1 + $0x70] sm:$0xff]   ;;  %v1425_v28 = vld [vmem:[%s1715_s1 + $0x78] sm:$0xff]   ;;  %v1435_v36 = vld [vmem:[%s1715_s1 + $0x100] sm:$0xff]  }
   0xf   : > { %1304 = vmatprep.subr.bf16.mxu1 %v1406_v9  ;;  %v1422_v25 = vld [vmem:[%s1715_s1 + $0xf0] sm:$0xff]   ;;  %s1372_s28 = smul.u32 20, %s1724_s27  ;;  %v1426_v29 = vld [vmem:[%s1715_s1 + $0xf8] sm:$0xff]   ;;  %v1442_v39 = vld [vmem:[%s1715_s1 + $0x108] sm:$0xff]   ;;  %s1159_s6 = sshll.u32 %s1724_s27, 2 }
  0x10   : > { %v1423_v26 = vld [vmem:[%s1715_s1 + $0x30] sm:$0xff]   ;;  %v1427_v30 = vld [vmem:[%s1715_s1 + $0x38] sm:$0xff]   ;;  %v1670_v58 = vld [vmem:[%s1716_s2] ss:$0 sm:$0xff]  ;;  %s316_s9 = scalar_lea.vmem %s1717_s3, %s1159_s6  ;;  %s325_s11 = scalar_lea.vmem %s1718_s4, %s1159_s6 }
  0x11   : > { %1265 = vmatpush3.bf16.msra.mxu0 %v1407_v10  ;;  %v1424_v27 = vld [vmem:[%s1715_s1 + $0xb0] sm:$0xff]   ;;  %s1627_s12 = scalar_lea.vmem %s1714_s0, %s1372_s28  ;;  %v1428_v31 = vld [vmem:[%s1715_s1 + $0xb8] sm:$0xff]  }
  0x12   : > { %1305 = vmatpush3.bf16.msra.mxu1 %v1408_v11  ;;  %1266 = vmatprep.subr.bf16.mxu0 %v1409_v12  ;;  %v1429_v32 = vld [vmem:[%s1627_s12] ss:$20 sps:$4 sm:$0xff]   ;;  %v1431_v33 = vld [vmem:[%s1627_s12 + $0x4] ss:$20 sps:$4 sm:$0xff]   ;;  %v1432_v34 = vld [vmem:[%s1627_s12 + $0x8] ss:$20 sps:$4 sm:$0xff]  }
  0x13   : > { %1306 = vmatprep.subr.bf16.mxu1 %v1410_v13  ;;  %v1434_v35 = vld [vmem:[%s1627_s12 + $0xc] ss:$20 sps:$4 sm:$0xff]   ;;  %792 = vmatprep.mubr.bf16.mxu0 %v1431_v33  ;;  %v1438_v38 = vld [vmem:[%s1627_s12 + $0x34] ss:$20 sps:$4 sm:$0xff]   ;;  %v1441_v41 = vld [vmem:[%s1627_s12 + $0x30] ss:$20 sps:$4 sm:$0xff]  }
  0x14   : > { %857 = vmatprep.mubr.bf16.mxu1 %v1434_v35  ;;  %v1436_v37 = vld [vmem:[%s1627_s12 + $0x2c] ss:$20 sps:$4 sm:$0xff]   ;;  %v1440_v40 = vld [vmem:[%s1627_s12 + $0x28] ss:$20 sps:$4 sm:$0xff]   ;;  %v1449_v44 = vld [vmem:[%s1715_s1 + $0x110] sm:$0xff]  }
  0x15   : > { %1267 = vmatpush3.bf16.msra.mxu0 %v1411_v14  ;;  %v1443_v42 = vld [vmem:[%s1627_s12 + $0x54] ss:$20 sps:$4 sm:$0xff]   ;;  %v1445_v43 = vld [vmem:[%s1627_s12 + $0x5c] ss:$20 sps:$4 sm:$0xff]   ;;  %v1448_v47 = vld [vmem:[%s1627_s12 + $0x58] ss:$20 sps:$4 sm:$0xff]  }
  0x16   : > { %1307 = vmatpush3.bf16.msra.mxu1 %v1412_v15  ;;  %1268 = vmatprep.subr.bf16.mxu0 %v1413_v16  ;;  %v1456_v45 = vld [vmem:[%s1715_s1 + $0x118] sm:$0xff]   ;;  %v1447_v46 = vld [vmem:[%s1627_s12 + $0x50] ss:$20 sps:$4 sm:$0xff]   ;;  %v1455_v51 = vld [vmem:[%s1627_s12 + $0x80] ss:$20 sps:$4 sm:$0xff]  }
  0x17   : > { %1308 = vmatprep.subr.bf16.mxu1 %v1414_v17  ;;  %v1450_v48 = vld [vmem:[%s1627_s12 + $0x7c] ss:$20 sps:$4 sm:$0xff]   ;;  %v1452_v49 = vld [vmem:[%s1627_s12 + $0x84] ss:$20 sps:$4 sm:$0xff]   ;;  %v1458_v53 = vld [vmem:[%s1627_s12 + $0x60] ss:$20 sps:$4 sm:$0xff]  }
  0x18   : > { %v1454_v50 = vld [vmem:[%s1627_s12 + $0x78] ss:$20 sps:$4 sm:$0xff]   ;;  %v1457_v52 = vld [vmem:[%s1627_s12 + $0x10] ss:$20 sps:$4 sm:$0xff]   ;;  %v1460_v55 = vld [vmem:[%s1627_s12 + $0x88] ss:$20 sps:$4 sm:$0xff]  }
  0x19   : > { %1269 = vmatpush3.bf16.msra.mxu0 %v1415_v18  ;;  %v1459_v54 = vld [vmem:[%s1627_s12 + $0x38] ss:$20 sps:$4 sm:$0xff]  }
  0x1a   : > { %1309 = vmatpush3.bf16.msra.mxu1 %v1416_v19  ;;  %1270 = vmatprep.subr.bf16.mxu0 %v1417_v20 }
  0x1b   : > { %1310 = vmatprep.subr.bf16.mxu1 %v1418_v21 }
  0x1d   : > { %1271 = vmatpush3.bf16.msra.mxu0 %v1419_v22 }
  0x1e   : > { %1311 = vmatpush3.bf16.msra.mxu1 %v1420_v23  ;;  %1272 = vmatprep.subr.bf16.mxu0 %v1421_v24 }
  0x1f   : > { %1312 = vmatprep.subr.bf16.mxu1 %v1422_v25 }
  0x21   : > { %1273 = vmatpush3.bf16.msra.mxu0 %v1423_v26 }
  0x22   : > { %1313 = vmatpush3.bf16.msra.mxu1 %v1424_v27  ;;  %1274 = vmatprep.subr.bf16.mxu0 %v1425_v28 }
  0x23   : > { %1314 = vmatprep.subr.bf16.mxu1 %v1426_v29 }
  0x25   : > { %1275 = vmatpush3.bf16.msra.mxu0 %v1427_v30 }
  0x26   : > { %1315 = vmatpush3.bf16.msra.mxu1 %v1428_v31  ;;  %1348 = vmatprep.subr.bf16.mxu0 %v1435_v36 }
  0x27   : > { %1364 = vmatprep.subr.bf16.mxu1 %v1435_v36 }
  0x28   : > { %793 = vmatmul.mubr.bf16.vlgmr.msra.gmra.mrb[0].mxu0 %v1429_v32 }
  0x29   : > { %858 = vmatmul.mubr.bf16.vlgmr.msra.gmra.mrb[0].mxu1 %v1432_v34  ;;  %1349 = vmatpush3.bf16.msra.mxu0 %v1435_v36 }
  0x2a   : > { %1368 = vmatpush3.bf16.msra.mxu1 %v1435_v36  ;;  %800 = vmatprep.mubr.bf16.mxu0 %v1436_v37 }
  0x2b   : > { %865 = vmatprep.mubr.bf16.mxu1 %v1438_v38  ;;  %1350 = vmatprep.subr.bf16.mxu0 %v1442_v39 }
  0x2c   : > { %1365 = vmatprep.subr.bf16.mxu1 %v1442_v39 }
  0x2d   : > { %1351 = vmatpush3.bf16.msra.mxu0 %v1442_v39 }
  0x2e   : > { %1369 = vmatpush3.bf16.msra.mxu1 %v1442_v39  ;;  %1352 = vmatprep.subr.bf16.mxu0 %v1449_v44 }
  0x2f   : > { %1366 = vmatprep.subr.bf16.mxu1 %v1449_v44 }
  0x30   : > { %801 = vmatmul.mubr.bf16.gmra.mrb[4].mxu0 %v1440_v40 }
  0x31   : > { %866 = vmatmul.mubr.bf16.gmra.mrb[4].mxu1 %v1441_v41  ;;  %808 = vmatprep.mubr.bf16.mxu0 %v1443_v42 }
  0x32   : > { %873 = vmatprep.mubr.bf16.mxu1 %v1445_v43  ;;  %1353 = vmatpush3.bf16.msra.mxu0 %v1449_v44 }
  0x33   : > { %1370 = vmatpush3.bf16.msra.mxu1 %v1449_v44  ;;  %1354 = vmatprep.subr.bf16.mxu0 %v1456_v45 }
  0x34   : > { %1367 = vmatprep.subr.bf16.mxu1 %v1456_v45 }
  0x36   : > { %1355 = vmatpush3.bf16.msra.mxu0 %v1456_v45 }
  0x37   : > { %1371 = vmatpush3.bf16.msra.mxu1 %v1456_v45 }
  0x38   : > { %809 = vmatmul.mubr.bf16.gmra.mrb[8].mxu0 %v1447_v46 }
  0x39   : > { %874 = vmatmul.mubr.bf16.gmra.mrb[8].mxu1 %v1448_v47  ;;  %816 = vmatprep.mubr.bf16.mxu0 %v1450_v48 }
  0x3a   : > { %881 = vmatprep.mubr.bf16.mxu1 %v1452_v49 }
  0x40   : > { %817 = vmatmul.mubr.bf16.gmra.mrb[12].mxu0 %v1454_v50 }
  0x41   : > { %882 = vmatmul.mubr.bf16.gmra.mrb[12].mxu1 %v1455_v51  ;;  %1356 = vmatprep.mubr.msk.bf16.mxu0 %vm747_vm0, %v1457_v52 }
  0x42   : > { %1360 = vmatprep.mubr.msk.bf16.mxu1 %vm747_vm0, %v1458_v53  ;;  %v1257_v53 = vld [vmem:[%s316_s9 + $0x8] sm:$0xff]  }
  0x48   : > { %1357 = vmatmul.mubr.msk.bf16.vlgmr.msra.gmra.mrb[16].mxu0 %vm747_vm0, %v1459_v54 }
  0x49   : > { %1361 = vmatmul.mubr.msk.bf16.vlgmr.msra.gmra.mrb[16].mxu1 %vm747_vm0, %v1460_v55  ;;  %v1259_v55 = vld [vmem:[%s316_s9 + $0x18] sm:$0xff]  }
  0xfb   : > { %v1276_v56 = vpop.f32.mrb[0].mxu0 }
  0xfc   : > { %v1316_v57 = vpop.f32.mrb[0].mxu1  ;;  %v1277_v59 = vpop.f32.mrb[1].mxu0 }
  0xfd   : > { %v1278_v60 = vadd.f32 %v1277_v59, %v1276_v56  ;;  %v1317_v61 = vpop.f32.mrb[1].mxu1  ;;  %v1279_v62 = vpop.f32.mrb[2].mxu0  ;;  %v1242_v56 = vld [vmem:[%s316_s9] sm:$0xff]  }
  0xfe   : > { %v1318_v63 = vadd.f32 %v1317_v61, %v1316_v57  ;;  %v1319_v0 = vpop.f32.mrb[2].mxu1  ;;  %v1280_v1 = vpop.f32.mrb[3].mxu0  ;;  %v1247_v61 = vunpack.c.l.bf16 %v1257_v53 }
  0xff   : > { %v795_v2 = vadd.f32 %v1278_v60, %v1670_v58  ;;  %v1281_v3 = vadd.f32 %v1280_v1, %v1279_v62  ;;  %v1320_v4 = vpop.f32.mrb[3].mxu1  ;;  %v1258_v60 = vld [vmem:[%s316_s9 + $0x10] sm:$0xff]  }
 0x100   : > { %v1321_v5 = vadd.f32 %v1320_v4, %v1319_v0  ;;  %v1243_v0 = vunpack.c.l.bf16 %v1242_v56 }
 0x101   : > { %v798_v6 = vadd.f32 %v1281_v3, %v1670_v58  ;;  %v1674_v7 = vadd.f32 %v1318_v63, %v795_v2  ;;  %v1255_v63 = vunpack.c.l.bf16 %v1259_v55 }
 0x103   : > { %v1282_v8 = vpop.f32.mrb[4].mxu0  ;;  %v1676_v9 = vadd.f32 %v1321_v5, %v798_v6  ;;  %v1251_v5 = vunpack.c.l.bf16 %v1258_v60  ;;  %v1248_v6 = vunpack.c.h.bf16 %v1257_v53 }
 0x104   : > { %v1322_v10 = vpop.f32.mrb[4].mxu1  ;;  %v1283_v11 = vpop.f32.mrb[5].mxu0 }
 0x105   : > { %v1284_v12 = vadd.f32 %v1283_v11, %v1282_v8  ;;  %v1323_v13 = vpop.f32.mrb[5].mxu1  ;;  %v1285_v14 = vpop.f32.mrb[6].mxu0  ;;  %v1256_v8 = vunpack.c.h.bf16 %v1259_v55 }
 0x106   : > { %v1324_v15 = vadd.f32 %v1323_v13, %v1322_v10  ;;  %v1325_v16 = vpop.f32.mrb[6].mxu1  ;;  %v1286_v17 = vpop.f32.mrb[7].mxu0  ;;  %v1244_v13 = vunpack.c.h.bf16 %v1242_v56 }
 0x107   : > { %v803_v18 = vadd.f32 %v1284_v12, %v1670_v58  ;;  %v1287_v19 = vadd.f32 %v1286_v17, %v1285_v14  ;;  %v1326_v20 = vpop.f32.mrb[7].mxu1 }
 0x108   : > { %v1327_v21 = vadd.f32 %v1326_v20, %v1325_v16 }
 0x109   : > { %v806_v22 = vadd.f32 %v1287_v19, %v1670_v58  ;;  %v868_v23 = vadd.f32 %v1324_v15, %v803_v18  ;;  %v1252_v19 = vunpack.c.h.bf16 %v1258_v60 }
 0x10b   : > { %v1288_v24 = vpop.f32.mrb[8].mxu0  ;;  %v871_v25 = vadd.f32 %v1327_v21, %v806_v22 }
 0x10c   : > { %v1328_v26 = vpop.f32.mrb[8].mxu1  ;;  %v1289_v27 = vpop.f32.mrb[9].mxu0 }
 0x10d   : > { %v1290_v28 = vadd.f32 %v1289_v27, %v1288_v24  ;;  %v1329_v29 = vpop.f32.mrb[9].mxu1  ;;  %v1291_v30 = vpop.f32.mrb[10].mxu0 }
 0x10e   : > { %v1330_v31 = vadd.f32 %v1329_v29, %v1328_v26  ;;  %v1331_v32 = vpop.f32.mrb[10].mxu1  ;;  %v1292_v33 = vpop.f32.mrb[11].mxu0 }
 0x10f   : > { %v811_v34 = vadd.f32 %v1290_v28, %v1670_v58  ;;  %v1293_v35 = vadd.f32 %v1292_v33, %v1291_v30  ;;  %v1332_v36 = vpop.f32.mrb[11].mxu1 }
 0x110   : > { %v1333_v37 = vadd.f32 %v1332_v36, %v1331_v32 }
 0x111   : > { %v814_v38 = vadd.f32 %v1293_v35, %v1670_v58  ;;  %v876_v39 = vadd.f32 %v1330_v31, %v811_v34 }
 0x113   : > { %v1294_v40 = vpop.f32.mrb[12].mxu0  ;;  %v879_v41 = vadd.f32 %v1333_v37, %v814_v38 }
 0x114   : > { %v1334_v42 = vpop.f32.mrb[12].mxu1  ;;  %v1295_v43 = vpop.f32.mrb[13].mxu0 }
 0x115   : > { %v1296_v44 = vadd.f32 %v1295_v43, %v1294_v40  ;;  %v1335_v45 = vpop.f32.mrb[13].mxu1  ;;  %v1297_v46 = vpop.f32.mrb[14].mxu0 }
 0x116   : > { %v1336_v47 = vadd.f32 %v1335_v45, %v1334_v42  ;;  %v1337_v48 = vpop.f32.mrb[14].mxu1  ;;  %v1298_v49 = vpop.f32.mrb[15].mxu0 }
 0x117   : > { %v819_v50 = vadd.f32 %v1296_v44, %v1670_v58  ;;  %v1299_v51 = vadd.f32 %v1298_v49, %v1297_v46  ;;  %v1338_v52 = vpop.f32.mrb[15].mxu1 }
 0x118   : > { %v1339_v54 = vadd.f32 %v1338_v52, %v1337_v48 }
 0x119   : > { %v822_v57 = vadd.f32 %v1299_v51, %v1670_v58  ;;  %v884_v59 = vadd.f32 %v1336_v47, %v819_v50 }
 0x11b   : > { %v1358_v62 = vpop.f32.mrb[16].mxu0  ;;  %v887_v1 = vadd.f32 %v1339_v54, %v822_v57 }
 0x11c   : > { %v933_v2 = vadd.f32 %v1358_v62, %v868_v23  ;;  %v1362_v3 = vpop.f32.mrb[16].mxu1  ;;  %v924_v4 = vpop.f32.mrb[17].mxu0 }
 0x11d   : > { %v949_v10 = vadd.f32 %v1362_v3, %v884_v59  ;;  %v925_v11 = vadd.f32 %v924_v4, %v1674_v7  ;;  %v940_v12 = vpop.f32.mrb[17].mxu1  ;;  %v1359_v58 = vpop.f32.mrb[18].mxu0 }
 0x11e   : > { %v973_v14 = vadd.f32 %v1247_v61, %v933_v2  ;;  %v941_v15 = vadd.f32 %v940_v12, %v876_v39  ;;  %v936_v16 = vadd.f32 %v1359_v58, %v871_v25  ;;  %v1363_v17 = vpop.f32.mrb[18].mxu1  ;;  %v927_v18 = vpop.f32.mrb[19].mxu0 }
 0x11f   : > { %v977_v20 = vadd.f32 %v1255_v63, %v949_v10  ;;  %v971_v21 = vadd.f32 %v1243_v0, %v925_v11  ;;  %v952_v22 = vadd.f32 %v1363_v17, %v887_v1  ;;  %v928_v23 = vadd.f32 %v927_v18, %v1676_v9  ;;  %v943_v7 = vpop.f32.mrb[19].mxu1 }
 0x120   : > { %v1235_v24 = vpack.c.bf16 %v973_v14, %v973_v14  ;;  %v975_v26 = vadd.f32 %v1251_v5, %v941_v15  ;;  %v974_v27 = vadd.f32 %v1248_v6, %v936_v16  ;;  %v944_v28 = vadd.f32 %v943_v7, %v879_v41 }
 0x121   : > { %v1239_v29 = vpack.c.bf16 %v977_v20, %v977_v20  ;;  %v1233_v25 = vpack.c.bf16 %v971_v21, %v971_v21  ;;  %v978_v30 = vadd.f32 %v1256_v8, %v952_v22  ;;  %v972_v31 = vadd.f32 %v1244_v13, %v928_v23 }
 0x122   : > { %1014 = vst.msk [vmem:[%s325_s11 + $0x8] sm:$0xf] %vm1011_vm1, %v1235_v24  ;;  %v1237_v32 = vpack.c.bf16 %v975_v26, %v975_v26  ;;  %v1236_v33 = vpack.c.bf16 %v974_v27, %v974_v27  ;;  %v976_v34 = vadd.f32 %v1252_v19, %v944_v28 }
 0x123   : > { %1018 = vst.msk [vmem:[%s325_s11 + $0x18] sm:$0xf] %vm1011_vm1, %v1239_v29  ;;  %1012 = vst.msk [vmem:[%s325_s11] sm:$0xf] %vm1011_vm1, %v1233_v25  ;;  %v1240_v35 = vpack.c.bf16 %v978_v30, %v978_v30  ;;  %v1234_v9 = vpack.c.bf16 %v972_v31, %v972_v31 }
 0x124   : > { %1016 = vst.msk [vmem:[%s325_s11 + $0x10] sm:$0xf] %vm1011_vm1, %v1237_v32  ;;  %1015 = vst.msk [vmem:[%s325_s11 + $0xc] sm:$0xf] %vm1011_vm1, %v1236_v33  ;;  %v1238_v36 = vpack.c.bf16 %v976_v34, %v976_v34 }
 0x125   : > { %1019 = vst.msk [vmem:[%s325_s11 + $0x1c] sm:$0xf] %vm1011_vm1, %v1240_v35  ;;  %1013 = vst.msk [vmem:[%s325_s11 + $0x4] sm:$0xf] %vm1011_vm1, %v1234_v9 }
 0x126   : > { %1017 = vst.msk [vmem:[%s325_s11 + $0x14] sm:$0xf] %vm1011_vm1, %v1238_v36 }
 0x127 PF: > { %s14_s17 = sadd.s32 1, %s1483_s17   ;;  %s1719_s15 = smov %s1479_s16 }
 0x128   : > { %p11_p5 = scmp.ge.s32.totalorder %s14_s17, 4   ;;  %s1720_s16 = smov %s1722_s18 }
 0x12a   :  { %13 = sbr.rel (!%p11_p5) target bundleno = 2 (0x2), region = 75 }

// kernel: encoder_decoder_forward.23
= control target key start
LH: loop header
LB: loop body
LE: loop exit
PB: predicated region body
PF: predicated region fallthrough
CT: control target
= control target key end

     0   :  { %s715_s12 = smov 0   ;;  %s717_s13 = smov 0   ;;  %s782_s0 = inlined_call_operand.vmem [shape: bf16[128,64], index: 0, kind: input, shape index: {}]   ;;  %s783_s1 = inlined_call_operand.vmem [shape: bf16[64,64], index: 1, kind: input, shape index: {}]   ;;  %s784_s2 = inlined_call_operand.vmem [shape: f32[1,64], index: 2, kind: input, shape index: {}]   ;;  %s785_s3 = inlined_call_operand.vmem [shape: bf16[128,64], index: 3, kind: output, shape index: {}]  }
   0x1   :  { %s719_s14 = smov 0  }
   0x2 LB: > { %s32_s15 = sadd.s32 1, %s689_s13  ;;  %p571_p0 = scmp.ge.s32.totalorder %s693_s14, 1  ;;  %s693_s14 = sphi %s719_s14, %s13_s14   ;;  %s689_s13 = sphi %s717_s13, %s787_s13   ;;  %s685_s12 = sphi %s715_s12, %s786_s12  }
   0x3   : > { %p34_p1 = scmp.ge.s32.totalorder %s32_s15, 2  ;;  %p188_p2 = scmp.lt.s32.totalorder %s693_s14, 3 }
   0x5   : > { %s789_s15 = smov (%p34_p1, %s32_s15), 0  ;;  %p189_p3 = pnand %p571_p0, %p188_p2 }
   0x6   : > { %v663_v0 = vld [vmem:[%s783_s1] sm:$0xff] (!%p189_p3)   ;;  %s572_s18 = sshll.u32 (!%p189_p3), %s685_s12, 3  ;;  %v664_v1 = vld [vmem:[%s783_s1 + $0x8] sm:$0xff] (!%p189_p3)   ;;  %v665_v2 = vld [vmem:[%s783_s1 + $0x10] sm:$0xff] (!%p189_p3)   ;;  %vm327_vm0 = vcmask (!%p189_p3), 523264   ;;  %vm445_vm1 = vcmask (!%p189_p3), 519168  }
   0x7   : > { %192 = sbr.rel (%p189_p3) target bundleno = 245 (0xf5), region = 32  ;;  %p230_p4 = scmp.lt.s32.totalorder (!%p189_p3), %s572_s18, 15  ;;  %615 = vmatprep.subr.bf16.mxu0 (!%p189_p3), %v663_v0  ;;  %631 = vmatprep.subr.bf16.mxu1 (!%p189_p3), %v663_v0  ;;  %v666_v3 = vld [vmem:[%s783_s1 + $0x18] sm:$0xff] (!%p189_p3)   ;;  %v576_v8 = vld [vmem:[%s784_s2] ss:$0 sm:$0xff] (!%p189_p3) }
   0x8   : > { %616 = vmatpush3.bf16.msra.mxu0 (!%p189_p3), %v663_v0  ;;  %635 = vmatpush3.bf16.msra.mxu1 (!%p189_p3), %v663_v0 }
   0x9   : > { %617 = vmatprep.subr.bf16.mxu0 (!%p189_p3), %v664_v1  ;;  %632 = vmatprep.subr.bf16.mxu1 (!%p189_p3), %v664_v1 }
   0xc   : > { %618 = vmatpush3.bf16.msra.mxu0 (!%p189_p3), %v664_v1  ;;  %636 = vmatpush3.bf16.msra.mxu1 (!%p189_p3), %v664_v1 }
   0xd   : > { %619 = vmatprep.subr.bf16.mxu0 (!%p189_p3), %v665_v2  ;;  %633 = vmatprep.subr.bf16.mxu1 (!%p189_p3), %v665_v2 }
   0xe   : > { %s791_s18 = smov (!%p230_p4, %s572_s18), 15 }
   0xf   : > { %s573_s23 = sshll.u32 %s791_s18, 2 }
  0x10   : > { %s236_s28 = scalar_lea.vmem %s782_s0, %s573_s23  ;;  %620 = vmatpush3.bf16.msra.mxu0 %v665_v2  ;;  %637 = vmatpush3.bf16.msra.mxu1 %v665_v2  ;;  %s257_s6 = scalar_lea.vmem %s785_s3, %s573_s23 }
  0x11   : > { %v667_v4 = vld [vmem:[%s236_s28] sm:$0xff]   ;;  %v668_v5 = vld [vmem:[%s236_s28 + $0x10] sm:$0xff]   ;;  %621 = vmatprep.subr.bf16.mxu0 %v666_v3  ;;  %634 = vmatprep.subr.bf16.mxu1 %v666_v3  ;;  %v669_v6 = vld [vmem:[%s236_s28 + $0x8] sm:$0xff]  }
  0x12   : > { %623 = vmatprep.mubr.msk.bf16.mxu0 %vm327_vm0, %v667_v4  ;;  %627 = vmatprep.mubr.msk.bf16.mxu1 %vm327_vm0, %v668_v5  ;;  %v670_v7 = vld [vmem:[%s236_s28 + $0x18] sm:$0xff]  }
  0x14   : > { %622 = vmatpush3.bf16.msra.mxu0 %v666_v3  ;;  %638 = vmatpush3.bf16.msra.mxu1 %v666_v3 }
  0x17   : > { %624 = vmatmul.mubr.msk.bf16.vlgmr.msra.gmra.mrb[0].mxu0 %vm327_vm0, %v669_v6  ;;  %628 = vmatmul.mubr.msk.bf16.vlgmr.msra.gmra.mrb[0].mxu1 %vm327_vm0, %v670_v7 }
  0xea   : > { %v625_v9 = vpop.f32.mrb[0].mxu0  ;;  %v629_v10 = vpop.f32.mrb[0].mxu1 }
  0xeb   : > { %v383_v11 = vadd.f32 %v625_v9, %v576_v8  ;;  %v399_v12 = vadd.f32 %v629_v10, %v576_v8  ;;  %v374_v13 = vpop.f32.mrb[1].mxu0  ;;  %v390_v14 = vpop.f32.mrb[1].mxu1 }
  0xec   : > { %v375_v15 = vadd.f32 %v576_v8, %v374_v13  ;;  %v391_v16 = vadd.f32 %v576_v8, %v390_v14  ;;  %v626_v17 = vpop.f32.mrb[2].mxu0  ;;  %v630_v18 = vpop.f32.mrb[2].mxu1 }
  0xed   : > { %v407_v19 = vmax.f32 %v383_v11, 0.0  ;;  %v411_v20 = vmax.f32 %v399_v12, 0.0  ;;  %v386_v21 = vadd.f32 %v626_v17, %v576_v8  ;;  %v402_v22 = vadd.f32 %v630_v18, %v576_v8  ;;  %v377_v23 = vpop.f32.mrb[3].mxu0  ;;  %v393_v24 = vpop.f32.mrb[3].mxu1 }
  0xee   : > { %v405_v25 = vmax.f32 %v375_v15, 0.0  ;;  %v409_v26 = vmax.f32 %v391_v16, 0.0  ;;  %v378_v27 = vadd.f32 %v576_v8, %v377_v23  ;;  %v394_v28 = vadd.f32 %v576_v8, %v393_v24 }
  0xef   : > { %v601_v29 = vpack.c.bf16 %v407_v19, %v407_v19  ;;  %v605_v30 = vpack.c.bf16 %v411_v20, %v411_v20  ;;  %v408_v31 = vmax.f32 %v386_v21, 0.0  ;;  %v412_v32 = vmax.f32 %v402_v22, 0.0 }
  0xf0   : > { %v599_v33 = vpack.c.bf16 %v405_v25, %v405_v25  ;;  %v603_v34 = vpack.c.bf16 %v409_v26, %v409_v26  ;;  %v406_v35 = vmax.f32 %v378_v27, 0.0  ;;  %v410_v36 = vmax.f32 %v394_v28, 0.0 }
  0xf1   : > { %448 = vst.msk [vmem:[%s257_s6 + $0x8] sm:$0xf] %vm445_vm1, %v601_v29  ;;  %452 = vst.msk [vmem:[%s257_s6 + $0x18] sm:$0xf] %vm445_vm1, %v605_v30  ;;  %v602_v37 = vpack.c.bf16 %v408_v31, %v408_v31  ;;  %v606_v38 = vpack.c.bf16 %v412_v32, %v412_v32 }
  0xf2   : > { %446 = vst.msk [vmem:[%s257_s6] sm:$0xf] %vm445_vm1, %v599_v33  ;;  %450 = vst.msk [vmem:[%s257_s6 + $0x10] sm:$0xf] %vm445_vm1, %v603_v34  ;;  %v600_v39 = vpack.c.bf16 %v406_v35, %v406_v35  ;;  %v604_v40 = vpack.c.bf16 %v410_v36, %v410_v36 }
  0xf3   : > { %449 = vst.msk [vmem:[%s257_s6 + $0xc] sm:$0xf] %vm445_vm1, %v602_v37  ;;  %453 = vst.msk [vmem:[%s257_s6 + $0x1c] sm:$0xf] %vm445_vm1, %v606_v38 }
  0xf4   : > { %447 = vst.msk [vmem:[%s257_s6 + $0x4] sm:$0xf] %vm445_vm1, %v600_v39  ;;  %451 = vst.msk [vmem:[%s257_s6 + $0x14] sm:$0xf] %vm445_vm1, %v604_v40 }
  0xf5 PF: > { %s13_s14 = sadd.s32 1, %s693_s14   ;;  %s786_s12 = smov %s689_s13 }
  0xf6   : > { %p10_p5 = scmp.ge.s32.totalorder %s13_s14, 4   ;;  %s787_s13 = smov %s789_s15 }
  0xf8   :  { %12 = sbr.rel (!%p10_p5) target bundleno = 2 (0x2), region = 68 }

</bundles_post_ra>
